<compile_context>
chip_gen: v7x
topology: tpu7x:2x2x1
jax: 0.10.0
libtpu: 0.0.40
codegen_flags: <defaults>
</compile_context>

<pallas_src>
import functools

import jax
import jax.numpy as jnp
from jax import lax
from jax.experimental import pallas as pl
from jax.experimental.pallas import tpu as pltpu

EPS = 1e-5          # torch.nn.BatchNorm2d default eps
LANE = 128          # TPU lane width (channel padding target)


def _round_up(x, m):
    return (x + m - 1) // m * m


def _vmem_limit_bytes():
    """Chip-aware scoped-VMEM cap: ~3/4 of physical (96 MiB v5e/v6e, 48 MiB v7x)."""
    try:
        cap = getattr(pltpu.get_tpu_info(), "vmem_capacity_bytes", None)
        if cap:
            return int(cap) * 3 // 4
    except Exception:
        pass
    return 48 * 1024 * 1024


def _compiler_params():
    return pltpu.CompilerParams(
        dimension_semantics=("parallel",),   # batch axis -> megacore sharding on v7x
        vmem_limit_bytes=_vmem_limit_bytes())


# ---------------------------------------------------------------------------
# Kernels
# ---------------------------------------------------------------------------
def _conv_stats_kernel(*refs, n_phase, tap_map, ho, wo):
    """One image: 3x3 conv as 9 accumulated MXU matmuls over in-kernel im2col
    tap slices, plus per-image partial BN stats taken from the f32 acc."""
    x_refs = refs[:n_phase]             # phase planes (1, Hp, Wp, Cin_pad) bf16
    w_ref = refs[n_phase]               # (9, Cin_pad, Cout_pad) bf16
    y_ref = refs[n_phase + 1]           # (1, Ho*Wo, Cout_pad) bf16
    stats_ref = refs[n_phase + 2]       # (1, 8, Cout_pad) f32 (rows 0,1 used)
    acc_ref = refs[n_phase + 3]         # (Ho*Wo, Cout_pad) f32 scratch

    for t, (p, oh, ow) in enumerate(tap_map):
        xs = x_refs[p][0, oh:oh + ho, ow:ow + wo, :]           # (ho, wo, Cin_pad)
        xs = xs.reshape(ho * wo, xs.shape[-1])
        d = jnp.dot(xs, w_ref[t], preferred_element_type=jnp.float32)
        if t == 0:
            acc_ref[...] = d
        else:
            acc_ref[...] += d

    acc = acc_ref[...]
    # Partial BN stats from the f32 accumulator (before the bf16 downcast);
    # two row stores, rows 2..7 of the stats block are never read.
    stats_ref[0, 0:1, :] = jnp.sum(acc, axis=0, keepdims=True)
    stats_ref[0, 1:2, :] = jnp.sum(acc * acc, axis=0, keepdims=True)
    y_ref[0] = acc.astype(y_ref.dtype)


def _bn_relu_kernel(y_ref, scale_ref, shift_ref, o_ref):
    v = y_ref[0].astype(jnp.float32) * scale_ref[...] + shift_ref[...]
    o_ref[0] = jnp.maximum(v, 0.0).astype(o_ref.dtype)


def _bn_add_relu_kernel(y_ref, scale_ref, shift_ref, sc_ref, o_ref):
    v = (y_ref[0].astype(jnp.float32) * scale_ref[...] + shift_ref[...]
         + sc_ref[0].astype(jnp.float32))
    o_ref[0] = jnp.maximum(v, 0.0).astype(o_ref.dtype)


def _bn_dsadd_relu_kernel(y_ref, scale_ref, shift_ref, xs_ref, wds_ref, o_ref):
    sc = jnp.dot(xs_ref[0], wds_ref[...], preferred_element_type=jnp.float32)
    v = y_ref[0].astype(jnp.float32) * scale_ref[...] + shift_ref[...] + sc
    o_ref[0] = jnp.maximum(v, 0.0).astype(o_ref.dtype)


# ---------------------------------------------------------------------------
# pallas_call builders
# ---------------------------------------------------------------------------
def _conv_pass(planes, w_taps, *, tap_map, ho, wo, n):
    n_phase = len(planes)
    hp, wp, cin_p = planes[0].shape[1:]
    cp = w_taps.shape[-1]
    r_img = ho * wo
    plane_spec = pl.BlockSpec((1, hp, wp, cin_p), lambda i: (i, 0, 0, 0))
    flops = 2 * n * r_img * len(tap_map) * cin_p * cp
    bytes_accessed = int(sum(int(p.size) for p in planes) * 2
                         + int(w_taps.size) * 2
                         + n * r_img * cp * 2 + n * 8 * cp * 4)
    kernel = functools.partial(_conv_stats_kernel, n_phase=n_phase,
                               tap_map=tap_map, ho=ho, wo=wo)
    return pl.pallas_call(
        kernel,
        out_shape=(jax.ShapeDtypeStruct((n, r_img, cp), jnp.bfloat16),
                   jax.ShapeDtypeStruct((n, 8, cp), jnp.float32)),
        grid_spec=pltpu.PrefetchScalarGridSpec(
            num_scalar_prefetch=0,
            grid=(n,),
            in_specs=[plane_spec] * n_phase
                     + [pl.BlockSpec((9, w_taps.shape[1], cp), lambda i: (0, 0, 0))],
            out_specs=[pl.BlockSpec((1, r_img, cp), lambda i: (i, 0, 0)),
                       pl.BlockSpec((1, 8, cp), lambda i: (i, 0, 0))],
            scratch_shapes=[pltpu.VMEM((r_img, cp), jnp.float32)]),
        compiler_params=_compiler_params(),
        cost_estimate=pl.CostEstimate(flops=flops, transcendentals=0,
                                      bytes_accessed=bytes_accessed),
    )(*planes, w_taps)


def _bn_pass(kernel_fn, y, scale, shift, extras, extra_specs, *, out_dtype):
    n, r_img, cp = y.shape
    flops = 3 * n * r_img * cp
    if len(extras) == 2:                 # fused 1x1 downsample matmul
        flops += 2 * n * r_img * int(extras[0].shape[-1]) * cp
    bytes_accessed = int(int(y.size) * y.dtype.itemsize
                         + sum(int(e.size) * e.dtype.itemsize for e in extras)
                         + n * r_img * cp * jnp.dtype(out_dtype).itemsize)
    return pl.pallas_call(
        kernel_fn,
        out_shape=jax.ShapeDtypeStruct((n, r_img, cp), out_dtype),
        grid_spec=pltpu.PrefetchScalarGridSpec(
            num_scalar_prefetch=0,
            grid=(n,),
            in_specs=[pl.BlockSpec((1, r_img, cp), lambda i: (i, 0, 0)),
                      pl.BlockSpec((1, cp), lambda i: (0, 0)),
                      pl.BlockSpec((1, cp), lambda i: (0, 0))] + extra_specs,
            out_specs=pl.BlockSpec((1, r_img, cp), lambda i: (i, 0, 0))),
        compiler_params=_compiler_params(),
        cost_estimate=pl.CostEstimate(flops=flops, transcendentals=0,
                                      bytes_accessed=bytes_accessed),
    )(y, scale, shift, *extras)


# ---------------------------------------------------------------------------
# Wrapper glue (cheap data movement + tiny stat folds only)
# ---------------------------------------------------------------------------
def _fold_stats(stats, gamma, beta, r, cp):
    """Hoisted cross-image reduction of partial stats -> BN scale/shift."""
    s = jnp.sum(stats[:, 0, :], axis=0)
    ss = jnp.sum(stats[:, 1, :], axis=0)
    mean = s / r
    # TODO(synk): E[x^2]-mean^2 in f32 can cancel for large-mean activations;
    # switch to a shifted/Welford fold if real data exceeds tolerance.
    var = jnp.maximum(ss / r - mean * mean, 0.0)       # biased, torch train-mode
    g = jnp.pad(gamma, (0, cp - gamma.shape[0]))
    b = jnp.pad(beta, (0, cp - beta.shape[0]))
    scale = g * lax.rsqrt(var + EPS)
    shift = b - mean * scale
    return scale.reshape(1, cp), shift.reshape(1, cp)


def _conv3x3_taps(w, cin_p, cp):
    """PyTorch OIHW (O,I,3,3) -> (9, Cin_pad, Cout_pad) bf16, tap-major."""
    o, i = w.shape[0], w.shape[1]
    taps = jnp.transpose(w, (2, 3, 1, 0)).reshape(9, i, o)
    return jnp.pad(taps, ((0, 0), (0, cin_p - i), (0, cp - o))).astype(jnp.bfloat16)


def init_basic_block_params(key, in_channels, hid_channels):
    k1, k2, k3, k4, k5, k6, k7 = jax.random.split(key, 7)
    return {
        # PyTorch weight layouts: conv (O, I, kH, kW); BN affine (C,)
        "w1": 0.1 * jax.random.normal(k1, (hid_channels, in_channels, 3, 3), jnp.float32),
        "gamma1": 1.0 + 0.1 * jax.random.normal(k2, (hid_channels,), jnp.float32),
        "beta1": 0.1 * jax.random.normal(k3, (hid_channels,), jnp.float32),
        "w2": 0.1 * jax.random.normal(k4, (hid_channels, hid_channels, 3, 3), jnp.float32),
        "gamma2": 1.0 + 0.1 * jax.random.normal(k5, (hid_channels,), jnp.float32),
        "beta2": 0.1 * jax.random.normal(k6, (hid_channels,), jnp.float32),
        "w_ds": 0.1 * jax.random.normal(k7, (hid_channels, in_channels, 1, 1), jnp.float32),
    }


def basic_block_forward(x_nchw, params, stride=1):
    assert stride in (1, 2), "ResNet BasicBlock uses stride 1 or 2"
    n, cin, h, w = x_nchw.shape
    chid = params["w1"].shape[0]
    cin_p = _round_up(cin, LANE)
    cp = _round_up(chid, LANE)
    ho = (h - 1) // stride + 1
    wo = (w - 1) // stride + 1
    r = n * ho * wo

    # Single bf16, channel-padded, spatially zero-padded copy of the activation.
    x_nhwc = jnp.transpose(x_nchw, (0, 2, 3, 1))
    xp = jnp.pad(x_nhwc, ((0, 0), (1, 1), (1, 1), (0, cin_p - cin))).astype(jnp.bfloat16)

    # ---- conv1 (3x3, stride) + bn1 + relu ----
    if stride == 1:
        planes1 = [xp]
        tap_map1 = [(0, dh, dw) for dh in range(3) for dw in range(3)]
    else:
        # 2x2 phase split (space-to-depth) so every tap read is a contiguous slice.
        hp_ph, wp_ph = ho + 1, wo + 1
        xp2 = jnp.pad(xp, ((0, 0), (0, 2 * hp_ph - (h + 2)),
                           (0, 2 * wp_ph - (w + 2)), (0, 0)))
        planes1 = [xp2[:, a::2, b::2, :] for a in range(2) for b in range(2)]
        tap_map1 = [((dh % 2) * 2 + (dw % 2), dh // 2, dw // 2)
                    for dh in range(3) for dw in range(3)]
    w1_taps = _conv3x3_taps(params["w1"], cin_p, cp)
    y1, st1 = _conv_pass(planes1, w1_taps, tap_map=tap_map1, ho=ho, wo=wo, n=n)
    scale1, shift1 = _fold_stats(st1, params["gamma1"], params["beta1"], r, cp)
    a1 = _bn_pass(_bn_relu_kernel, y1, scale1, shift1, [], [],
                  out_dtype=jnp.bfloat16)                     # (n, ho*wo, cp) bf16

    # ---- conv2 (3x3, stride 1) + bn2 + shortcut + relu ----
    # TODO(synk): the zero border for conv2 could be fused into the bn1 store
    # (write a spatially padded a1 directly) to remove this jnp.pad copy.
    a1p = jnp.pad(a1.reshape(n, ho, wo, cp), ((0, 0), (1, 1), (1, 1), (0, 0)))
    tap_map2 = [(0, dh, dw) for dh in range(3) for dw in range(3)]
    w2_taps = _conv3x3_taps(params["w2"], cp, cp)
    y2, st2 = _conv_pass([a1p], w2_taps, tap_map=tap_map2, ho=ho, wo=wo, n=n)
    scale2, shift2 = _fold_stats(st2, params["gamma2"], params["beta2"], r, cp)

    # TODO(synk): source forward references undefined `self.shortcut`; implemented
    # as the declared `self.downsample` projection (standard ResNet residual).
    if stride != 1 or cin != chid:
        xs = xp[:, 1::stride, 1::stride, :][:, :ho, :wo, :].reshape(n, ho * wo, cin_p)
        w_ds = jnp.pad(params["w_ds"].reshape(chid, cin).T,
                       ((0, cin_p - cin), (0, cp - chid))).astype(jnp.bfloat16)
        extra_specs = [pl.BlockSpec((1, ho * wo, cin_p), lambda i: (i, 0, 0)),
                       pl.BlockSpec((cin_p, cp), lambda i: (0, 0))]
        out = _bn_pass(_bn_dsadd_relu_kernel, y2, scale2, shift2,
                       [xs, w_ds], extra_specs, out_dtype=jnp.float32)
    else:
        sc = xp[:, 1:1 + h, 1:1 + w, :].reshape(n, h * w, cp)   # cp == cin_p here
        extra_specs = [pl.BlockSpec((1, ho * wo, cp), lambda i: (i, 0, 0))]
        out = _bn_pass(_bn_add_relu_kernel, y2, scale2, shift2,
                       [sc], extra_specs, out_dtype=jnp.float32)

    out = out[:, :, :chid].reshape(n, ho, wo, chid)             # drop lane padding
    return jnp.transpose(out, (0, 3, 1, 2))                     # NHWC -> NCHW


# ---------------------------------------------------------------------------
# Reference (pure JAX, mirrors PyTorch forward with train-mode BN)
# ---------------------------------------------------------------------------
def _reference_forward(x_nchw, params, stride):
    """Convs use bf16 inputs with f32 accumulation to mirror the kernel's MXU
    numerics; BN / ReLU / residual add stay in f32."""
    def conv(x, wt, s, pad):
        return lax.conv_general_dilated(
            x.astype(jnp.bfloat16), wt.astype(jnp.bfloat16),
            window_strides=(s, s), padding=pad,
            dimension_numbers=("NCHW", "OIHW", "NCHW"),
            preferred_element_type=jnp.float32)

    def bn(x, gamma, beta):
        mean = jnp.mean(x, axis=(0, 2, 3), keepdims=True)
        var = jnp.mean((x - mean) ** 2, axis=(0, 2, 3), keepdims=True)
        return ((x - mean) * lax.rsqrt(var + EPS) * gamma.reshape(1, -1, 1, 1)
                + beta.reshape(1, -1, 1, 1))

    cin = x_nchw.shape[1]
    chid = params["w1"].shape[0]
    out = jax.nn.relu(bn(conv(x_nchw, params["w1"], stride, [(1, 1), (1, 1)]),
                         params["gamma1"], params["beta1"]))
    out = bn(conv(out, params["w2"], 1, [(1, 1), (1, 1)]),
             params["gamma2"], params["beta2"])
    if stride != 1 or cin != chid:
        sc = conv(x_nchw, params["w_ds"], stride, [(0, 0), (0, 0)])
    else:
        sc = x_nchw
    return jax.nn.relu(out + sc)


if __name__ == "__main__":
    key = jax.random.PRNGKey(0)
    kx1, kx2, kp1, kp2 = jax.random.split(key, 4)

    # bf16 storage of conv/BN intermediates and the shortcut (perf choice) adds
    # ~2^-9 relative rounding per stored term, so compare at 2e-2.
    TOL = dict(atol=2e-2, rtol=2e-2)

    # Block 1: downsample path (stride 2, 4 -> 8 channels).
    in_c, hid_c, stride = 4, 8, 2
    x = jax.random.normal(kx1, (2, in_c, 16, 16), jnp.float32)      # NCHW (torch)
    params = init_basic_block_params(kp1, in_c, hid_c)
    fwd = jax.jit(basic_block_forward, static_argnames=("stride",))
    out = jax.block_until_ready(fwd(x, params, stride=stride))
    ref = jax.block_until_ready(_reference_forward(x, params, stride))
    assert out.shape == (2, hid_c, 16 // stride, 16 // stride), out.shape
    assert bool(jnp.allclose(out, ref, **TOL)), (
        "downsample-block mismatch, max |err| = %f"
        % float(jnp.max(jnp.abs(out - ref))))

    # Block 2: identity path (stride 1, 8 -> 8 channels, no projection).
    x_id = jax.random.normal(kx2, (2, hid_c, 16, 16), jnp.float32)
    params_id = init_basic_block_params(kp2, hid_c, hid_c)
    out2 = jax.block_until_ready(fwd(x_id, params_id, stride=1))
    ref2 = jax.block_until_ready(_reference_forward(x_id, params_id, 1))
    assert out2.shape == (2, hid_c, 16, 16), out2.shape
    assert bool(jnp.allclose(out2, ref2, **TOL)), (
        "identity-block mismatch, max |err| = %f"
        % float(jnp.max(jnp.abs(out2 - ref2))))

    print("KERNEL_OK")
</pallas_src>

<mosaic_0001>
module attributes {stable_mosaic.version = 11 : i64} {
  func.func @_conv_stats_kernel(%arg0: i32, %arg1: memref<1x9x9x128xbf16, #tpu.memory_space<vmem>>, %arg2: memref<1x9x9x128xbf16, #tpu.memory_space<vmem>>, %arg3: memref<1x9x9x128xbf16, #tpu.memory_space<vmem>>, %arg4: memref<1x9x9x128xbf16, #tpu.memory_space<vmem>>, %arg5: memref<9x128x128xbf16, #tpu.memory_space<vmem>>, %arg6: memref<1x64x128xbf16, #tpu.memory_space<vmem>>, %arg7: memref<1x8x128xf32, #tpu.memory_space<vmem>>, %arg8: memref<64x128xf32, #tpu.memory_space<vmem>>) attributes {dimension_semantics = [#tpu.dimension_semantics<parallel>], iteration_bounds = array<i64: 2>, scalar_prefetch = 0 : i64, scratch_operands = 1 : i64, tpu.core_type = #tpu.core_type<tc>, window_params = [{transform_indices = @transform_0, window_bounds = array<i64: 1, 9, 9, 128>}, {transform_indices = @transform_1, window_bounds = array<i64: 1, 9, 9, 128>}, {transform_indices = @transform_2, window_bounds = array<i64: 1, 9, 9, 128>}, {transform_indices = @transform_3, window_bounds = array<i64: 1, 9, 9, 128>}, {pipeline_mode = #tpu.pipeline_mode<synchronous>, transform_indices = @transform_4, window_bounds = array<i64: 9, 128, 128>}, {transform_indices = @transform_5, window_bounds = array<i64: 1, 64, 128>}, {transform_indices = @transform_6, window_bounds = array<i64: 1, 8, 128>}]} {
    %c0 = arith.constant 0 : index
    %c0_0 = arith.constant 0 : index
    %c0_1 = arith.constant 0 : index
    %c0_2 = arith.constant 0 : index
    %0 = vector.load %arg1[%c0, %c0_0, %c0_1, %c0_2] : memref<1x9x9x128xbf16, #tpu.memory_space<vmem>>, vector<1x8x8x128xbf16>
    %1 = vector.shape_cast %0 : vector<1x8x8x128xbf16> to vector<8x8x128xbf16>
    %2 = vector.shape_cast %1 : vector<8x8x128xbf16> to vector<64x128xbf16>
    %c0_3 = arith.constant 0 : index
    %c0_4 = arith.constant 0 : index
    %c0_5 = arith.constant 0 : index
    %3 = vector.load %arg5[%c0_3, %c0_4, %c0_5] : memref<9x128x128xbf16, #tpu.memory_space<vmem>>, vector<1x128x128xbf16>
    %4 = vector.shape_cast %3 : vector<1x128x128xbf16> to vector<128x128xbf16>
    %cst = arith.constant dense<0.000000e+00> : vector<64x128xf32>
    %5 = tpu.matmul %2, %4, %cst {dimension_numbers = #tpu.dot_dimension_numbers<[1], [0], [0], [1], [0, 0, 1, 1], [], []>} : vector<64x128xbf16>, vector<128x128xbf16>, vector<64x128xf32> -> vector<64x128xf32>
    %c0_6 = arith.constant 0 : index
    %c0_7 = arith.constant 0 : index
    %6 = vector.load %arg8[%c0_6, %c0_7] : memref<64x128xf32, #tpu.memory_space<vmem>>, vector<64x128xf32>
    tpu.vector_store %arg8[%c0_6, %c0_7], %5 {strides = array<i32>} : memref<64x128xf32, #tpu.memory_space<vmem>>, vector<64x128xf32>,
    %c0_8 = arith.constant 0 : index
    %c0_9 = arith.constant 0 : index
    %c0_10 = arith.constant 0 : index
    %c0_11 = arith.constant 0 : index
    %7 = vector.load %arg2[%c0_8, %c0_9, %c0_10, %c0_11] : memref<1x9x9x128xbf16, #tpu.memory_space<vmem>>, vector<1x8x8x128xbf16>
    %8 = vector.shape_cast %7 : vector<1x8x8x128xbf16> to vector<8x8x128xbf16>
    %9 = vector.shape_cast %8 : vector<8x8x128xbf16> to vector<64x128xbf16>
    %c1 = arith.constant 1 : index
    %c0_12 = arith.constant 0 : index
    %c0_13 = arith.constant 0 : index
    %10 = vector.load %arg5[%c1, %c0_12, %c0_13] : memref<9x128x128xbf16, #tpu.memory_space<vmem>>, vector<1x128x128xbf16>
    %11 = vector.shape_cast %10 : vector<1x128x128xbf16> to vector<128x128xbf16>
    %cst_14 = arith.constant dense<0.000000e+00> : vector<64x128xf32>
    %12 = tpu.matmul %9, %11, %cst_14 {dimension_numbers = #tpu.dot_dimension_numbers<[1], [0], [0], [1], [0, 0, 1, 1], [], []>} : vector<64x128xbf16>, vector<128x128xbf16>, vector<64x128xf32> -> vector<64x128xf32>
    %c0_15 = arith.constant 0 : index
    %c0_16 = arith.constant 0 : index
    %13 = vector.load %arg8[%c0_15, %c0_16] : memref<64x128xf32, #tpu.memory_space<vmem>>, vector<64x128xf32>
    %14 = arith.addf %13, %12 : vector<64x128xf32>
    %c0_17 = arith.constant 0 : index
    %c0_18 = arith.constant 0 : index
    %15 = vector.load %arg8[%c0_17, %c0_18] : memref<64x128xf32, #tpu.memory_space<vmem>>, vector<64x128xf32>
    tpu.vector_store %arg8[%c0_17, %c0_18], %14 {strides = array<i32>} : memref<64x128xf32, #tpu.memory_space<vmem>>, vector<64x128xf32>,
    %c0_19 = arith.constant 0 : index
    %c0_20 = arith.constant 0 : index
    %c1_21 = arith.constant 1 : index
    %c0_22 = arith.constant 0 : index
    %16 = vector.load %arg1[%c0_19, %c0_20, %c1_21, %c0_22] : memref<1x9x9x128xbf16, #tpu.memory_space<vmem>>, vector<1x8x8x128xbf16>
    %17 = vector.shape_cast %16 : vector<1x8x8x128xbf16> to vector<8x8x128xbf16>
    %18 = vector.shape_cast %17 : vector<8x8x128xbf16> to vector<64x128xbf16>
    %c2 = arith.constant 2 : index
    %c0_23 = arith.constant 0 : index
    %c0_24 = arith.constant 0 : index
    %19 = vector.load %arg5[%c2, %c0_23, %c0_24] : memref<9x128x128xbf16, #tpu.memory_space<vmem>>, vector<1x128x128xbf16>
    %20 = vector.shape_cast %19 : vector<1x128x128xbf16> to vector<128x128xbf16>
    %cst_25 = arith.constant dense<0.000000e+00> : vector<64x128xf32>
    %21 = tpu.matmul %18, %20, %cst_25 {dimension_numbers = #tpu.dot_dimension_numbers<[1], [0], [0], [1], [0, 0, 1, 1], [], []>} : vector<64x128xbf16>, vector<128x128xbf16>, vector<64x128xf32> -> vector<64x128xf32>
    %c0_26 = arith.constant 0 : index
    %c0_27 = arith.constant 0 : index
    %22 = vector.load %arg8[%c0_26, %c0_27] : memref<64x128xf32, #tpu.memory_space<vmem>>, vector<64x128xf32>
    %23 = arith.addf %22, %21 : vector<64x128xf32>
    %c0_28 = arith.constant 0 : index
    %c0_29 = arith.constant 0 : index
    %24 = vector.load %arg8[%c0_28, %c0_29] : memref<64x128xf32, #tpu.memory_space<vmem>>, vector<64x128xf32>
    tpu.vector_store %arg8[%c0_28, %c0_29], %23 {strides = array<i32>} : memref<64x128xf32, #tpu.memory_space<vmem>>, vector<64x128xf32>,
    %c0_30 = arith.constant 0 : index
    %c0_31 = arith.constant 0 : index
    %c0_32 = arith.constant 0 : index
    %c0_33 = arith.constant 0 : index
    %25 = vector.load %arg3[%c0_30, %c0_31, %c0_32, %c0_33] : memref<1x9x9x128xbf16, #tpu.memory_space<vmem>>, vector<1x8x8x128xbf16>
    %26 = vector.shape_cast %25 : vector<1x8x8x128xbf16> to vector<8x8x128xbf16>
    %27 = vector.shape_cast %26 : vector<8x8x128xbf16> to vector<64x128xbf16>
    %c3 = arith.constant 3 : index
    %c0_34 = arith.constant 0 : index
    %c0_35 = arith.constant 0 : index
    %28 = vector.load %arg5[%c3, %c0_34, %c0_35] : memref<9x128x128xbf16, #tpu.memory_space<vmem>>, vector<1x128x128xbf16>
    %29 = vector.shape_cast %28 : vector<1x128x128xbf16> to vector<128x128xbf16>
    %cst_36 = arith.constant dense<0.000000e+00> : vector<64x128xf32>
    %30 = tpu.matmul %27, %29, %cst_36 {dimension_numbers = #tpu.dot_dimension_numbers<[1], [0], [0], [1], [0, 0, 1, 1], [], []>} : vector<64x128xbf16>, vector<128x128xbf16>, vector<64x128xf32> -> vector<64x128xf32>
    %c0_37 = arith.constant 0 : index
    %c0_38 = arith.constant 0 : index
    %31 = vector.load %arg8[%c0_37, %c0_38] : memref<64x128xf32, #tpu.memory_space<vmem>>, vector<64x128xf32>
    %32 = arith.addf %31, %30 : vector<64x128xf32>
    %c0_39 = arith.constant 0 : index
    %c0_40 = arith.constant 0 : index
    %33 = vector.load %arg8[%c0_39, %c0_40] : memref<64x128xf32, #tpu.memory_space<vmem>>, vector<64x128xf32>
    tpu.vector_store %arg8[%c0_39, %c0_40], %32 {strides = array<i32>} : memref<64x128xf32, #tpu.memory_space<vmem>>, vector<64x128xf32>,
    %c0_41 = arith.constant 0 : index
    %c0_42 = arith.constant 0 : index
    %c0_43 = arith.constant 0 : index
    %c0_44 = arith.constant 0 : index
    %34 = vector.load %arg4[%c0_41, %c0_42, %c0_43, %c0_44] : memref<1x9x9x128xbf16, #tpu.memory_space<vmem>>, vector<1x8x8x128xbf16>
    %35 = vector.shape_cast %34 : vector<1x8x8x128xbf16> to vector<8x8x128xbf16>
    %36 = vector.shape_cast %35 : vector<8x8x128xbf16> to vector<64x128xbf16>
    %c4 = arith.constant 4 : index
    %c0_45 = arith.constant 0 : index
    %c0_46 = arith.constant 0 : index
    %37 = vector.load %arg5[%c4, %c0_45, %c0_46] : memref<9x128x128xbf16, #tpu.memory_space<vmem>>, vector<1x128x128xbf16>
    %38 = vector.shape_cast %37 : vector<1x128x128xbf16> to vector<128x128xbf16>
    %cst_47 = arith.constant dense<0.000000e+00> : vector<64x128xf32>
    %39 = tpu.matmul %36, %38, %cst_47 {dimension_numbers = #tpu.dot_dimension_numbers<[1], [0], [0], [1], [0, 0, 1, 1], [], []>} : vector<64x128xbf16>, vector<128x128xbf16>, vector<64x128xf32> -> vector<64x128xf32>
    %c0_48 = arith.constant 0 : index
    %c0_49 = arith.constant 0 : index
    %40 = vector.load %arg8[%c0_48, %c0_49] : memref<64x128xf32, #tpu.memory_space<vmem>>, vector<64x128xf32>
    %41 = arith.addf %40, %39 : vector<64x128xf32>
    %c0_50 = arith.constant 0 : index
    %c0_51 = arith.constant 0 : index
    %42 = vector.load %arg8[%c0_50, %c0_51] : memref<64x128xf32, #tpu.memory_space<vmem>>, vector<64x128xf32>
    tpu.vector_store %arg8[%c0_50, %c0_51], %41 {strides = array<i32>} : memref<64x128xf32, #tpu.memory_space<vmem>>, vector<64x128xf32>,
    %c0_52 = arith.constant 0 : index
    %c0_53 = arith.constant 0 : index
    %c1_54 = arith.constant 1 : index
    %c0_55 = arith.constant 0 : index
    %43 = vector.load %arg3[%c0_52, %c0_53, %c1_54, %c0_55] : memref<1x9x9x128xbf16, #tpu.memory_space<vmem>>, vector<1x8x8x128xbf16>
    %44 = vector.shape_cast %43 : vector<1x8x8x128xbf16> to vector<8x8x128xbf16>
    %45 = vector.shape_cast %44 : vector<8x8x128xbf16> to vector<64x128xbf16>
    %c5 = arith.constant 5 : index
    %c0_56 = arith.constant 0 : index
    %c0_57 = arith.constant 0 : index
    %46 = vector.load %arg5[%c5, %c0_56, %c0_57] : memref<9x128x128xbf16, #tpu.memory_space<vmem>>, vector<1x128x128xbf16>
    %47 = vector.shape_cast %46 : vector<1x128x128xbf16> to vector<128x128xbf16>
    %cst_58 = arith.constant dense<0.000000e+00> : vector<64x128xf32>
    %48 = tpu.matmul %45, %47, %cst_58 {dimension_numbers = #tpu.dot_dimension_numbers<[1], [0], [0], [1], [0, 0, 1, 1], [], []>} : vector<64x128xbf16>, vector<128x128xbf16>, vector<64x128xf32> -> vector<64x128xf32>
    %c0_59 = arith.constant 0 : index
    %c0_60 = arith.constant 0 : index
    %49 = vector.load %arg8[%c0_59, %c0_60] : memref<64x128xf32, #tpu.memory_space<vmem>>, vector<64x128xf32>
    %50 = arith.addf %49, %48 : vector<64x128xf32>
    %c0_61 = arith.constant 0 : index
    %c0_62 = arith.constant 0 : index
    %51 = vector.load %arg8[%c0_61, %c0_62] : memref<64x128xf32, #tpu.memory_space<vmem>>, vector<64x128xf32>
    tpu.vector_store %arg8[%c0_61, %c0_62], %50 {strides = array<i32>} : memref<64x128xf32, #tpu.memory_space<vmem>>, vector<64x128xf32>,
    %c0_63 = arith.constant 0 : index
    %c1_64 = arith.constant 1 : index
    %c0_65 = arith.constant 0 : index
    %c0_66 = arith.constant 0 : index
    %52 = vector.load %arg1[%c0_63, %c1_64, %c0_65, %c0_66] : memref<1x9x9x128xbf16, #tpu.memory_space<vmem>>, vector<1x8x8x128xbf16>
    %53 = vector.shape_cast %52 : vector<1x8x8x128xbf16> to vector<8x8x128xbf16>
    %54 = vector.shape_cast %53 : vector<8x8x128xbf16> to vector<64x128xbf16>
    %c6 = arith.constant 6 : index
    %c0_67 = arith.constant 0 : index
    %c0_68 = arith.constant 0 : index
    %55 = vector.load %arg5[%c6, %c0_67, %c0_68] : memref<9x128x128xbf16, #tpu.memory_space<vmem>>, vector<1x128x128xbf16>
    %56 = vector.shape_cast %55 : vector<1x128x128xbf16> to vector<128x128xbf16>
    %cst_69 = arith.constant dense<0.000000e+00> : vector<64x128xf32>
    %57 = tpu.matmul %54, %56, %cst_69 {dimension_numbers = #tpu.dot_dimension_numbers<[1], [0], [0], [1], [0, 0, 1, 1], [], []>} : vector<64x128xbf16>, vector<128x128xbf16>, vector<64x128xf32> -> vector<64x128xf32>
    %c0_70 = arith.constant 0 : index
    %c0_71 = arith.constant 0 : index
    %58 = vector.load %arg8[%c0_70, %c0_71] : memref<64x128xf32, #tpu.memory_space<vmem>>, vector<64x128xf32>
    %59 = arith.addf %58, %57 : vector<64x128xf32>
    %c0_72 = arith.constant 0 : index
    %c0_73 = arith.constant 0 : index
    %60 = vector.load %arg8[%c0_72, %c0_73] : memref<64x128xf32, #tpu.memory_space<vmem>>, vector<64x128xf32>
    tpu.vector_store %arg8[%c0_72, %c0_73], %59 {strides = array<i32>} : memref<64x128xf32, #tpu.memory_space<vmem>>, vector<64x128xf32>,
    %c0_74 = arith.constant 0 : index
    %c1_75 = arith.constant 1 : index
    %c0_76 = arith.constant 0 : index
    %c0_77 = arith.constant 0 : index
    %61 = vector.load %arg2[%c0_74, %c1_75, %c0_76, %c0_77] : memref<1x9x9x128xbf16, #tpu.memory_space<vmem>>, vector<1x8x8x128xbf16>
    %62 = vector.shape_cast %61 : vector<1x8x8x128xbf16> to vector<8x8x128xbf16>
    %63 = vector.shape_cast %62 : vector<8x8x128xbf16> to vector<64x128xbf16>
    %c7 = arith.constant 7 : index
    %c0_78 = arith.constant 0 : index
    %c0_79 = arith.constant 0 : index
    %64 = vector.load %arg5[%c7, %c0_78, %c0_79] : memref<9x128x128xbf16, #tpu.memory_space<vmem>>, vector<1x128x128xbf16>
    %65 = vector.shape_cast %64 : vector<1x128x128xbf16> to vector<128x128xbf16>
    %cst_80 = arith.constant dense<0.000000e+00> : vector<64x128xf32>
    %66 = tpu.matmul %63, %65, %cst_80 {dimension_numbers = #tpu.dot_dimension_numbers<[1], [0], [0], [1], [0, 0, 1, 1], [], []>} : vector<64x128xbf16>, vector<128x128xbf16>, vector<64x128xf32> -> vector<64x128xf32>
    %c0_81 = arith.constant 0 : index
    %c0_82 = arith.constant 0 : index
    %67 = vector.load %arg8[%c0_81, %c0_82] : memref<64x128xf32, #tpu.memory_space<vmem>>, vector<64x128xf32>
    %68 = arith.addf %67, %66 : vector<64x128xf32>
    %c0_83 = arith.constant 0 : index
    %c0_84 = arith.constant 0 : index
    %69 = vector.load %arg8[%c0_83, %c0_84] : memref<64x128xf32, #tpu.memory_space<vmem>>, vector<64x128xf32>
    tpu.vector_store %arg8[%c0_83, %c0_84], %68 {strides = array<i32>} : memref<64x128xf32, #tpu.memory_space<vmem>>, vector<64x128xf32>,
    %c0_85 = arith.constant 0 : index
    %c1_86 = arith.constant 1 : index
    %c1_87 = arith.constant 1 : index
    %c0_88 = arith.constant 0 : index
    %70 = vector.load %arg1[%c0_85, %c1_86, %c1_87, %c0_88] : memref<1x9x9x128xbf16, #tpu.memory_space<vmem>>, vector<1x8x8x128xbf16>
    %71 = vector.shape_cast %70 : vector<1x8x8x128xbf16> to vector<8x8x128xbf16>
    %72 = vector.shape_cast %71 : vector<8x8x128xbf16> to vector<64x128xbf16>
    %c8 = arith.constant 8 : index
    %c0_89 = arith.constant 0 : index
    %c0_90 = arith.constant 0 : index
    %73 = vector.load %arg5[%c8, %c0_89, %c0_90] : memref<9x128x128xbf16, #tpu.memory_space<vmem>>, vector<1x128x128xbf16>
    %74 = vector.shape_cast %73 : vector<1x128x128xbf16> to vector<128x128xbf16>
    %cst_91 = arith.constant dense<0.000000e+00> : vector<64x128xf32>
    %75 = tpu.matmul %72, %74, %cst_91 {dimension_numbers = #tpu.dot_dimension_numbers<[1], [0], [0], [1], [0, 0, 1, 1], [], []>} : vector<64x128xbf16>, vector<128x128xbf16>, vector<64x128xf32> -> vector<64x128xf32>
    %c0_92 = arith.constant 0 : index
    %c0_93 = arith.constant 0 : index
    %76 = vector.load %arg8[%c0_92, %c0_93] : memref<64x128xf32, #tpu.memory_space<vmem>>, vector<64x128xf32>
    %77 = arith.addf %76, %75 : vector<64x128xf32>
    %c0_94 = arith.constant 0 : index
    %c0_95 = arith.constant 0 : index
    %78 = vector.load %arg8[%c0_94, %c0_95] : memref<64x128xf32, #tpu.memory_space<vmem>>, vector<64x128xf32>
    tpu.vector_store %arg8[%c0_94, %c0_95], %77 {strides = array<i32>} : memref<64x128xf32, #tpu.memory_space<vmem>>, vector<64x128xf32>,
    %c0_96 = arith.constant 0 : index
    %c0_97 = arith.constant 0 : index
    %79 = vector.load %arg8[%c0_96, %c0_97] : memref<64x128xf32, #tpu.memory_space<vmem>>, vector<64x128xf32>
    %cst_98 = arith.constant dense<0.000000e+00> : vector<128xf32>
    %80 = vector.multi_reduction <add>, %79, %cst_98 [0] : vector<64x128xf32> to vector<128xf32>
    %81 = vector.shape_cast %80 : vector<128xf32> to vector<1x128xf32>
    %c0_99 = arith.constant 0 : index
    %c0_100 = arith.constant 0 : index
    %c0_101 = arith.constant 0 : index
    %82 = vector.load %arg7[%c0_99, %c0_100, %c0_101] : memref<1x8x128xf32, #tpu.memory_space<vmem>>, vector<1x1x128xf32>
    %83 = vector.shape_cast %82 : vector<1x1x128xf32> to vector<1x128xf32>
    %84 = vector.shape_cast %81 : vector<1x128xf32> to vector<1x1x128xf32>
    tpu.vector_store %arg7[%c0_99, %c0_100, %c0_101], %84 {strides = array<i32>} : memref<1x8x128xf32, #tpu.memory_space<vmem>>, vector<1x1x128xf32>,
    %85 = arith.mulf %79, %79 : vector<64x128xf32>
    %cst_102 = arith.constant dense<0.000000e+00> : vector<128xf32>
    %86 = vector.multi_reduction <add>, %85, %cst_102 [0] : vector<64x128xf32> to vector<128xf32>
    %87 = vector.shape_cast %86 : vector<128xf32> to vector<1x128xf32>
    %c0_103 = arith.constant 0 : index
    %c1_104 = arith.constant 1 : index
    %c0_105 = arith.constant 0 : index
    %88 = vector.load %arg7[%c0_103, %c1_104, %c0_105] : memref<1x8x128xf32, #tpu.memory_space<vmem>>, vector<1x1x128xf32>
    %89 = vector.shape_cast %88 : vector<1x1x128xf32> to vector<1x128xf32>
    %90 = vector.shape_cast %87 : vector<1x128xf32> to vector<1x1x128xf32>
    tpu.vector_store %arg7[%c0_103, %c1_104, %c0_105], %90 {strides = array<i32>} : memref<1x8x128xf32, #tpu.memory_space<vmem>>, vector<1x1x128xf32>,
    %91 = arith.truncf %79 : vector<64x128xf32> to vector<64x128xbf16>
    %c0_106 = arith.constant 0 : index
    %c0_107 = arith.constant 0 : index
    %c0_108 = arith.constant 0 : index
    %92 = vector.load %arg6[%c0_106, %c0_107, %c0_108] : memref<1x64x128xbf16, #tpu.memory_space<vmem>>, vector<1x64x128xbf16>
    %93 = vector.shape_cast %92 : vector<1x64x128xbf16> to vector<64x128xbf16>
    %94 = vector.shape_cast %91 : vector<64x128xbf16> to vector<1x64x128xbf16>
    tpu.vector_store %arg6[%c0_106, %c0_107, %c0_108], %94 {strides = array<i32>} : memref<1x64x128xbf16, #tpu.memory_space<vmem>>, vector<1x64x128xbf16>,
    return
  }
  func.func @transform_0(%arg0: i32) -> (i32, i32, i32, i32) {
    %c0_i32 = arith.constant 0 : i32
    %c0_i32_0 = arith.constant 0 : i32
    %c0_i32_1 = arith.constant 0 : i32
    %c0_i32_2 = arith.constant 0 : i32
    return %arg0, %c0_i32, %c0_i32_0, %c0_i32_1 : i32, i32, i32, i32
  }
  func.func @transform_1(%arg0: i32) -> (i32, i32, i32, i32) {
    %c0_i32 = arith.constant 0 : i32
    %c0_i32_0 = arith.constant 0 : i32
    %c0_i32_1 = arith.constant 0 : i32
    %c0_i32_2 = arith.constant 0 : i32
    return %arg0, %c0_i32, %c0_i32_0, %c0_i32_1 : i32, i32, i32, i32
  }
  func.func @transform_2(%arg0: i32) -> (i32, i32, i32, i32) {
    %c0_i32 = arith.constant 0 : i32
    %c0_i32_0 = arith.constant 0 : i32
    %c0_i32_1 = arith.constant 0 : i32
    %c0_i32_2 = arith.constant 0 : i32
    return %arg0, %c0_i32, %c0_i32_0, %c0_i32_1 : i32, i32, i32, i32
  }
  func.func @transform_3(%arg0: i32) -> (i32, i32, i32, i32) {
    %c0_i32 = arith.constant 0 : i32
    %c0_i32_0 = arith.constant 0 : i32
    %c0_i32_1 = arith.constant 0 : i32
    %c0_i32_2 = arith.constant 0 : i32
    return %arg0, %c0_i32, %c0_i32_0, %c0_i32_1 : i32, i32, i32, i32
  }
  func.func @transform_4(%arg0: i32) -> (i32, i32, i32) {
    %c0_i32 = arith.constant 0 : i32
    %c0_i32_0 = arith.constant 0 : i32
    %c0_i32_1 = arith.constant 0 : i32
    %c0_i32_2 = arith.constant 0 : i32
    return %c0_i32, %c0_i32_0, %c0_i32_1 : i32, i32, i32
  }
  func.func @transform_5(%arg0: i32) -> (i32, i32, i32) {
    %c0_i32 = arith.constant 0 : i32
    %c0_i32_0 = arith.constant 0 : i32
    %c0_i32_1 = arith.constant 0 : i32
    return %arg0, %c0_i32, %c0_i32_0 : i32, i32, i32
  }
  func.func @transform_6(%arg0: i32) -> (i32, i32, i32) {
    %c0_i32 = arith.constant 0 : i32
    %c0_i32_0 = arith.constant 0 : i32
    %c0_i32_1 = arith.constant 0 : i32
    return %arg0, %c0_i32, %c0_i32_0 : i32, i32, i32
  }
}

module attributes {stable_mosaic.version = 11 : i64} {
  func.func @_bn_relu_kernel(%arg0: i32, %arg1: memref<1x64x128xbf16, #tpu.memory_space<vmem>>, %arg2: memref<1x128xf32, #tpu.memory_space<vmem>>, %arg3: memref<1x128xf32, #tpu.memory_space<vmem>>, %arg4: memref<1x64x128xbf16, #tpu.memory_space<vmem>>) attributes {dimension_semantics = [#tpu.dimension_semantics<parallel>], iteration_bounds = array<i64: 2>, scalar_prefetch = 0 : i64, scratch_operands = 0 : i64, tpu.core_type = #tpu.core_type<tc>, window_params = [{transform_indices = @transform_0, window_bounds = array<i64: 1, 64, 128>}, {pipeline_mode = #tpu.pipeline_mode<synchronous>, transform_indices = @transform_1, window_bounds = array<i64: 1, 128>}, {pipeline_mode = #tpu.pipeline_mode<synchronous>, transform_indices = @transform_2, window_bounds = array<i64: 1, 128>}, {transform_indices = @transform_3, window_bounds = array<i64: 1, 64, 128>}]} {
    %c0 = arith.constant 0 : index
    %c0_0 = arith.constant 0 : index
    %c0_1 = arith.constant 0 : index
    %0 = vector.load %arg1[%c0, %c0_0, %c0_1] : memref<1x64x128xbf16, #tpu.memory_space<vmem>>, vector<1x64x128xbf16>
    %1 = vector.shape_cast %0 : vector<1x64x128xbf16> to vector<64x128xbf16>
    %2 = arith.extf %1 : vector<64x128xbf16> to vector<64x128xf32>
    %c0_2 = arith.constant 0 : index
    %c0_3 = arith.constant 0 : index
    %3 = vector.load %arg2[%c0_2, %c0_3] : memref<1x128xf32, #tpu.memory_space<vmem>>, vector<1x128xf32>
    %4 = vector.broadcast %3 : vector<1x128xf32> to vector<64x128xf32>
    %5 = arith.mulf %2, %4 : vector<64x128xf32>
    %c0_4 = arith.constant 0 : index
    %c0_5 = arith.constant 0 : index
    %6 = vector.load %arg3[%c0_4, %c0_5] : memref<1x128xf32, #tpu.memory_space<vmem>>, vector<1x128xf32>
    %7 = vector.broadcast %6 : vector<1x128xf32> to vector<64x128xf32>
    %8 = arith.addf %5, %7 : vector<64x128xf32>
    %cst = arith.constant 0.000000e+00 : f32
    %9 = vector.broadcast %cst : f32 to vector<64x128xf32>
    %10 = arith.maximumf %8, %9 : vector<64x128xf32>
    %11 = arith.truncf %10 : vector<64x128xf32> to vector<64x128xbf16>
    %c0_6 = arith.constant 0 : index
    %c0_7 = arith.constant 0 : index
    %c0_8 = arith.constant 0 : index
    %12 = vector.load %arg4[%c0_6, %c0_7, %c0_8] : memref<1x64x128xbf16, #tpu.memory_space<vmem>>, vector<1x64x128xbf16>
    %13 = vector.shape_cast %12 : vector<1x64x128xbf16> to vector<64x128xbf16>
    %14 = vector.shape_cast %11 : vector<64x128xbf16> to vector<1x64x128xbf16>
    tpu.vector_store %arg4[%c0_6, %c0_7, %c0_8], %14 {strides = array<i32>} : memref<1x64x128xbf16, #tpu.memory_space<vmem>>, vector<1x64x128xbf16>,
    return
  }
  func.func @transform_0(%arg0: i32) -> (i32, i32, i32) {
    %c0_i32 = arith.constant 0 : i32
    %c0_i32_0 = arith.constant 0 : i32
    %c0_i32_1 = arith.constant 0 : i32
    return %arg0, %c0_i32, %c0_i32_0 : i32, i32, i32
  }
  func.func @transform_1(%arg0: i32) -> (i32, i32) {
    %c0_i32 = arith.constant 0 : i32
    %c0_i32_0 = arith.constant 0 : i32
    %c0_i32_1 = arith.constant 0 : i32
    return %c0_i32, %c0_i32_0 : i32, i32
  }
  func.func @transform_2(%arg0: i32) -> (i32, i32) {
    %c0_i32 = arith.constant 0 : i32
    %c0_i32_0 = arith.constant 0 : i32
    %c0_i32_1 = arith.constant 0 : i32
    return %c0_i32, %c0_i32_0 : i32, i32
  }
  func.func @transform_3(%arg0: i32) -> (i32, i32, i32) {
    %c0_i32 = arith.constant 0 : i32
    %c0_i32_0 = arith.constant 0 : i32
    %c0_i32_1 = arith.constant 0 : i32
    return %arg0, %c0_i32, %c0_i32_0 : i32, i32, i32
  }
}

module attributes {stable_mosaic.version = 11 : i64} {
  func.func @_conv_stats_kernel(%arg0: i32, %arg1: memref<1x10x10x128xbf16, #tpu.memory_space<vmem>>, %arg2: memref<9x128x128xbf16, #tpu.memory_space<vmem>>, %arg3: memref<1x64x128xbf16, #tpu.memory_space<vmem>>, %arg4: memref<1x8x128xf32, #tpu.memory_space<vmem>>, %arg5: memref<64x128xf32, #tpu.memory_space<vmem>>) attributes {dimension_semantics = [#tpu.dimension_semantics<parallel>], iteration_bounds = array<i64: 2>, scalar_prefetch = 0 : i64, scratch_operands = 1 : i64, tpu.core_type = #tpu.core_type<tc>, window_params = [{transform_indices = @transform_0, window_bounds = array<i64: 1, 10, 10, 128>}, {pipeline_mode = #tpu.pipeline_mode<synchronous>, transform_indices = @transform_1, window_bounds = array<i64: 9, 128, 128>}, {transform_indices = @transform_2, window_bounds = array<i64: 1, 64, 128>}, {transform_indices = @transform_3, window_bounds = array<i64: 1, 8, 128>}]} {
    %c0 = arith.constant 0 : index
    %c0_0 = arith.constant 0 : index
    %c0_1 = arith.constant 0 : index
    %c0_2 = arith.constant 0 : index
    %0 = vector.load %arg1[%c0, %c0_0, %c0_1, %c0_2] : memref<1x10x10x128xbf16, #tpu.memory_space<vmem>>, vector<1x8x8x128xbf16>
    %1 = vector.shape_cast %0 : vector<1x8x8x128xbf16> to vector<8x8x128xbf16>
    %2 = vector.shape_cast %1 : vector<8x8x128xbf16> to vector<64x128xbf16>
    %c0_3 = arith.constant 0 : index
    %c0_4 = arith.constant 0 : index
    %c0_5 = arith.constant 0 : index
    %3 = vector.load %arg2[%c0_3, %c0_4, %c0_5] : memref<9x128x128xbf16, #tpu.memory_space<vmem>>, vector<1x128x128xbf16>
    %4 = vector.shape_cast %3 : vector<1x128x128xbf16> to vector<128x128xbf16>
    %cst = arith.constant dense<0.000000e+00> : vector<64x128xf32>
    %5 = tpu.matmul %2, %4, %cst {dimension_numbers = #tpu.dot_dimension_numbers<[1], [0], [0], [1], [0, 0, 1, 1], [], []>} : vector<64x128xbf16>, vector<128x128xbf16>, vector<64x128xf32> -> vector<64x128xf32>
    %c0_6 = arith.constant 0 : index
    %c0_7 = arith.constant 0 : index
    %6 = vector.load %arg5[%c0_6, %c0_7] : memref<64x128xf32, #tpu.memory_space<vmem>>, vector<64x128xf32>
    tpu.vector_store %arg5[%c0_6, %c0_7], %5 {strides = array<i32>} : memref<64x128xf32, #tpu.memory_space<vmem>>, vector<64x128xf32>,
    %c0_8 = arith.constant 0 : index
    %c0_9 = arith.constant 0 : index
    %c1 = arith.constant 1 : index
    %c0_10 = arith.constant 0 : index
    %7 = vector.load %arg1[%c0_8, %c0_9, %c1, %c0_10] : memref<1x10x10x128xbf16, #tpu.memory_space<vmem>>, vector<1x8x8x128xbf16>
    %8 = vector.shape_cast %7 : vector<1x8x8x128xbf16> to vector<8x8x128xbf16>
    %9 = vector.shape_cast %8 : vector<8x8x128xbf16> to vector<64x128xbf16>
    %c1_11 = arith.constant 1 : index
    %c0_12 = arith.constant 0 : index
    %c0_13 = arith.constant 0 : index
    %10 = vector.load %arg2[%c1_11, %c0_12, %c0_13] : memref<9x128x128xbf16, #tpu.memory_space<vmem>>, vector<1x128x128xbf16>
    %11 = vector.shape_cast %10 : vector<1x128x128xbf16> to vector<128x128xbf16>
    %cst_14 = arith.constant dense<0.000000e+00> : vector<64x128xf32>
    %12 = tpu.matmul %9, %11, %cst_14 {dimension_numbers = #tpu.dot_dimension_numbers<[1], [0], [0], [1], [0, 0, 1, 1], [], []>} : vector<64x128xbf16>, vector<128x128xbf16>, vector<64x128xf32> -> vector<64x128xf32>
    %c0_15 = arith.constant 0 : index
    %c0_16 = arith.constant 0 : index
    %13 = vector.load %arg5[%c0_15, %c0_16] : memref<64x128xf32, #tpu.memory_space<vmem>>, vector<64x128xf32>
    %14 = arith.addf %13, %12 : vector<64x128xf32>
    %c0_17 = arith.constant 0 : index
    %c0_18 = arith.constant 0 : index
    %15 = vector.load %arg5[%c0_17, %c0_18] : memref<64x128xf32, #tpu.memory_space<vmem>>, vector<64x128xf32>
    tpu.vector_store %arg5[%c0_17, %c0_18], %14 {strides = array<i32>} : memref<64x128xf32, #tpu.memory_space<vmem>>, vector<64x128xf32>,
    %c0_19 = arith.constant 0 : index
    %c0_20 = arith.constant 0 : index
    %c2 = arith.constant 2 : index
    %c0_21 = arith.constant 0 : index
    %16 = vector.load %arg1[%c0_19, %c0_20, %c2, %c0_21] : memref<1x10x10x128xbf16, #tpu.memory_space<vmem>>, vector<1x8x8x128xbf16>
    %17 = vector.shape_cast %16 : vector<1x8x8x128xbf16> to vector<8x8x128xbf16>
    %18 = vector.shape_cast %17 : vector<8x8x128xbf16> to vector<64x128xbf16>
    %c2_22 = arith.constant 2 : index
    %c0_23 = arith.constant 0 : index
    %c0_24 = arith.constant 0 : index
    %19 = vector.load %arg2[%c2_22, %c0_23, %c0_24] : memref<9x128x128xbf16, #tpu.memory_space<vmem>>, vector<1x128x128xbf16>
    %20 = vector.shape_cast %19 : vector<1x128x128xbf16> to vector<128x128xbf16>
    %cst_25 = arith.constant dense<0.000000e+00> : vector<64x128xf32>
    %21 = tpu.matmul %18, %20, %cst_25 {dimension_numbers = #tpu.dot_dimension_numbers<[1], [0], [0], [1], [0, 0, 1, 1], [], []>} : vector<64x128xbf16>, vector<128x128xbf16>, vector<64x128xf32> -> vector<64x128xf32>
    %c0_26 = arith.constant 0 : index
    %c0_27 = arith.constant 0 : index
    %22 = vector.load %arg5[%c0_26, %c0_27] : memref<64x128xf32, #tpu.memory_space<vmem>>, vector<64x128xf32>
    %23 = arith.addf %22, %21 : vector<64x128xf32>
    %c0_28 = arith.constant 0 : index
    %c0_29 = arith.constant 0 : index
    %24 = vector.load %arg5[%c0_28, %c0_29] : memref<64x128xf32, #tpu.memory_space<vmem>>, vector<64x128xf32>
    tpu.vector_store %arg5[%c0_28, %c0_29], %23 {strides = array<i32>} : memref<64x128xf32, #tpu.memory_space<vmem>>, vector<64x128xf32>,
    %c0_30 = arith.constant 0 : index
    %c1_31 = arith.constant 1 : index
    %c0_32 = arith.constant 0 : index
    %c0_33 = arith.constant 0 : index
    %25 = vector.load %arg1[%c0_30, %c1_31, %c0_32, %c0_33] : memref<1x10x10x128xbf16, #tpu.memory_space<vmem>>, vector<1x8x8x128xbf16>
    %26 = vector.shape_cast %25 : vector<1x8x8x128xbf16> to vector<8x8x128xbf16>
    %27 = vector.shape_cast %26 : vector<8x8x128xbf16> to vector<64x128xbf16>
    %c3 = arith.constant 3 : index
    %c0_34 = arith.constant 0 : index
    %c0_35 = arith.constant 0 : index
    %28 = vector.load %arg2[%c3, %c0_34, %c0_35] : memref<9x128x128xbf16, #tpu.memory_space<vmem>>, vector<1x128x128xbf16>
    %29 = vector.shape_cast %28 : vector<1x128x128xbf16> to vector<128x128xbf16>
    %cst_36 = arith.constant dense<0.000000e+00> : vector<64x128xf32>
    %30 = tpu.matmul %27, %29, %cst_36 {dimension_numbers = #tpu.dot_dimension_numbers<[1], [0], [0], [1], [0, 0, 1, 1], [], []>} : vector<64x128xbf16>, vector<128x128xbf16>, vector<64x128xf32> -> vector<64x128xf32>
    %c0_37 = arith.constant 0 : index
    %c0_38 = arith.constant 0 : index
    %31 = vector.load %arg5[%c0_37, %c0_38] : memref<64x128xf32, #tpu.memory_space<vmem>>, vector<64x128xf32>
    %32 = arith.addf %31, %30 : vector<64x128xf32>
    %c0_39 = arith.constant 0 : index
    %c0_40 = arith.constant 0 : index
    %33 = vector.load %arg5[%c0_39, %c0_40] : memref<64x128xf32, #tpu.memory_space<vmem>>, vector<64x128xf32>
    tpu.vector_store %arg5[%c0_39, %c0_40], %32 {strides = array<i32>} : memref<64x128xf32, #tpu.memory_space<vmem>>, vector<64x128xf32>,
    %c0_41 = arith.constant 0 : index
    %c1_42 = arith.constant 1 : index
    %c1_43 = arith.constant 1 : index
    %c0_44 = arith.constant 0 : index
    %34 = vector.load %arg1[%c0_41, %c1_42, %c1_43, %c0_44] : memref<1x10x10x128xbf16, #tpu.memory_space<vmem>>, vector<1x8x8x128xbf16>
    %35 = vector.shape_cast %34 : vector<1x8x8x128xbf16> to vector<8x8x128xbf16>
    %36 = vector.shape_cast %35 : vector<8x8x128xbf16> to vector<64x128xbf16>
    %c4 = arith.constant 4 : index
    %c0_45 = arith.constant 0 : index
    %c0_46 = arith.constant 0 : index
    %37 = vector.load %arg2[%c4, %c0_45, %c0_46] : memref<9x128x128xbf16, #tpu.memory_space<vmem>>, vector<1x128x128xbf16>
    %38 = vector.shape_cast %37 : vector<1x128x128xbf16> to vector<128x128xbf16>
    %cst_47 = arith.constant dense<0.000000e+00> : vector<64x128xf32>
    %39 = tpu.matmul %36, %38, %cst_47 {dimension_numbers = #tpu.dot_dimension_numbers<[1], [0], [0], [1], [0, 0, 1, 1], [], []>} : vector<64x128xbf16>, vector<128x128xbf16>, vector<64x128xf32> -> vector<64x128xf32>
    %c0_48 = arith.constant 0 : index
    %c0_49 = arith.constant 0 : index
    %40 = vector.load %arg5[%c0_48, %c0_49] : memref<64x128xf32, #tpu.memory_space<vmem>>, vector<64x128xf32>
    %41 = arith.addf %40, %39 : vector<64x128xf32>
    %c0_50 = arith.constant 0 : index
    %c0_51 = arith.constant 0 : index
    %42 = vector.load %arg5[%c0_50, %c0_51] : memref<64x128xf32, #tpu.memory_space<vmem>>, vector<64x128xf32>
    tpu.vector_store %arg5[%c0_50, %c0_51], %41 {strides = array<i32>} : memref<64x128xf32, #tpu.memory_space<vmem>>, vector<64x128xf32>,
    %c0_52 = arith.constant 0 : index
    %c1_53 = arith.constant 1 : index
    %c2_54 = arith.constant 2 : index
    %c0_55 = arith.constant 0 : index
    %43 = vector.load %arg1[%c0_52, %c1_53, %c2_54, %c0_55] : memref<1x10x10x128xbf16, #tpu.memory_space<vmem>>, vector<1x8x8x128xbf16>
    %44 = vector.shape_cast %43 : vector<1x8x8x128xbf16> to vector<8x8x128xbf16>
    %45 = vector.shape_cast %44 : vector<8x8x128xbf16> to vector<64x128xbf16>
    %c5 = arith.constant 5 : index
    %c0_56 = arith.constant 0 : index
    %c0_57 = arith.constant 0 : index
    %46 = vector.load %arg2[%c5, %c0_56, %c0_57] : memref<9x128x128xbf16, #tpu.memory_space<vmem>>, vector<1x128x128xbf16>
    %47 = vector.shape_cast %46 : vector<1x128x128xbf16> to vector<128x128xbf16>
    %cst_58 = arith.constant dense<0.000000e+00> : vector<64x128xf32>
    %48 = tpu.matmul %45, %47, %cst_58 {dimension_numbers = #tpu.dot_dimension_numbers<[1], [0], [0], [1], [0, 0, 1, 1], [], []>} : vector<64x128xbf16>, vector<128x128xbf16>, vector<64x128xf32> -> vector<64x128xf32>
    %c0_59 = arith.constant 0 : index
    %c0_60 = arith.constant 0 : index
    %49 = vector.load %arg5[%c0_59, %c0_60] : memref<64x128xf32, #tpu.memory_space<vmem>>, vector<64x128xf32>
    %50 = arith.addf %49, %48 : vector<64x128xf32>
    %c0_61 = arith.constant 0 : index
    %c0_62 = arith.constant 0 : index
    %51 = vector.load %arg5[%c0_61, %c0_62] : memref<64x128xf32, #tpu.memory_space<vmem>>, vector<64x128xf32>
    tpu.vector_store %arg5[%c0_61, %c0_62], %50 {strides = array<i32>} : memref<64x128xf32, #tpu.memory_space<vmem>>, vector<64x128xf32>,
    %c0_63 = arith.constant 0 : index
    %c2_64 = arith.constant 2 : index
    %c0_65 = arith.constant 0 : index
    %c0_66 = arith.constant 0 : index
    %52 = vector.load %arg1[%c0_63, %c2_64, %c0_65, %c0_66] : memref<1x10x10x128xbf16, #tpu.memory_space<vmem>>, vector<1x8x8x128xbf16>
    %53 = vector.shape_cast %52 : vector<1x8x8x128xbf16> to vector<8x8x128xbf16>
    %54 = vector.shape_cast %53 : vector<8x8x128xbf16> to vector<64x128xbf16>
    %c6 = arith.constant 6 : index
    %c0_67 = arith.constant 0 : index
    %c0_68 = arith.constant 0 : index
    %55 = vector.load %arg2[%c6, %c0_67, %c0_68] : memref<9x128x128xbf16, #tpu.memory_space<vmem>>, vector<1x128x128xbf16>
    %56 = vector.shape_cast %55 : vector<1x128x128xbf16> to vector<128x128xbf16>
    %cst_69 = arith.constant dense<0.000000e+00> : vector<64x128xf32>
    %57 = tpu.matmul %54, %56, %cst_69 {dimension_numbers = #tpu.dot_dimension_numbers<[1], [0], [0], [1], [0, 0, 1, 1], [], []>} : vector<64x128xbf16>, vector<128x128xbf16>, vector<64x128xf32> -> vector<64x128xf32>
    %c0_70 = arith.constant 0 : index
    %c0_71 = arith.constant 0 : index
    %58 = vector.load %arg5[%c0_70, %c0_71] : memref<64x128xf32, #tpu.memory_space<vmem>>, vector<64x128xf32>
    %59 = arith.addf %58, %57 : vector<64x128xf32>
    %c0_72 = arith.constant 0 : index
    %c0_73 = arith.constant 0 : index
    %60 = vector.load %arg5[%c0_72, %c0_73] : memref<64x128xf32, #tpu.memory_space<vmem>>, vector<64x128xf32>
    tpu.vector_store %arg5[%c0_72, %c0_73], %59 {strides = array<i32>} : memref<64x128xf32, #tpu.memory_space<vmem>>, vector<64x128xf32>,
    %c0_74 = arith.constant 0 : index
    %c2_75 = arith.constant 2 : index
    %c1_76 = arith.constant 1 : index
    %c0_77 = arith.constant 0 : index
    %61 = vector.load %arg1[%c0_74, %c2_75, %c1_76, %c0_77] : memref<1x10x10x128xbf16, #tpu.memory_space<vmem>>, vector<1x8x8x128xbf16>
    %62 = vector.shape_cast %61 : vector<1x8x8x128xbf16> to vector<8x8x128xbf16>
    %63 = vector.shape_cast %62 : vector<8x8x128xbf16> to vector<64x128xbf16>
    %c7 = arith.constant 7 : index
    %c0_78 = arith.constant 0 : index
    %c0_79 = arith.constant 0 : index
    %64 = vector.load %arg2[%c7, %c0_78, %c0_79] : memref<9x128x128xbf16, #tpu.memory_space<vmem>>, vector<1x128x128xbf16>
    %65 = vector.shape_cast %64 : vector<1x128x128xbf16> to vector<128x128xbf16>
    %cst_80 = arith.constant dense<0.000000e+00> : vector<64x128xf32>
    %66 = tpu.matmul %63, %65, %cst_80 {dimension_numbers = #tpu.dot_dimension_numbers<[1], [0], [0], [1], [0, 0, 1, 1], [], []>} : vector<64x128xbf16>, vector<128x128xbf16>, vector<64x128xf32> -> vector<64x128xf32>
    %c0_81 = arith.constant 0 : index
    %c0_82 = arith.constant 0 : index
    %67 = vector.load %arg5[%c0_81, %c0_82] : memref<64x128xf32, #tpu.memory_space<vmem>>, vector<64x128xf32>
    %68 = arith.addf %67, %66 : vector<64x128xf32>
    %c0_83 = arith.constant 0 : index
    %c0_84 = arith.constant 0 : index
    %69 = vector.load %arg5[%c0_83, %c0_84] : memref<64x128xf32, #tpu.memory_space<vmem>>, vector<64x128xf32>
    tpu.vector_store %arg5[%c0_83, %c0_84], %68 {strides = array<i32>} : memref<64x128xf32, #tpu.memory_space<vmem>>, vector<64x128xf32>,
    %c0_85 = arith.constant 0 : index
    %c2_86 = arith.constant 2 : index
    %c2_87 = arith.constant 2 : index
    %c0_88 = arith.constant 0 : index
    %70 = vector.load %arg1[%c0_85, %c2_86, %c2_87, %c0_88] : memref<1x10x10x128xbf16, #tpu.memory_space<vmem>>, vector<1x8x8x128xbf16>
    %71 = vector.shape_cast %70 : vector<1x8x8x128xbf16> to vector<8x8x128xbf16>
    %72 = vector.shape_cast %71 : vector<8x8x128xbf16> to vector<64x128xbf16>
    %c8 = arith.constant 8 : index
    %c0_89 = arith.constant 0 : index
    %c0_90 = arith.constant 0 : index
    %73 = vector.load %arg2[%c8, %c0_89, %c0_90] : memref<9x128x128xbf16, #tpu.memory_space<vmem>>, vector<1x128x128xbf16>
    %74 = vector.shape_cast %73 : vector<1x128x128xbf16> to vector<128x128xbf16>
    %cst_91 = arith.constant dense<0.000000e+00> : vector<64x128xf32>
    %75 = tpu.matmul %72, %74, %cst_91 {dimension_numbers = #tpu.dot_dimension_numbers<[1], [0], [0], [1], [0, 0, 1, 1], [], []>} : vector<64x128xbf16>, vector<128x128xbf16>, vector<64x128xf32> -> vector<64x128xf32>
    %c0_92 = arith.constant 0 : index
    %c0_93 = arith.constant 0 : index
    %76 = vector.load %arg5[%c0_92, %c0_93] : memref<64x128xf32, #tpu.memory_space<vmem>>, vector<64x128xf32>
    %77 = arith.addf %76, %75 : vector<64x128xf32>
    %c0_94 = arith.constant 0 : index
    %c0_95 = arith.constant 0 : index
    %78 = vector.load %arg5[%c0_94, %c0_95] : memref<64x128xf32, #tpu.memory_space<vmem>>, vector<64x128xf32>
    tpu.vector_store %arg5[%c0_94, %c0_95], %77 {strides = array<i32>} : memref<64x128xf32, #tpu.memory_space<vmem>>, vector<64x128xf32>,
    %c0_96 = arith.constant 0 : index
    %c0_97 = arith.constant 0 : index
    %79 = vector.load %arg5[%c0_96, %c0_97] : memref<64x128xf32, #tpu.memory_space<vmem>>, vector<64x128xf32>
    %cst_98 = arith.constant dense<0.000000e+00> : vector<128xf32>
    %80 = vector.multi_reduction <add>, %79, %cst_98 [0] : vector<64x128xf32> to vector<128xf32>
    %81 = vector.shape_cast %80 : vector<128xf32> to vector<1x128xf32>
    %c0_99 = arith.constant 0 : index
    %c0_100 = arith.constant 0 : index
    %c0_101 = arith.constant 0 : index
    %82 = vector.load %arg4[%c0_99, %c0_100, %c0_101] : memref<1x8x128xf32, #tpu.memory_space<vmem>>, vector<1x1x128xf32>
    %83 = vector.shape_cast %82 : vector<1x1x128xf32> to vector<1x128xf32>
    %84 = vector.shape_cast %81 : vector<1x128xf32> to vector<1x1x128xf32>
    tpu.vector_store %arg4[%c0_99, %c0_100, %c0_101], %84 {strides = array<i32>} : memref<1x8x128xf32, #tpu.memory_space<vmem>>, vector<1x1x128xf32>,
    %85 = arith.mulf %79, %79 : vector<64x128xf32>
    %cst_102 = arith.constant dense<0.000000e+00> : vector<128xf32>
    %86 = vector.multi_reduction <add>, %85, %cst_102 [0] : vector<64x128xf32> to vector<128xf32>
    %87 = vector.shape_cast %86 : vector<128xf32> to vector<1x128xf32>
    %c0_103 = arith.constant 0 : index
    %c1_104 = arith.constant 1 : index
    %c0_105 = arith.constant 0 : index
    %88 = vector.load %arg4[%c0_103, %c1_104, %c0_105] : memref<1x8x128xf32, #tpu.memory_space<vmem>>, vector<1x1x128xf32>
    %89 = vector.shape_cast %88 : vector<1x1x128xf32> to vector<1x128xf32>
    %90 = vector.shape_cast %87 : vector<1x128xf32> to vector<1x1x128xf32>
    tpu.vector_store %arg4[%c0_103, %c1_104, %c0_105], %90 {strides = array<i32>} : memref<1x8x128xf32, #tpu.memory_space<vmem>>, vector<1x1x128xf32>,
    %91 = arith.truncf %79 : vector<64x128xf32> to vector<64x128xbf16>
    %c0_106 = arith.constant 0 : index
    %c0_107 = arith.constant 0 : index
    %c0_108 = arith.constant 0 : index
    %92 = vector.load %arg3[%c0_106, %c0_107, %c0_108] : memref<1x64x128xbf16, #tpu.memory_space<vmem>>, vector<1x64x128xbf16>
    %93 = vector.shape_cast %92 : vector<1x64x128xbf16> to vector<64x128xbf16>
    %94 = vector.shape_cast %91 : vector<64x128xbf16> to vector<1x64x128xbf16>
    tpu.vector_store %arg3[%c0_106, %c0_107, %c0_108], %94 {strides = array<i32>} : memref<1x64x128xbf16, #tpu.memory_space<vmem>>, vector<1x64x128xbf16>,
    return
  }
  func.func @transform_0(%arg0: i32) -> (i32, i32, i32, i32) {
    %c0_i32 = arith.constant 0 : i32
    %c0_i32_0 = arith.constant 0 : i32
    %c0_i32_1 = arith.constant 0 : i32
    %c0_i32_2 = arith.constant 0 : i32
    return %arg0, %c0_i32, %c0_i32_0, %c0_i32_1 : i32, i32, i32, i32
  }
  func.func @transform_1(%arg0: i32) -> (i32, i32, i32) {
    %c0_i32 = arith.constant 0 : i32
    %c0_i32_0 = arith.constant 0 : i32
    %c0_i32_1 = arith.constant 0 : i32
    %c0_i32_2 = arith.constant 0 : i32
    return %c0_i32, %c0_i32_0, %c0_i32_1 : i32, i32, i32
  }
  func.func @transform_2(%arg0: i32) -> (i32, i32, i32) {
    %c0_i32 = arith.constant 0 : i32
    %c0_i32_0 = arith.constant 0 : i32
    %c0_i32_1 = arith.constant 0 : i32
    return %arg0, %c0_i32, %c0_i32_0 : i32, i32, i32
  }
  func.func @transform_3(%arg0: i32) -> (i32, i32, i32) {
    %c0_i32 = arith.constant 0 : i32
    %c0_i32_0 = arith.constant 0 : i32
    %c0_i32_1 = arith.constant 0 : i32
    return %arg0, %c0_i32, %c0_i32_0 : i32, i32, i32
  }
}

module attributes {stable_mosaic.version = 11 : i64} {
  func.func @_bn_dsadd_relu_kernel(%arg0: i32, %arg1: memref<1x64x128xbf16, #tpu.memory_space<vmem>>, %arg2: memref<1x128xf32, #tpu.memory_space<vmem>>, %arg3: memref<1x128xf32, #tpu.memory_space<vmem>>, %arg4: memref<1x64x128xbf16, #tpu.memory_space<vmem>>, %arg5: memref<128x128xbf16, #tpu.memory_space<vmem>>, %arg6: memref<1x64x128xf32, #tpu.memory_space<vmem>>) attributes {dimension_semantics = [#tpu.dimension_semantics<parallel>], iteration_bounds = array<i64: 2>, scalar_prefetch = 0 : i64, scratch_operands = 0 : i64, tpu.core_type = #tpu.core_type<tc>, window_params = [{transform_indices = @transform_0, window_bounds = array<i64: 1, 64, 128>}, {pipeline_mode = #tpu.pipeline_mode<synchronous>, transform_indices = @transform_1, window_bounds = array<i64: 1, 128>}, {pipeline_mode = #tpu.pipeline_mode<synchronous>, transform_indices = @transform_2, window_bounds = array<i64: 1, 128>}, {transform_indices = @transform_3, window_bounds = array<i64: 1, 64, 128>}, {pipeline_mode = #tpu.pipeline_mode<synchronous>, transform_indices = @transform_4, window_bounds = array<i64: 128, 128>}, {transform_indices = @transform_5, window_bounds = array<i64: 1, 64, 128>}]} {
    %c0 = arith.constant 0 : index
    %c0_0 = arith.constant 0 : index
    %c0_1 = arith.constant 0 : index
    %0 = vector.load %arg4[%c0, %c0_0, %c0_1] : memref<1x64x128xbf16, #tpu.memory_space<vmem>>, vector<1x64x128xbf16>
    %1 = vector.shape_cast %0 : vector<1x64x128xbf16> to vector<64x128xbf16>
    %c0_2 = arith.constant 0 : index
    %c0_3 = arith.constant 0 : index
    %2 = vector.load %arg5[%c0_2, %c0_3] : memref<128x128xbf16, #tpu.memory_space<vmem>>, vector<128x128xbf16>
    %cst = arith.constant dense<0.000000e+00> : vector<64x128xf32>
    %3 = tpu.matmul %1, %2, %cst {dimension_numbers = #tpu.dot_dimension_numbers<[1], [0], [0], [1], [0, 0, 1, 1], [], []>} : vector<64x128xbf16>, vector<128x128xbf16>, vector<64x128xf32> -> vector<64x128xf32>
    %c0_4 = arith.constant 0 : index
    %c0_5 = arith.constant 0 : index
    %c0_6 = arith.constant 0 : index
    %4 = vector.load %arg1[%c0_4, %c0_5, %c0_6] : memref<1x64x128xbf16, #tpu.memory_space<vmem>>, vector<1x64x128xbf16>
    %5 = vector.shape_cast %4 : vector<1x64x128xbf16> to vector<64x128xbf16>
    %6 = arith.extf %5 : vector<64x128xbf16> to vector<64x128xf32>
    %c0_7 = arith.constant 0 : index
    %c0_8 = arith.constant 0 : index
    %7 = vector.load %arg2[%c0_7, %c0_8] : memref<1x128xf32, #tpu.memory_space<vmem>>, vector<1x128xf32>
    %8 = vector.broadcast %7 : vector<1x128xf32> to vector<64x128xf32>
    %9 = arith.mulf %6, %8 : vector<64x128xf32>
    %c0_9 = arith.constant 0 : index
    %c0_10 = arith.constant 0 : index
    %10 = vector.load %arg3[%c0_9, %c0_10] : memref<1x128xf32, #tpu.memory_space<vmem>>, vector<1x128xf32>
    %11 = vector.broadcast %10 : vector<1x128xf32> to vector<64x128xf32>
    %12 = arith.addf %9, %11 : vector<64x128xf32>
    %13 = arith.addf %12, %3 : vector<64x128xf32>
    %cst_11 = arith.constant 0.000000e+00 : f32
    %14 = vector.broadcast %cst_11 : f32 to vector<64x128xf32>
    %15 = arith.maximumf %13, %14 : vector<64x128xf32>
    %c0_12 = arith.constant 0 : index
    %c0_13 = arith.constant 0 : index
    %c0_14 = arith.constant 0 : index
    %16 = vector.load %arg6[%c0_12, %c0_13, %c0_14] : memref<1x64x128xf32, #tpu.memory_space<vmem>>, vector<1x64x128xf32>
    %17 = vector.shape_cast %16 : vector<1x64x128xf32> to vector<64x128xf32>
    %18 = vector.shape_cast %15 : vector<64x128xf32> to vector<1x64x128xf32>
    tpu.vector_store %arg6[%c0_12, %c0_13, %c0_14], %18 {strides = array<i32>} : memref<1x64x128xf32, #tpu.memory_space<vmem>>, vector<1x64x128xf32>,
    return
  }
  func.func @transform_0(%arg0: i32) -> (i32, i32, i32) {
    %c0_i32 = arith.constant 0 : i32
    %c0_i32_0 = arith.constant 0 : i32
    %c0_i32_1 = arith.constant 0 : i32
    return %arg0, %c0_i32, %c0_i32_0 : i32, i32, i32
  }
  func.func @transform_1(%arg0: i32) -> (i32, i32) {
    %c0_i32 = arith.constant 0 : i32
    %c0_i32_0 = arith.constant 0 : i32
    %c0_i32_1 = arith.constant 0 : i32
    return %c0_i32, %c0_i32_0 : i32, i32
  }
  func.func @transform_2(%arg0: i32) -> (i32, i32) {
    %c0_i32 = arith.constant 0 : i32
    %c0_i32_0 = arith.constant 0 : i32
    %c0_i32_1 = arith.constant 0 : i32
    return %c0_i32, %c0_i32_0 : i32, i32
  }
  func.func @transform_3(%arg0: i32) -> (i32, i32, i32) {
    %c0_i32 = arith.constant 0 : i32
    %c0_i32_0 = arith.constant 0 : i32
    %c0_i32_1 = arith.constant 0 : i32
    return %arg0, %c0_i32, %c0_i32_0 : i32, i32, i32
  }
  func.func @transform_4(%arg0: i32) -> (i32, i32) {
    %c0_i32 = arith.constant 0 : i32
    %c0_i32_0 = arith.constant 0 : i32
    %c0_i32_1 = arith.constant 0 : i32
    return %c0_i32, %c0_i32_0 : i32, i32
  }
  func.func @transform_5(%arg0: i32) -> (i32, i32, i32) {
    %c0_i32 = arith.constant 0 : i32
    %c0_i32_0 = arith.constant 0 : i32
    %c0_i32_1 = arith.constant 0 : i32
    return %arg0, %c0_i32, %c0_i32_0 : i32, i32, i32
  }
}

</mosaic_0001>

<bundles_post_ra>
// kernel: basic_block_forward.5
= control target key start
LH: loop header
LB: loop body
LE: loop exit
PB: predicated region body
PF: predicated region fallthrough
CT: control target
= control target key end

     0   :  { %s429_s12 = smov 0   ;;  %s459_s0 = inlined_call_operand.vmem [shape: bf16[2,64,128], index: 0, kind: input, shape index: {}]   ;;  %s460_s1 = inlined_call_operand.vmem [shape: f32[1,128], index: 1, kind: input, shape index: {}]   ;;  %s461_s2 = inlined_call_operand.vmem [shape: f32[1,128], index: 2, kind: input, shape index: {}]   ;;  %s462_s3 = inlined_call_operand.vmem [shape: bf16[2,64,128], index: 3, kind: output, shape index: {}]  }
   0x1 LB: > { %s320_s13 = sadd.s32 4294967295, %s407_s12   ;;  %p324_p0 = scmp.ge.s32.totalorder %s407_s12, 1  ;;  %s407_s12 = sphi %s429_s12, %s13_s12  }
   0x2   : > { %p137_p1 = scmp.lt.s32.totalorder %s407_s12, 3 }
   0x4   : > { %p138_p2 = pnand %p324_p0, %p137_p1 }
   0x5   : > { %p161_p3 = scmp.lt.s32.totalorder (!%p138_p2), %s320_s13, 1  ;;  %v329_v0 = vld [vmem:[%s460_s1] ss:$0 sm:$0xff] (!%p138_p2) }
   0x6   : > { %141 = sbr.rel (%p138_p2) target bundleno = 29 (0x1d), region = 32  ;;  %v330_v9 = vld [vmem:[%s461_s2] ss:$0 sm:$0xff] (!%p138_p2) }
   0xd   : > { %s464_s13 = smov (!%p161_p3, %s320_s13), 1 }
   0xe   : > { %s341_s14 = sshll.u32 %s464_s13, 5 }
   0xf   : > { %s165_s17 = scalar_lea.vmem %s459_s0, %s341_s14  ;;  %s170_s24 = scalar_lea.vmem %s462_s3, %s341_s14 }
  0x10   : > { %v352_v1 = vld [vmem:[%s165_s17] sm:$0xff]   ;;  %v387_v2 = vld [vmem:[%s165_s17 + $0x8] sm:$0xff]   ;;  %v388_v3 = vld [vmem:[%s165_s17 + $0x10] sm:$0xff]  }
  0x11   : > { %v353_v4 = vunpack.c.l.bf16 %v352_v1  ;;  %v354_v5 = vunpack.c.h.bf16 %v352_v1  ;;  %v357_v6 = vunpack.c.l.bf16 %v387_v2  ;;  %v358_v7 = vunpack.c.h.bf16 %v387_v2  ;;  %v389_v8 = vld [vmem:[%s165_s17 + $0x18] sm:$0xff]  }
  0x12   : > { %v361_v10 = vunpack.c.l.bf16 %v388_v3  ;;  %v362_v11 = vunpack.c.h.bf16 %v388_v3  ;;  %v365_v12 = vunpack.c.l.bf16 %v389_v8  ;;  %v366_v13 = vunpack.c.h.bf16 %v389_v8 }
  0x13   : > { %v194_v14 = vmul.f32 %v353_v4, %v329_v0  ;;  %v195_v15 = vmul.f32 %v354_v5, %v329_v0  ;;  %v196_v16 = vmul.f32 %v357_v6, %v329_v0  ;;  %v197_v17 = vmul.f32 %v358_v7, %v329_v0 }
  0x14   : > { %v198_v18 = vmul.f32 %v361_v10, %v329_v0  ;;  %v199_v19 = vmul.f32 %v362_v11, %v329_v0  ;;  %v200_v20 = vmul.f32 %v365_v12, %v329_v0  ;;  %v201_v21 = vmul.f32 %v366_v13, %v329_v0 }
  0x15   : > { %v209_v22 = vadd.f32 %v330_v9, %v194_v14  ;;  %v210_v23 = vadd.f32 %v330_v9, %v195_v15  ;;  %v211_v24 = vadd.f32 %v330_v9, %v196_v16  ;;  %v212_v25 = vadd.f32 %v330_v9, %v197_v17 }
  0x16   : > { %v213_v26 = vadd.f32 %v330_v9, %v198_v18  ;;  %v214_v27 = vadd.f32 %v330_v9, %v199_v19  ;;  %v215_v28 = vadd.f32 %v330_v9, %v200_v20  ;;  %v216_v29 = vadd.f32 %v330_v9, %v201_v21 }
  0x17   : > { %v217_v30 = vmax.f32 %v209_v22, 0.0  ;;  %v218_v31 = vmax.f32 %v210_v23, 0.0  ;;  %v219_v32 = vmax.f32 %v211_v24, 0.0  ;;  %v220_v33 = vmax.f32 %v212_v25, 0.0 }
  0x18   : > { %v221_v34 = vmax.f32 %v213_v26, 0.0  ;;  %v222_v35 = vmax.f32 %v214_v27, 0.0  ;;  %v223_v36 = vmax.f32 %v215_v28, 0.0  ;;  %v224_v37 = vmax.f32 %v216_v29, 0.0 }
  0x19   : > { %v370_v38 = vpack.c.bf16 %v218_v31, %v217_v30  ;;  %v375_v39 = vpack.c.bf16 %v220_v33, %v219_v32 }
  0x1a   : > { %v380_v40 = vpack.c.bf16 %v222_v35, %v221_v34  ;;  %v385_v41 = vpack.c.bf16 %v224_v37, %v223_v36 }
  0x1b   : > { %371 = vst [vmem:[%s170_s24] sm:$0xff] %v370_v38   ;;  %390 = vst [vmem:[%s170_s24 + $0x8] sm:$0xff] %v375_v39  }
  0x1c   : > { %391 = vst [vmem:[%s170_s24 + $0x10] sm:$0xff] %v380_v40   ;;  %392 = vst [vmem:[%s170_s24 + $0x18] sm:$0xff] %v385_v41  }
  0x1d PF: > { %s13_s12 = sadd.s32 1, %s407_s12  }
  0x1e   : > { %p10_p4 = scmp.ge.s32.totalorder %s13_s12, 4  }
  0x20   :  { %12 = sbr.rel (!%p10_p4) target bundleno = 1 (0x1), region = 62 }

// kernel: basic_block_forward.7
= control target key start
LH: loop header
LB: loop body
LE: loop exit
PB: predicated region body
PF: predicated region fallthrough
CT: control target
= control target key end

     0   :  { %s703_s18 = smov 0   ;;  %s767_s0 = inlined_call_operand.vmem [shape: bf16[2,64,128], index: 0, kind: input, shape index: {}]   ;;  %s768_s1 = inlined_call_operand.vmem [shape: f32[1,128], index: 1, kind: input, shape index: {}]   ;;  %s769_s2 = inlined_call_operand.vmem [shape: f32[1,128], index: 2, kind: input, shape index: {}]   ;;  %s770_s3 = inlined_call_operand.vmem [shape: bf16[2,64,128], index: 3, kind: input, shape index: {}]   ;;  %s771_s4 = inlined_call_operand.vmem [shape: bf16[128,128], index: 4, kind: input, shape index: {}]   ;;  %s772_s5 = inlined_call_operand.vmem [shape: f32[2,64,128], index: 5, kind: output, shape index: {}]  }
   0x1 LB: > { %s544_s19 = sadd.s32 4294967295, %s671_s18   ;;  %p548_p0 = scmp.ge.s32.totalorder %s671_s18, 1  ;;  %s671_s18 = sphi %s703_s18, %s15_s18  }
   0x2   : > { %p197_p1 = scmp.lt.s32.totalorder %s671_s18, 3 }
   0x4   : > { %p198_p2 = pnand %p548_p0, %p197_p1 }
   0x5   : > { %v653_v0 = vld [vmem:[%s771_s4] sm:$0xff] (!%p198_p2)   ;;  %p230_p3 = scmp.lt.s32.totalorder (!%p198_p2), %s544_s19, 1  ;;  %v654_v1 = vld [vmem:[%s771_s4 + $0x8] sm:$0xff] (!%p198_p2)   ;;  %v655_v2 = vld [vmem:[%s771_s4 + $0x10] sm:$0xff] (!%p198_p2)  }
   0x6   : > { %201 = sbr.rel (%p198_p2) target bundleno = 258 (0x102), region = 40  ;;  %605 = vmatprep.subr.bf16.mxu0 (!%p198_p2), %v653_v0  ;;  %629 = vmatprep.subr.bf16.mxu1 (!%p198_p2), %v653_v0  ;;  %v656_v3 = vld [vmem:[%s771_s4 + $0x18] sm:$0xff] (!%p198_p2)   ;;  %v657_v6 = vld [vmem:[%s771_s4 + $0x20] sm:$0xff] (!%p198_p2)   ;;  %v658_v7 = vld [vmem:[%s771_s4 + $0x28] sm:$0xff] (!%p198_p2)  }
   0x7   : > { %606 = vmatpush3.bf16.msra.mxu0 (!%p198_p2), %v653_v0  ;;  %637 = vmatpush3.bf16.msra.mxu1 (!%p198_p2), %v653_v0  ;;  %v659_v8 = vld [vmem:[%s771_s4 + $0x30] sm:$0xff] (!%p198_p2)   ;;  %v660_v9 = vld [vmem:[%s771_s4 + $0x38] sm:$0xff] (!%p198_p2)   ;;  %v567_v18 = vld [vmem:[%s768_s1] ss:$0 sm:$0xff] (!%p198_p2) }
   0x8   : > { %607 = vmatprep.subr.bf16.mxu0 (!%p198_p2), %v654_v1  ;;  %630 = vmatprep.subr.bf16.mxu1 (!%p198_p2), %v654_v1  ;;  %v568_v27 = vld [vmem:[%s769_s2] ss:$0 sm:$0xff] (!%p198_p2) }
   0xb   : > { %608 = vmatpush3.bf16.msra.mxu0 (!%p198_p2), %v654_v1  ;;  %638 = vmatpush3.bf16.msra.mxu1 (!%p198_p2), %v654_v1 }
   0xc   : > { %609 = vmatprep.subr.bf16.mxu0 (!%p198_p2), %v655_v2  ;;  %631 = vmatprep.subr.bf16.mxu1 (!%p198_p2), %v655_v2 }
   0xd   : > { %s774_s19 = smov (!%p230_p3, %s544_s19), 1 }
   0xe   : > { %s571_s26 = sshll.u32 %s774_s19, 5  ;;  %s573_s24 = sshll.u32 %s774_s19, 6 }
   0xf   : > { %s728_s29 = scalar_lea.vmem %s770_s3, %s571_s26  ;;  %610 = vmatpush3.bf16.msra.mxu0 %v655_v2  ;;  %639 = vmatpush3.bf16.msra.mxu1 %v655_v2  ;;  %s234_s17 = scalar_lea.vmem %s767_s0, %s571_s26 }
  0x10   : > { %v661_v4 = vld [vmem:[%s728_s29] sm:$0xff]   ;;  %v662_v5 = vld [vmem:[%s728_s29 + $0x10] sm:$0xff]   ;;  %611 = vmatprep.subr.bf16.mxu0 %v656_v3  ;;  %632 = vmatprep.subr.bf16.mxu1 %v656_v3  ;;  %v663_v10 = vld [vmem:[%s728_s29 + $0x8] sm:$0xff]   ;;  %s244_s27 = scalar_lea.vmem %s772_s5, %s573_s24 }
  0x11   : > { %621 = vmatprep.mubr.bf16.mxu0 %v661_v4  ;;  %625 = vmatprep.mubr.bf16.mxu1 %v662_v5  ;;  %v664_v11 = vld [vmem:[%s728_s29 + $0x18] sm:$0xff]   ;;  %v590_v12 = vld [vmem:[%s234_s17 + $0x8] sm:$0xff]   ;;  %v575_v14 = vld [vmem:[%s234_s17] sm:$0xff]  }
  0x12   : > { %v592_v13 = vld [vmem:[%s234_s17 + $0x18] sm:$0xff]   ;;  %v591_v15 = vld [vmem:[%s234_s17 + $0x10] sm:$0xff]   ;;  %v580_v16 = vunpack.c.l.bf16 %v590_v12  ;;  %v576_v19 = vunpack.c.l.bf16 %v575_v14  ;;  %v581_v21 = vunpack.c.h.bf16 %v590_v12  ;;  %v577_v23 = vunpack.c.h.bf16 %v575_v14 }
  0x13   : > { %612 = vmatpush3.bf16.msra.mxu0 %v656_v3  ;;  %640 = vmatpush3.bf16.msra.mxu1 %v656_v3  ;;  %v588_v17 = vunpack.c.l.bf16 %v592_v13  ;;  %v584_v20 = vunpack.c.l.bf16 %v591_v15  ;;  %v589_v22 = vunpack.c.h.bf16 %v592_v13  ;;  %v585_v24 = vunpack.c.h.bf16 %v591_v15 }
  0x14   : > { %613 = vmatprep.subr.bf16.mxu0 %v657_v6  ;;  %633 = vmatprep.subr.bf16.mxu1 %v657_v6  ;;  %v432_v25 = vmul.f32 %v580_v16, %v567_v18  ;;  %v430_v28 = vmul.f32 %v576_v19, %v567_v18  ;;  %v433_v30 = vmul.f32 %v581_v21, %v567_v18 }
  0x15   : > { %v436_v26 = vmul.f32 %v588_v17, %v567_v18  ;;  %v434_v29 = vmul.f32 %v584_v20, %v567_v18  ;;  %v437_v31 = vmul.f32 %v589_v22, %v567_v18  ;;  %v431_v32 = vmul.f32 %v577_v23, %v567_v18 }
  0x16   : > { %v435_v33 = vmul.f32 %v585_v24, %v567_v18  ;;  %v447_v34 = vadd.f32 %v568_v27, %v432_v25  ;;  %v445_v36 = vadd.f32 %v568_v27, %v430_v28  ;;  %v448_v38 = vadd.f32 %v568_v27, %v433_v30 }
  0x17   : > { %614 = vmatpush3.bf16.msra.mxu0 %v657_v6  ;;  %641 = vmatpush3.bf16.msra.mxu1 %v657_v6  ;;  %v451_v35 = vadd.f32 %v568_v27, %v436_v26  ;;  %v449_v37 = vadd.f32 %v568_v27, %v434_v29  ;;  %v452_v39 = vadd.f32 %v568_v27, %v437_v31 }
  0x18   : > { %615 = vmatprep.subr.bf16.mxu0 %v658_v7  ;;  %634 = vmatprep.subr.bf16.mxu1 %v658_v7  ;;  %v446_v42 = vadd.f32 %v568_v27, %v431_v32  ;;  %v450_v43 = vadd.f32 %v568_v27, %v435_v33 }
  0x1b   : > { %616 = vmatpush3.bf16.msra.mxu0 %v658_v7  ;;  %642 = vmatpush3.bf16.msra.mxu1 %v658_v7 }
  0x1c   : > { %617 = vmatprep.subr.bf16.mxu0 %v659_v8  ;;  %635 = vmatprep.subr.bf16.mxu1 %v659_v8 }
  0x1f   : > { %618 = vmatpush3.bf16.msra.mxu0 %v659_v8  ;;  %643 = vmatpush3.bf16.msra.mxu1 %v659_v8 }
  0x20   : > { %619 = vmatprep.subr.bf16.mxu0 %v660_v9  ;;  %636 = vmatprep.subr.bf16.mxu1 %v660_v9 }
  0x23   : > { %620 = vmatpush3.bf16.msra.mxu0 %v660_v9  ;;  %644 = vmatpush3.bf16.msra.mxu1 %v660_v9 }
  0x26   : > { %622 = vmatmul.mubr.bf16.vlgmr.msra.gmra.mrb[0].mxu0 %v663_v10  ;;  %626 = vmatmul.mubr.bf16.vlgmr.msra.gmra.mrb[0].mxu1 %v664_v11 }
  0xf9   : > { %v623_v40 = vpop.f32.mrb[0].mxu0  ;;  %v627_v41 = vpop.f32.mrb[0].mxu1 }
  0xfa   : > { %v455_v44 = vadd.f32 %v623_v40, %v447_v34  ;;  %v459_v45 = vadd.f32 %v627_v41, %v451_v35  ;;  %v376_v46 = vpop.f32.mrb[1].mxu0  ;;  %v392_v47 = vpop.f32.mrb[1].mxu1 }
  0xfb   : > { %v453_v48 = vadd.f32 %v445_v36, %v376_v46  ;;  %v457_v49 = vadd.f32 %v449_v37, %v392_v47  ;;  %v624_v50 = vpop.f32.mrb[2].mxu0  ;;  %v628_v51 = vpop.f32.mrb[2].mxu1 }
  0xfc   : > { %v463_v52 = vmax.f32 %v455_v44, 0.0  ;;  %v467_v53 = vmax.f32 %v459_v45, 0.0  ;;  %v456_v54 = vadd.f32 %v624_v50, %v448_v38  ;;  %v460_v55 = vadd.f32 %v628_v51, %v452_v39  ;;  %v379_v56 = vpop.f32.mrb[3].mxu0  ;;  %v395_v57 = vpop.f32.mrb[3].mxu1 }
  0xfd   : > { %v461_v58 = vmax.f32 %v453_v48, 0.0  ;;  %v465_v59 = vmax.f32 %v457_v49, 0.0  ;;  %v454_v60 = vadd.f32 %v446_v42, %v379_v56  ;;  %v458_v61 = vadd.f32 %v450_v43, %v395_v57 }
  0xfe   : > { %471 = vst [vmem:[%s244_s27 + $0x10] sm:$0xff] %v463_v52  ;;  %475 = vst [vmem:[%s244_s27 + $0x30] sm:$0xff] %v467_v53  ;;  %v464_v62 = vmax.f32 %v456_v54, 0.0  ;;  %v468_v63 = vmax.f32 %v460_v55, 0.0 }
  0xff   : > { %469 = vst [vmem:[%s244_s27] sm:$0xff] %v461_v58  ;;  %473 = vst [vmem:[%s244_s27 + $0x20] sm:$0xff] %v465_v59  ;;  %v462_v0 = vmax.f32 %v454_v60, 0.0  ;;  %v466_v1 = vmax.f32 %v458_v61, 0.0 }
 0x100   : > { %472 = vst [vmem:[%s244_s27 + $0x18] sm:$0xff] %v464_v62  ;;  %476 = vst [vmem:[%s244_s27 + $0x38] sm:$0xff] %v468_v63 }
 0x101   : > { %470 = vst [vmem:[%s244_s27 + $0x8] sm:$0xff] %v462_v0  ;;  %474 = vst [vmem:[%s244_s27 + $0x28] sm:$0xff] %v466_v1 }
 0x102 PF: > { %s15_s18 = sadd.s32 1, %s671_s18  }
 0x103   : > { %p12_p4 = scmp.ge.s32.totalorder %s15_s18, 4  }
 0x105   :  { %14 = sbr.rel (!%p12_p4) target bundleno = 1 (0x1), region = 73 }

// kernel: basic_block_forward.4
= control target key start
LH: loop header
LB: loop body
LE: loop exit
PB: predicated region body
PF: predicated region fallthrough
CT: control target
= control target key end

     0   :  { %s3402_s21 = smov 0   ;;  %s3792_s0 = inlined_call_operand.vmem [shape: bf16[2,9,9,128], index: 0, kind: input, shape index: {}]   ;;  %s3793_s1 = inlined_call_operand.vmem [shape: bf16[2,9,9,128], index: 1, kind: input, shape index: {}]   ;;  %s3794_s2 = inlined_call_operand.vmem [shape: bf16[2,9,9,128], index: 2, kind: input, shape index: {}]   ;;  %s3795_s3 = inlined_call_operand.vmem [shape: bf16[2,9,9,128], index: 3, kind: input, shape index: {}]   ;;  %s3796_s4 = inlined_call_operand.vmem [shape: bf16[9,128,128], index: 4, kind: input, shape index: {}]   ;;  %s3797_s5 = inlined_call_operand.vmem [shape: bf16[2,64,128], index: 5, kind: output, shape index: {0}]   ;;  %s3798_s6 = inlined_call_operand.vmem [shape: f32[2,8,128], index: 6, kind: output, shape index: {1}]  }
   0x1 LB: > { %s2528_s22 = sadd.s32 4294967295, %s3365_s21   ;;  %p2532_p0 = scmp.ge.s32.totalorder %s3365_s21, 1  ;;  %s3365_s21 = sphi %s3402_s21, %s17_s21  }
   0x2   : > { %p245_p1 = scmp.lt.s32.totalorder %s3365_s21, 3 }
   0x4   : > { %p246_p2 = pnand %p2532_p0, %p245_p1 }
   0x5   : > { %v3263_v0 = vld [vmem:[%s3796_s4] sm:$0xff] (!%p246_p2)   ;;  %p294_p3 = scmp.lt.s32.totalorder (!%p246_p2), %s2528_s22, 1  ;;  %v3265_v2 = vld [vmem:[%s3796_s4 + $0x8] sm:$0xff] (!%p246_p2)   ;;  %v3267_v4 = vld [vmem:[%s3796_s4 + $0x10] sm:$0xff] (!%p246_p2)   ;;  %vm695_vm0 = vsmask.f32 (!%p246_p2), 3328 }
   0x6   : > { %249 = sbr.rel (%p246_p2) target bundleno = 413 (0x19d), region = 40  ;;  %v3264_v1 = vld [vmem:[%s3796_s4 + $0x100] sm:$0xff] (!%p246_p2)   ;;  %2958 = vmatprep.subr.bf16.mxu1 (!%p246_p2), %v3263_v0  ;;  %v3266_v3 = vld [vmem:[%s3796_s4 + $0x108] sm:$0xff] (!%p246_p2)   ;;  %v3268_v5 = vld [vmem:[%s3796_s4 + $0x110] sm:$0xff] (!%p246_p2)   ;;  %vm696_vm1 = vsmask.f32 (!%p246_p2), 7440 }
   0x7   : > { %3054 = vmatprep.subr.bf16.mxu0 (!%p246_p2), %v3264_v1  ;;  %2959 = vmatpush3.bf16.msra.mxu1 (!%p246_p2), %v3263_v0  ;;  %v3269_v6 = vld [vmem:[%s3796_s4 + $0x18] sm:$0xff] (!%p246_p2)   ;;  %v3271_v8 = vld [vmem:[%s3796_s4 + $0x20] sm:$0xff] (!%p246_p2)   ;;  %v3273_v10 = vld [vmem:[%s3796_s4 + $0x28] sm:$0xff] (!%p246_p2)  }
   0x8   : > { %3055 = vmatpush3.bf16.msra.mxu0 (!%p246_p2), %v3264_v1  ;;  %2960 = vmatprep.subr.bf16.mxu1 (!%p246_p2), %v3265_v2  ;;  %v3270_v7 = vld [vmem:[%s3796_s4 + $0x118] sm:$0xff] (!%p246_p2)   ;;  %v3272_v9 = vld [vmem:[%s3796_s4 + $0x120] sm:$0xff] (!%p246_p2)   ;;  %v3274_v12 = vld [vmem:[%s3796_s4 + $0x128] sm:$0xff] (!%p246_p2)  }
   0x9   : > { %3056 = vmatprep.subr.bf16.mxu0 (!%p246_p2), %v3266_v3  ;;  %v3275_v14 = vld [vmem:[%s3796_s4 + $0x30] sm:$0xff] (!%p246_p2)   ;;  %v3277_v16 = vld [vmem:[%s3796_s4 + $0x38] sm:$0xff] (!%p246_p2)   ;;  %v3280_v18 = vld [vmem:[%s3796_s4 + $0x40] sm:$0xff] (!%p246_p2)  }
   0xa   : > { %v3276_v15 = vld [vmem:[%s3796_s4 + $0x130] sm:$0xff] (!%p246_p2)   ;;  %v3278_v17 = vld [vmem:[%s3796_s4 + $0x138] sm:$0xff] (!%p246_p2)   ;;  %v3282_v19 = vld [vmem:[%s3796_s4 + $0x140] sm:$0xff] (!%p246_p2)  }
   0xb   : > { %2961 = vmatpush3.bf16.msra.mxu1 (!%p246_p2), %v3265_v2  ;;  %v3285_v22 = vld [vmem:[%s3796_s4 + $0x48] sm:$0xff] (!%p246_p2)   ;;  %v3287_v26 = vld [vmem:[%s3796_s4 + $0x50] sm:$0xff] (!%p246_p2)   ;;  %v3289_v28 = vld [vmem:[%s3796_s4 + $0x58] sm:$0xff] (!%p246_p2)  }
   0xc   : > { %3057 = vmatpush3.bf16.msra.mxu0 (!%p246_p2), %v3266_v3  ;;  %2962 = vmatprep.subr.bf16.mxu1 (!%p246_p2), %v3267_v4  ;;  %v3286_v23 = vld [vmem:[%s3796_s4 + $0x148] sm:$0xff] (!%p246_p2)   ;;  %v3288_v27 = vld [vmem:[%s3796_s4 + $0x150] sm:$0xff] (!%p246_p2)   ;;  %v3290_v31 = vld [vmem:[%s3796_s4 + $0x158] sm:$0xff] (!%p246_p2)  }
   0xd   : > { %s3802_s22 = smov (!%p294_p3, %s2528_s22), 1  ;;  %3058 = vmatprep.subr.bf16.mxu0 %v3268_v5  ;;  %v3291_v38 = vld [vmem:[%s3796_s4 + $0x60] sm:$0xff]   ;;  %v3293_v47 = vld [vmem:[%s3796_s4 + $0x68] sm:$0xff]   ;;  %vm3538_vm2 = vmor %vm695_vm0, %vm696_vm1 }
   0xe   : > { %s3437_s15 = smul.u32 72, %s3802_s22  ;;  %v3292_v43 = vld [vmem:[%s3796_s4 + $0x160] sm:$0xff]   ;;  %v3294_v50 = vld [vmem:[%s3796_s4 + $0x168] sm:$0xff]   ;;  %v3296_v2 = vld [vmem:[%s3796_s4 + $0x70] sm:$0xff]   ;;  %s2818_s18 = sshll.u32 %s3802_s22, 5 }
   0xf   : > { %2963 = vmatpush3.bf16.msra.mxu1 %v3267_v4  ;;  %s2539_s20 = sshll.u32 %s3802_s22, 3 }
  0x10   : > { %3059 = vmatpush3.bf16.msra.mxu0 %v3268_v5  ;;  %2964 = vmatprep.subr.bf16.mxu1 %v3269_v6  ;;  %s3449_s24 = scalar_lea.vmem %s3792_s0, %s3437_s15  ;;  %s3458_s29 = scalar_lea.vmem %s3795_s3, %s3437_s15 }
  0x11   : > { %3060 = vmatprep.subr.bf16.mxu0 %v3270_v7  ;;  %v3279_v11 = vld [vmem:[%s3449_s24] ss:$8 sps:$4 sm:$0xff]   ;;  %v3283_v20 = vld [vmem:[%s3449_s24 + $0x10] ss:$8 sps:$4 sm:$0xff]   ;;  %s3507_s13 = scalar_lea.vmem %s3793_s1, %s3437_s15  ;;  %s3514_s17 = scalar_lea.vmem %s3794_s2, %s3437_s15 }
  0x12   : > { %2974 = vmatprep.mubr.bf16.mxu1 %v3279_v11  ;;  %v3281_v13 = vld [vmem:[%s3458_s29] ss:$8 sps:$4 sm:$0xff]   ;;  %v3284_v21 = vld [vmem:[%s3458_s29 + $0x10] ss:$8 sps:$4 sm:$0xff]   ;;  %v1353_v34 = vld [vmem:[%s3514_s17 + $0x4] sm:$0x1]  ;;  %s322_s26 = scalar_lea.vmem %s3798_s6, %s2539_s20 }
  0x13   : > { %2965 = vmatpush3.bf16.msra.mxu1 %v3269_v6  ;;  %3070 = vmatprep.mubr.bf16.mxu0 %v3281_v13  ;;  %v3295_v24 = vld [vmem:[%s3449_s24 + $0x20] ss:$8 sps:$4 sm:$0xff]   ;;  %v3299_v29 = vld [vmem:[%s3449_s24 + $0x30] ss:$8 sps:$4 sm:$0xff]   ;;  %v1355_v39 = vld [vmem:[%s3514_s17 + $0xc] sm:$0x1] }
  0x14   : > { %3061 = vmatpush3.bf16.msra.mxu0 %v3270_v7  ;;  %2966 = vmatprep.subr.bf16.mxu1 %v3271_v8  ;;  %v3297_v25 = vld [vmem:[%s3458_s29 + $0x20] ss:$8 sps:$4 sm:$0xff]   ;;  %v3300_v30 = vld [vmem:[%s3458_s29 + $0x30] ss:$8 sps:$4 sm:$0xff]   ;;  %v1378_v40 = vshll.u32 %v1353_v34, 16  ;;  %v1392_v46 = vshll.u32 %v1355_v39, 16  ;;  %s318_s29 = scalar_lea.vmem %s3797_s5, %s2818_s18 }
  0x15   : > { %3062 = vmatprep.subr.bf16.mxu0 %v3272_v9  ;;  %v3303_v32 = vld [vmem:[%s3507_s13] ss:$8 sps:$4 sm:$0xff]   ;;  %v1356_v56 = vld [vmem:[%s3514_s17 + $0x10] sm:$0xf]  ;;  %v1357_v57 = vld [vmem:[%s3514_s17 + $0x14] sm:$0x1] }
  0x16   : > { %v1352_v33 = vld [vmem:[%s3514_s17] sm:$0xf]  ;;  %v1354_v35 = vld [vmem:[%s3514_s17 + $0x8] sm:$0xf]  ;;  %v1380_v52 = vrot.slane %v1378_v40, 5  ;;  %v1394_v55 = vrot.slane %v1392_v46, 5 }
  0x17   : > { %2967 = vmatpush3.bf16.msra.mxu1 %v3271_v8  ;;  %v1369_v36 = vshrl.u32 %v1352_v33, 16  ;;  %v1372_v37 = vshll.u32 %v1352_v33, 16  ;;  %v1383_v41 = vshrl.u32 %v1354_v35, 16  ;;  %v1386_v42 = vshll.u32 %v1354_v35, 16  ;;  %v1358_v59 = vld [vmem:[%s3514_s17 + $0x18] sm:$0xf] }
  0x18   : > { %3063 = vmatpush3.bf16.msra.mxu0 %v3272_v9  ;;  %2968 = vmatprep.subr.bf16.mxu1 %v3273_v10  ;;  %v1359_v60 = vld [vmem:[%s3514_s17 + $0x1c] sm:$0x1]  ;;  %v1397_v61 = vshrl.u32 %v1356_v56, 16  ;;  %v1400_v63 = vshll.u32 %v1356_v56, 16  ;;  %v1406_v0 = vshll.u32 %v1357_v57, 16  ;;  %v1411_v1 = vshrl.u32 %v1358_v59, 16 }
  0x19   : > { %3064 = vmatprep.subr.bf16.mxu0 %v3274_v12  ;;  %v1371_v44 = vrot.slane %v1369_v36, 4  ;;  %v1374_v45 = vrot.slane %v1372_v37, 5  ;;  %v1385_v48 = vrot.slane %v1383_v41, 4  ;;  %v1388_v49 = vrot.slane %v1386_v42, 5  ;;  %v3298_v6 = vld [vmem:[%s3796_s4 + $0x170] sm:$0xff]  }
  0x1a   : > { %v1399_v4 = vrot.slane %v1397_v61, 4  ;;  %v1414_v5 = vshll.u32 %v1358_v59, 16  ;;  %v1402_v8 = vrot.slane %v1400_v63, 5  ;;  %v1413_v9 = vrot.slane %v1411_v1, 4  ;;  %v3317_v37 = vld [vmem:[%s3507_s13 + $0x20] ss:$8 sps:$4 sm:$0xff]  }
  0x1b   : > { %2969 = vmatpush3.bf16.msra.mxu1 %v3273_v10  ;;  %v1375_v51 = vor.u32 %v1374_v45, %v1371_v44  ;;  %v1389_v54 = vor.u32 %v1388_v49, %v1385_v48  ;;  %v1420_v10 = vshll.u32 %v1359_v60, 16  ;;  %v3320_v48 = vld [vmem:[%s3507_s13 + $0x30] ss:$8 sps:$4 sm:$0xff]  }
  0x1c   : > { %3065 = vmatpush3.bf16.msra.mxu0 %v3274_v12  ;;  %2970 = vmatprep.subr.bf16.mxu1 %v3275_v14  ;;  %v1408_v12 = vrot.slane %v1406_v0, 5  ;;  %v1416_v13 = vrot.slane %v1414_v5, 5  ;;  %v1364_v49 = vld [vmem:[%s3514_s17 + $0x30] sm:$0xf]  ;;  %v3311_v59 = vld [vmem:[%s3796_s4 + $0x98] sm:$0xff]  }
  0x1d   : > { %3066 = vmatprep.subr.bf16.mxu0 %v3276_v15  ;;  %v1376_v58 = vrot.slane %v1375_v51, 4  ;;  %v1390_v62 = vrot.slane %v1389_v54, 4  ;;  %v1366_v51 = vld [vmem:[%s3514_s17 + $0x38] sm:$0xf]  ;;  %v1453_v56 = vshrl.u32 %v1364_v49, 16  ;;  %v1456_v57 = vshll.u32 %v1364_v49, 16 }
  0x1e   : > { %v1467_v61 = vshrl.u32 %v1366_v51, 16 }
  0x1f   : > { %2971 = vmatpush3.bf16.msra.mxu1 %v3275_v14  ;;  %v1381_v3 = vsel %vm3538_vm2, %v1376_v58, %v1380_v52  ;;  %v1395_v7 = vsel %vm3538_vm2, %v1390_v62, %v1394_v55  ;;  %v3301_v14 = vld [vmem:[%s3796_s4 + $0x78] sm:$0xff]   ;;  %v3310_v52 = vld [vmem:[%s3796_s4 + $0x190] sm:$0xff]   ;;  %v1470_v62 = vshll.u32 %v1366_v51, 16  ;;  %v1455_v1 = vrot.slane %v1453_v56, 4 }
  0x20   : > { %3067 = vmatpush3.bf16.msra.mxu0 %v3276_v15  ;;  %2972 = vmatprep.subr.bf16.mxu1 %v3277_v16  ;;  %v2680_v11 = vcombine.low %v1381_v3, %v1395_v7  ;;  %v1403_v15 = vor.u32 %v1402_v8, %v1399_v4  ;;  %v1367_v55 = vld [vmem:[%s3514_s17 + $0x3c] sm:$0x1] }
  0x21   : > { %3068 = vmatprep.subr.bf16.mxu0 %v3278_v17  ;;  %v1476_v63 = vshll.u32 %v1367_v55, 16  ;;  %v3312_v4 = vld [vmem:[%s3796_s4 + $0x198] sm:$0xff]   ;;  %v1472_v7 = vrot.slane %v1470_v62, 5 }
  0x23   : > { %2973 = vmatpush3.bf16.msra.mxu1 %v3277_v16  ;;  %v1417_v16 = vor.u32 %v1416_v13, %v1413_v9  ;;  %v1478_v8 = vrot.slane %v1476_v63, 5  ;;  %v3313_v13 = vld [vmem:[%s3796_s4 + $0xa0] sm:$0xff]  }
  0x24   : > { %3069 = vmatpush3.bf16.msra.mxu0 %v3278_v17  ;;  %2982 = vmatprep.subr.bf16.mxu1 %v3280_v18  ;;  %v1404_v17 = vrot.slane %v1403_v15, 4 }
  0x25   : > { %3078 = vmatprep.subr.bf16.mxu0 %v3282_v19 }
  0x26   : > { %2975 = vmatmul.mubr.bf16.vlgmr.msra.gmra.mrb[0].mxu1 %v3283_v20  ;;  %v1418_v20 = vrot.slane %v1417_v16, 4  ;;  %v681_v16 = vld [vmem:[%s3449_s24 + $0x8] sm:$0xf] }
  0x27   : > { %2983 = vmatpush3.bf16.msra.mxu1 %v3280_v18  ;;  %3071 = vmatmul.mubr.bf16.vlgmr.msra.gmra.mrb[0].mxu0 %v3284_v21  ;;  %v1422_v18 = vrot.slane %v1420_v10, 5  ;;  %v3304_v21 = vld [vmem:[%s3796_s4 + $0x80] sm:$0xff]  }
  0x28   : > { %3079 = vmatpush3.bf16.msra.mxu0 %v3282_v19  ;;  %2984 = vmatprep.subr.bf16.mxu1 %v3285_v22  ;;  %v3302_v19 = vld [vmem:[%s3796_s4 + $0x178] sm:$0xff]  }
  0x29   : > { %3080 = vmatprep.subr.bf16.mxu0 %v3286_v23  ;;  %2978 = vmatprep.mubr.bf16.mxu1 %v3295_v24  ;;  %v3305_v24 = vld [vmem:[%s3796_s4 + $0x180] sm:$0xff]  }
  0x2a   : > { %3074 = vmatprep.mubr.bf16.mxu0 %v3297_v25  ;;  %v3306_v25 = vld [vmem:[%s3507_s13 + $0x10] ss:$8 sps:$4 sm:$0xff]  }
  0x2b   : > { %2985 = vmatpush3.bf16.msra.mxu1 %v3285_v22  ;;  %v1409_v22 = vsel %vm3538_vm2, %v1404_v17, %v1408_v12  ;;  %v680_v12 = vld [vmem:[%s3449_s24 + $0x4] sm:$0x1]  ;;  %v682_v17 = vld [vmem:[%s3449_s24 + $0xc] sm:$0x1] }
  0x2c   : > { %3081 = vmatpush3.bf16.msra.mxu0 %v3286_v23  ;;  %2986 = vmatprep.subr.bf16.mxu1 %v3287_v26  ;;  %v1423_v23 = vsel %vm3538_vm2, %v1418_v20, %v1422_v18 }
  0x2d   : > { %3082 = vmatprep.subr.bf16.mxu0 %v3288_v27 }
  0x2e   : > { %2979 = vmatmul.mubr.bf16.gmra.mrb[4].mxu1 %v3299_v29  ;;  %v3308_v29 = vld [vmem:[%s3796_s4 + $0x188] sm:$0xff]  }
  0x2f   : > { %2987 = vmatpush3.bf16.msra.mxu1 %v3287_v26  ;;  %3075 = vmatmul.mubr.bf16.gmra.mrb[4].mxu0 %v3300_v30  ;;  %v3307_v26 = vld [vmem:[%s3796_s4 + $0x88] sm:$0xff]   ;;  %v1361_v30 = vld [vmem:[%s3514_s17 + $0x24] sm:$0x1] }
  0x30   : > { %3083 = vmatpush3.bf16.msra.mxu0 %v3288_v27  ;;  %2988 = vmatprep.subr.bf16.mxu1 %v3289_v28  ;;  %v1360_v27 = vld [vmem:[%s3514_s17 + $0x20] sm:$0xf]  ;;  %v1434_v35 = vshll.u32 %v1361_v30, 16 }
  0x31   : > { %3084 = vmatprep.subr.bf16.mxu0 %v3290_v31  ;;  %2998 = vmatprep.mubr.bf16.mxu1 %v3303_v32  ;;  %v1363_v32 = vld [vmem:[%s3514_s17 + $0x2c] sm:$0x1]  ;;  %v1425_v33 = vshrl.u32 %v1360_v27, 16  ;;  %v1428_v34 = vshll.u32 %v1360_v27, 16  ;;  %v722_v27 = vshll.u32 %v682_v17, 16 }
  0x32   : > { %3094 = vmatprep.mubr.bf16.mxu0 %v2680_v11  ;;  %v1448_v39 = vshll.u32 %v1363_v32, 16  ;;  %v1436_v44 = vrot.slane %v1434_v35, 5  ;;  %v679_v11 = vld [vmem:[%s3449_s24] sm:$0xf]  ;;  %v3315_v32 = vld [vmem:[%s3796_s4 + $0xa8] sm:$0xff]  }
  0x33   : > { %2989 = vmatpush3.bf16.msra.mxu1 %v3289_v28  ;;  %v2681_v28 = vcombine.low %v1409_v22, %v1423_v23  ;;  %v1427_v40 = vrot.slane %v1425_v33, 4  ;;  %v1430_v41 = vrot.slane %v1428_v34, 5  ;;  %v699_v18 = vshrl.u32 %v679_v11, 16  ;;  %v690_v17 = vld [vmem:[%s3449_s24 + $0x2c] sm:$0x1] }
  0x34   : > { %3085 = vmatpush3.bf16.msra.mxu0 %v3290_v31  ;;  %2990 = vmatprep.subr.bf16.mxu1 %v3291_v38  ;;  %v1362_v31 = vld [vmem:[%s3514_s17 + $0x28] sm:$0xf]  ;;  %v1450_v46 = vrot.slane %v1448_v39, 5  ;;  %v713_v22 = vshrl.u32 %v681_v16, 16  ;;  %v716_v23 = vshll.u32 %v681_v16, 16 }
  0x35   : > { %3086 = vmatprep.subr.bf16.mxu0 %v3292_v43  ;;  %v1439_v36 = vshrl.u32 %v1362_v31, 16  ;;  %v689_v16 = vld [vmem:[%s3449_s24 + $0x28] sm:$0xf] }
  0x36   : > { %v715_v30 = vrot.slane %v713_v22, 4  ;;  %v769_v22 = vshrl.u32 %v689_v16, 16 }
  0x37   : > { %2991 = vmatpush3.bf16.msra.mxu1 %v3291_v38  ;;  %v1442_v38 = vshll.u32 %v1362_v31, 16  ;;  %v1441_v42 = vrot.slane %v1439_v36, 4  ;;  %v718_v31 = vrot.slane %v716_v23, 5  ;;  %v724_v36 = vrot.slane %v722_v27, 5 }
  0x38   : > { %3087 = vmatpush3.bf16.msra.mxu0 %v3292_v43  ;;  %2992 = vmatprep.subr.bf16.mxu1 %v3293_v47  ;;  %v3309_v43 = vld [vmem:[%s3796_s4 + $0x90] sm:$0xff]   ;;  %v772_v23 = vshll.u32 %v689_v16, 16  ;;  %v2765_v16 = vld [vmem:[%s3449_s24 + $0xc] sm:$0x1] }
  0x39   : > { %3088 = vmatprep.subr.bf16.mxu0 %v3294_v50  ;;  %v1444_v45 = vrot.slane %v1442_v38, 5  ;;  %v3316_v38 = vld [vmem:[%s3796_s4 + $0x1a8] sm:$0xff]  }
  0x3b   : > { %2993 = vmatpush3.bf16.msra.mxu1 %v3293_v47  ;;  %v1431_v47 = vor.u32 %v1430_v41, %v1427_v40  ;;  %v1445_v54 = vor.u32 %v1444_v45, %v1441_v42  ;;  %v719_v40 = vor.u32 %v718_v31, %v715_v30  ;;  %v683_v41 = vld [vmem:[%s3449_s24 + $0x10] sm:$0xf]  ;;  %v774_v31 = vrot.slane %v772_v23, 5 }
  0x3c   : > { %3089 = vmatpush3.bf16.msra.mxu0 %v3294_v50  ;;  %2994 = vmatprep.subr.bf16.mxu1 %v3296_v2  ;;  %v1365_v50 = vld [vmem:[%s3514_s17 + $0x34] sm:$0x1]  ;;  %v727_v45 = vshrl.u32 %v683_v41, 16  ;;  %v691_v30 = vld [vmem:[%s3449_s24 + $0x30] sm:$0xf] }
  0x3d   : > { %3090 = vmatprep.subr.bf16.mxu0 %v3298_v6  ;;  %v1462_v58 = vshll.u32 %v1365_v50, 16  ;;  %v1432_v60 = vrot.slane %v1431_v47, 4  ;;  %v1446_v0 = vrot.slane %v1445_v54, 4  ;;  %v686_v47 = vld [vmem:[%s3449_s24 + $0x1c] sm:$0x1] }
  0x3f   : > { %2995 = vmatpush3.bf16.msra.mxu1 %v3296_v2  ;;  %v1458_v2 = vrot.slane %v1456_v57, 5  ;;  %v1464_v3 = vrot.slane %v1462_v58, 5  ;;  %v1437_v5 = vsel %vm3538_vm2, %v1432_v60, %v1436_v44  ;;  %v1451_v9 = vsel %vm3538_vm2, %v1446_v0, %v1450_v46  ;;  %v685_v44 = vld [vmem:[%s3449_s24 + $0x18] sm:$0xf]  ;;  %v3319_v60 = vld [vmem:[%s3796_s4 + $0x1b0] sm:$0xff]  }
  0x40   : > { %3091 = vmatpush3.bf16.msra.mxu0 %v3298_v6  ;;  %2996 = vmatprep.subr.bf16.mxu1 %v3301_v14  ;;  %v1469_v6 = vrot.slane %v1467_v61, 4  ;;  %v720_v46 = vrot.slane %v719_v40, 4  ;;  %v741_v50 = vshrl.u32 %v685_v44, 16  ;;  %v744_v54 = vshll.u32 %v685_v44, 16 }
  0x41   : > { %3092 = vmatprep.subr.bf16.mxu0 %v3302_v19  ;;  %v1459_v10 = vor.u32 %v1458_v2, %v1455_v1  ;;  %v750_v58 = vshll.u32 %v686_v47, 16 }
  0x42   : > { %v1473_v15 = vor.u32 %v1472_v7, %v1469_v6  ;;  %v725_v55 = vsel %vm3538_vm2, %v720_v46, %v724_v36  ;;  %v743_v57 = vrot.slane %v741_v50, 4  ;;  %v746_v63 = vrot.slane %v744_v54, 5  ;;  %v3322_v6 = vld [vmem:[%s3796_s4 + $0x1b8] sm:$0xff]   ;;  %v3323_v7 = vld [vmem:[%s3796_s4 + $0xc0] sm:$0xff]  }
  0x43   : > { %2997 = vmatpush3.bf16.msra.mxu1 %v3301_v14  ;;  %v2682_v14 = vcombine.low %v1437_v5, %v1451_v9  ;;  %v1460_v20 = vrot.slane %v1459_v10, 4  ;;  %v3325_v10 = vld [vmem:[%s3796_s4 + $0x1c0] sm:$0xff]   ;;  %v3331_v50 = vld [vmem:[%s3796_s4 + $0xd8] sm:$0xff]  }
  0x44   : > { %3093 = vmatpush3.bf16.msra.mxu0 %v3302_v19  ;;  %3006 = vmatprep.subr.bf16.mxu1 %v3304_v21  ;;  %v702_v19 = vshll.u32 %v679_v11, 16  ;;  %v747_v1 = vor.u32 %v746_v63, %v743_v57  ;;  %v3326_v11 = vld [vmem:[%s3449_s24 + $0x18] ss:$8 sps:$4 sm:$0xff]  }
  0x45   : > { %3102 = vmatprep.subr.bf16.mxu0 %v3305_v24 }
  0x46   : > { %2999 = vmatmul.mubr.bf16.vlgmr.msra.gmra.mrb[0].mxu1 %v3306_v25  ;;  %v701_v25 = vrot.slane %v699_v18, 4  ;;  %v748_v5 = vrot.slane %v747_v1, 4  ;;  %v3328_v18 = vld [vmem:[%s3796_s4 + $0x1c8] sm:$0xff]   ;;  %v3333_v1 = vld [vmem:[%s3796_s4 + $0xe0] sm:$0xff]  }
  0x47   : > { %3007 = vmatpush3.bf16.msra.mxu1 %v3304_v21  ;;  %3095 = vmatmul.mubr.bf16.vlgmr.msra.gmra.mrb[0].mxu0 %v2681_v28  ;;  %v708_v21 = vshll.u32 %v680_v12, 16  ;;  %v3314_v28 = vld [vmem:[%s3796_s4 + $0x1a0] sm:$0xff]  }
  0x48   : > { %3103 = vmatpush3.bf16.msra.mxu0 %v3305_v24  ;;  %3008 = vmatprep.subr.bf16.mxu1 %v3307_v26  ;;  %v1474_v24 = vrot.slane %v1473_v15, 4  ;;  %v687_v12 = vld [vmem:[%s3449_s24 + $0x20] sm:$0xf]  ;;  %v688_v15 = vld [vmem:[%s3449_s24 + $0x24] sm:$0x1] }
  0x49   : > { %3104 = vmatprep.subr.bf16.mxu0 %v3308_v29  ;;  %3002 = vmatprep.mubr.bf16.mxu1 %v3317_v37  ;;  %v710_v35 = vrot.slane %v708_v21, 5  ;;  %v3324_v37 = vld [vmem:[%s3449_s24 + $0x8] ss:$8 sps:$4 sm:$0xff]   ;;  %v764_v21 = vshll.u32 %v688_v15, 16 }
  0x4a   : > { %3098 = vmatprep.mubr.bf16.mxu0 %v2682_v14  ;;  %v1479_v33 = vsel %vm3538_vm2, %v1474_v24, %v1478_v8  ;;  %v3327_v14 = vld [vmem:[%s3796_s4 + $0xc8] sm:$0xff]   ;;  %v778_v24 = vshll.u32 %v690_v17, 16  ;;  %v2766_v17 = vld [vmem:[%s3449_s24 + $0x10] sm:$0xf] }
  0x4b   : > { %3009 = vmatpush3.bf16.msra.mxu1 %v3307_v26  ;;  %v704_v26 = vrot.slane %v702_v19, 5  ;;  %v755_v19 = vshrl.u32 %v687_v12, 16  ;;  %v2764_v15 = vld [vmem:[%s3449_s24 + $0x8] sm:$0xf]  ;;  %v2058_v23 = vshll.u32 %v2766_v17, 16 }
  0x4c   : > { %3105 = vmatpush3.bf16.msra.mxu0 %v3308_v29  ;;  %3010 = vmatprep.subr.bf16.mxu1 %v3309_v43  ;;  %v1465_v29 = vsel %vm3538_vm2, %v1460_v20, %v1464_v3  ;;  %v752_v3 = vrot.slane %v750_v58, 5  ;;  %v758_v20 = vshll.u32 %v687_v12, 16  ;;  %v3339_v58 = vld [vmem:[%s3449_s24 + $0x38] ss:$8 sps:$4 sm:$0xff]  }
  0x4d   : > { %3106 = vmatprep.subr.bf16.mxu0 %v3310_v52  ;;  %v705_v34 = vor.u32 %v704_v26, %v701_v25  ;;  %v2683_v39 = vcombine.low %v1465_v29, %v1479_v33  ;;  %v3337_v25 = vld [vmem:[%s3449_s24 + $0x28] ss:$8 sps:$4 sm:$0xff]   ;;  %v757_v26 = vrot.slane %v755_v19, 4  ;;  %v771_v29 = vrot.slane %v769_v22, 4  ;;  %v692_v33 = vld [vmem:[%s3449_s24 + $0x34] sm:$0x1] }
  0x4e   : > { %3003 = vmatmul.mubr.bf16.gmra.mrb[4].mxu1 %v3320_v48  ;;  %v730_v48 = vshll.u32 %v683_v41, 16  ;;  %v753_v9 = vsel %vm3538_vm2, %v748_v5, %v752_v3  ;;  %v760_v27 = vrot.slane %v758_v20, 5  ;;  %v792_v40 = vshll.u32 %v692_v33, 16  ;;  %v3330_v41 = vld [vmem:[%s3796_s4 + $0x1d0] sm:$0xff]   ;;  %v3334_v5 = vld [vmem:[%s3796_s4 + $0x1e0] sm:$0xff]   ;;  %v3341_v12 = vld [vmem:[%s3796_s4 + $0xf8] sm:$0xff]  }
  0x4f   : > { %3011 = vmatpush3.bf16.msra.mxu1 %v3309_v43  ;;  %v706_v42 = vrot.slane %v705_v34, 4  ;;  %v684_v43 = vld [vmem:[%s3449_s24 + $0x14] sm:$0x1]  ;;  %3099 = vmatmul.mubr.bf16.gmra.mrb[4].mxu0 %v2683_v39  ;;  %v693_v34 = vld [vmem:[%s3449_s24 + $0x38] sm:$0xf]  ;;  %v786_v39 = vshll.u32 %v691_v30, 16 }
  0x50   : > { %3107 = vmatpush3.bf16.msra.mxu0 %v3310_v52  ;;  %3012 = vmatprep.subr.bf16.mxu1 %v3311_v59  ;;  %v736_v49 = vshll.u32 %v684_v43, 16  ;;  %v729_v52 = vrot.slane %v727_v45, 4  ;;  %v732_v56 = vrot.slane %v730_v48, 5  ;;  %v761_v36 = vor.u32 %v760_v27, %v757_v26  ;;  %v2775_v33 = vld [vmem:[%s3449_s24 + $0x34] sm:$0x1] }
  0x51   : > { %3108 = vmatprep.subr.bf16.mxu0 %v3312_v4  ;;  %v711_v51 = vsel %vm3538_vm2, %v706_v42, %v710_v35  ;;  %3118 = vmatprep.mubr.bf16.mxu0 %v3324_v37  ;;  %v3329_v35 = vld [vmem:[%s3796_s4 + $0xd0] sm:$0xff]   ;;  %v694_v37 = vld [vmem:[%s3449_s24 + $0x3c] sm:$0x1]  ;;  %v775_v42 = vor.u32 %v774_v31, %v771_v29  ;;  %v797_v43 = vshrl.u32 %v693_v34, 16  ;;  %v800_v44 = vshll.u32 %v693_v34, 16 }
  0x52   : > { %v2596_v61 = vcombine.low %v711_v51, %v725_v55  ;;  %v738_v62 = vrot.slane %v736_v49, 5  ;;  %v733_v0 = vor.u32 %v732_v56, %v729_v52  ;;  %v806_v45 = vshll.u32 %v694_v37, 16  ;;  %v2774_v29 = vld [vmem:[%s3449_s24 + $0x30] sm:$0xf]  ;;  %v3346_v34 = vld [vmem:[%s3507_s13 + $0x18] ss:$8 sps:$4 sm:$0xff]  }
  0x53   : > { %3013 = vmatpush3.bf16.msra.mxu1 %v3311_v59  ;;  %v3318_v59 = vld [vmem:[%s3796_s4 + $0xb0] sm:$0xff]   ;;  %v762_v46 = vrot.slane %v761_v36, 4  ;;  %v788_v48 = vrot.slane %v786_v39, 5  ;;  %v794_v49 = vrot.slane %v792_v40, 5  ;;  %v776_v51 = vrot.slane %v775_v42, 4  ;;  %v3348_v39 = vld [vmem:[%s3796_s4 + $0x208] sm:$0xff]  }
  0x54   : > { %3109 = vmatpush3.bf16.msra.mxu0 %v3312_v4  ;;  %3014 = vmatprep.subr.bf16.mxu1 %v3313_v13  ;;  %v734_v2 = vrot.slane %v733_v0, 4  ;;  %v3321_v4 = vld [vmem:[%s3796_s4 + $0xb8] sm:$0xff]   ;;  %v799_v52 = vrot.slane %v797_v43, 4  ;;  %v802_v54 = vrot.slane %v800_v44, 5  ;;  %v808_v55 = vrot.slane %v806_v45, 5 }
  0x55   : > { %3110 = vmatprep.subr.bf16.mxu0 %v3314_v28  ;;  %3022 = vmatprep.mubr.bf16.mxu1 %v2596_v61  ;;  %v3332_v61 = vld [vmem:[%s3796_s4 + $0x1d8] sm:$0xff]   ;;  %v2041_v19 = vshrl.u32 %v2764_v15, 16  ;;  %v2044_v20 = vshll.u32 %v2764_v15, 16  ;;  %v2055_v22 = vshrl.u32 %v2766_v17, 16  ;;  %v2114_v42 = vshll.u32 %v2774_v29, 16  ;;  %v3355_v15 = vld [vmem:[%s3796_s4 + $0x220] sm:$0xff]  }
  0x56   : > { %v739_v8 = vsel %vm3538_vm2, %v734_v2, %v738_v62  ;;  %v2120_v43 = vshll.u32 %v2775_v33, 16  ;;  %v3349_v44 = vld [vmem:[%s3514_s17 + $0x20] ss:$8 sps:$4 sm:$0xff]  }
  0x57   : > { %3015 = vmatpush3.bf16.msra.mxu1 %v3313_v13  ;;  %v2597_v13 = vcombine.low %v739_v8, %v753_v9  ;;  %v3335_v8 = vld [vmem:[%s3796_s4 + $0xe8] sm:$0xff]   ;;  %v2043_v26 = vrot.slane %v2041_v19, 4  ;;  %v2046_v27 = vrot.slane %v2044_v20, 5  ;;  %v2057_v31 = vrot.slane %v2055_v22, 4 }
  0x58   : > { %3111 = vmatpush3.bf16.msra.mxu0 %v3314_v28  ;;  %3016 = vmatprep.subr.bf16.mxu1 %v3315_v32  ;;  %v766_v28 = vrot.slane %v764_v21, 5  ;;  %v3336_v9 = vld [vmem:[%s3796_s4 + $0x1e8] sm:$0xff]   ;;  %v2050_v21 = vshll.u32 %v2765_v16, 16 }
  0x59   : > { %3112 = vmatprep.subr.bf16.mxu0 %v3316_v38  ;;  %v3356_v20 = vld [vmem:[%s3796_s4 + $0x228] sm:$0xff]  }
  0x5a   : > { %v767_v56 = vsel %vm3538_vm2, %v762_v46, %v766_v28  ;;  %v2773_v28 = vld [vmem:[%s3449_s24 + $0x2c] sm:$0x1]  ;;  %v2052_v45 = vrot.slane %v2050_v21, 5  ;;  %v2777_v21 = vld [vmem:[%s3449_s24 + $0x3c] sm:$0x1] }
  0x5b   : > { %3017 = vmatpush3.bf16.msra.mxu1 %v3315_v32  ;;  %v780_v32 = vrot.slane %v778_v24, 5 }
  0x5c   : > { %3113 = vmatpush3.bf16.msra.mxu0 %v3316_v38  ;;  %3018 = vmatprep.subr.bf16.mxu1 %v3318_v59  ;;  %v783_v38 = vshrl.u32 %v691_v30, 16  ;;  %v3345_v30 = vld [vmem:[%s3514_s17 + $0x10] ss:$8 sps:$4 sm:$0xff]  }
  0x5d   : > { %3114 = vmatprep.subr.bf16.mxu0 %v3319_v60 }
  0x5e   : > { %v785_v47 = vrot.slane %v783_v38, 4  ;;  %v2106_v38 = vshll.u32 %v2773_v28, 16 }
  0x5f   : > { %3019 = vmatpush3.bf16.msra.mxu1 %v3318_v59  ;;  %v781_v59 = vsel %vm3538_vm2, %v776_v51, %v780_v32  ;;  %v2060_v32 = vrot.slane %v2058_v23, 5 }
  0x60   : > { %3115 = vmatpush3.bf16.msra.mxu0 %v3319_v60  ;;  %3020 = vmatprep.subr.bf16.mxu1 %v3321_v4  ;;  %v789_v57 = vor.u32 %v788_v48, %v785_v47  ;;  %v803_v60 = vor.u32 %v802_v54, %v799_v52  ;;  %v2598_v62 = vcombine.low %v767_v56, %v781_v59  ;;  %v2116_v54 = vrot.slane %v2114_v42, 5 }
  0x61   : > { %3116 = vmatprep.subr.bf16.mxu0 %v3322_v6  ;;  %v2061_v40 = vor.u32 %v2060_v32, %v2057_v31  ;;  %v2108_v56 = vrot.slane %v2106_v38, 5  ;;  %v2122_v59 = vrot.slane %v2120_v43, 5  ;;  %v2769_v31 = vld [vmem:[%s3449_s24 + $0x1c] sm:$0x1]  ;;  %v2771_v32 = vld [vmem:[%s3449_s24 + $0x24] sm:$0x1] }
  0x62   : > { %v790_v63 = vrot.slane %v789_v57, 4  ;;  %v804_v0 = vrot.slane %v803_v60, 4  ;;  %v3353_v57 = vld [vmem:[%s3796_s4 + $0x210] sm:$0xff]  }
  0x63   : > { %3021 = vmatpush3.bf16.msra.mxu1 %v3321_v4  ;;  %v3344_v4 = vld [vmem:[%s3507_s13 + $0x8] ss:$8 sps:$4 sm:$0xff]   ;;  %v2062_v51 = vrot.slane %v2061_v40, 4 }
  0x64   : > { %3117 = vmatpush3.bf16.msra.mxu0 %v3322_v6  ;;  %3030 = vmatprep.subr.bf16.mxu1 %v3323_v7  ;;  %v795_v2 = vsel %vm3538_vm2, %v790_v63, %v794_v49  ;;  %v809_v3 = vsel %vm3538_vm2, %v804_v0, %v808_v55  ;;  %v3350_v49 = vld [vmem:[%s3507_s13 + $0x28] ss:$8 sps:$4 sm:$0xff]  }
  0x65   : > { %3126 = vmatprep.subr.bf16.mxu0 %v3325_v10  ;;  %v2599_v6 = vcombine.low %v795_v2, %v809_v3  ;;  %v3354_v3 = vld [vmem:[%s3796_s4 + $0x218] sm:$0xff]  }
  0x66   : > { %3023 = vmatmul.mubr.bf16.vlgmr.msra.gmra.mrb[0].mxu1 %v2597_v13  ;;  %v3342_v13 = vld [vmem:[%s3796_s4 + $0x1f8] sm:$0xff]  }
  0x67   : > { %3031 = vmatpush3.bf16.msra.mxu1 %v3323_v7  ;;  %3119 = vmatmul.mubr.bf16.vlgmr.msra.gmra.mrb[0].mxu0 %v3326_v11  ;;  %v3343_v7 = vld [vmem:[%s3514_s17] ss:$8 sps:$4 sm:$0xff]   ;;  %v3340_v11 = vld [vmem:[%s3796_s4 + $0x1f0] sm:$0xff]  }
  0x68   : > { %3127 = vmatpush3.bf16.msra.mxu0 %v3325_v10  ;;  %3032 = vmatprep.subr.bf16.mxu1 %v3327_v14  ;;  %v3338_v10 = vld [vmem:[%s3796_s4 + $0xf0] sm:$0xff]  }
  0x69   : > { %3128 = vmatprep.subr.bf16.mxu0 %v3328_v18  ;;  %3122 = vmatprep.mubr.bf16.mxu0 %v3337_v25  ;;  %v2772_v25 = vld [vmem:[%s3449_s24 + $0x28] sm:$0xf] }
  0x6a   : > { %3026 = vmatprep.mubr.bf16.mxu1 %v2598_v62  ;;  %v2097_v36 = vshrl.u32 %v2772_v25, 16  ;;  %v2100_v37 = vshll.u32 %v2772_v25, 16 }
  0x6b   : > { %3033 = vmatpush3.bf16.msra.mxu1 %v3327_v14  ;;  %v3347_v14 = vld [vmem:[%s3796_s4 + $0x200] sm:$0xff]  }
  0x6c   : > { %3129 = vmatpush3.bf16.msra.mxu0 %v3328_v18  ;;  %3034 = vmatprep.subr.bf16.mxu1 %v3329_v35  ;;  %v2767_v18 = vld [vmem:[%s3449_s24 + $0x14] sm:$0x1]  ;;  %v2099_v47 = vrot.slane %v2097_v36, 4  ;;  %v2102_v48 = vrot.slane %v2100_v37, 5 }
  0x6d   : > { %3130 = vmatprep.subr.bf16.mxu0 %v3330_v41  ;;  %v2064_v24 = vshll.u32 %v2767_v18, 16  ;;  %v3357_v37 = vld [vmem:[%s3796_s4 + $0x230] sm:$0xff]  }
  0x6e   : > { %3027 = vmatmul.mubr.bf16.gmra.mrb[4].mxu1 %v2599_v6  ;;  %v2103_v55 = vor.u32 %v2102_v48, %v2099_v47  ;;  %v2778_v6 = vld [vmem:[%s3449_s24 + $0x40] sm:$0xf] }
  0x6f   : > { %3035 = vmatpush3.bf16.msra.mxu1 %v3329_v35  ;;  %3123 = vmatmul.mubr.bf16.gmra.mrb[4].mxu0 %v3339_v58  ;;  %v2047_v35 = vor.u32 %v2046_v27, %v2043_v26  ;;  %v2066_v46 = vrot.slane %v2064_v24, 5 }
  0x70   : > { %3131 = vmatpush3.bf16.msra.mxu0 %v3330_v41  ;;  %3036 = vmatprep.subr.bf16.mxu1 %v3331_v50  ;;  %v2111_v41 = vshrl.u32 %v2774_v29, 16  ;;  %v2104_v60 = vrot.slane %v2103_v55, 4 }
  0x71   : > { %3132 = vmatprep.subr.bf16.mxu0 %v3332_v61  ;;  %3142 = vmatprep.mubr.bf16.mxu0 %v3344_v4  ;;  %v2067_v63 = vsel %vm3538_vm2, %v2062_v51, %v2066_v46  ;;  %v3358_v46 = vld [vmem:[%s3796_s4 + $0x238] sm:$0xff]  }
  0x72   : > { %3046 = vmatprep.mubr.bf16.mxu1 %v3343_v7  ;;  %v2113_v52 = vrot.slane %v2111_v41, 4  ;;  %v2109_v2 = vsel %vm3538_vm2, %v2104_v60, %v2108_v56  ;;  %v2092_v41 = vshll.u32 %v2771_v32, 16 }
  0x73   : > { %3037 = vmatpush3.bf16.msra.mxu1 %v3331_v50  ;;  %v2048_v50 = vrot.slane %v2047_v35, 4 }
  0x74   : > { %3133 = vmatpush3.bf16.msra.mxu0 %v3332_v61  ;;  %3038 = vmatprep.subr.bf16.mxu1 %v3333_v1  ;;  %v2117_v58 = vor.u32 %v2116_v54, %v2113_v52  ;;  %v3351_v61 = vld [vmem:[%s3514_s17 + $0x30] ss:$8 sps:$4 sm:$0xff]  }
  0x75   : > { %3134 = vmatprep.subr.bf16.mxu0 %v3334_v5  ;;  %v2053_v62 = vsel %vm3538_vm2, %v2048_v50, %v2052_v45  ;;  %v2094_v50 = vrot.slane %v2092_v41, 5 }
  0x76   : > { %v2118_v0 = vrot.slane %v2117_v58, 4  ;;  %v2796_v7 = vcombine.low %v2053_v62, %v2067_v63 }
  0x77   : > { %3039 = vmatpush3.bf16.msra.mxu1 %v3333_v1  ;;  %v3352_v1 = vld [vmem:[%s3507_s13 + $0x38] ss:$8 sps:$4 sm:$0xff]  }
  0x78   : > { %3135 = vmatpush3.bf16.msra.mxu0 %v3334_v5  ;;  %3040 = vmatprep.subr.bf16.mxu1 %v3335_v8  ;;  %v2123_v4 = vsel %vm3538_vm2, %v2118_v0, %v2122_v59  ;;  %v2776_v5 = vld [vmem:[%s3449_s24 + $0x38] sm:$0xf] }
  0x79   : > { %3136 = vmatprep.subr.bf16.mxu0 %v3336_v9 }
  0x7b   : > { %3041 = vmatpush3.bf16.msra.mxu1 %v3335_v8  ;;  %v2768_v8 = vld [vmem:[%s3449_s24 + $0x18] sm:$0xf] }
  0x7c   : > { %3137 = vmatpush3.bf16.msra.mxu0 %v3336_v9  ;;  %3042 = vmatprep.subr.bf16.mxu1 %v3338_v10  ;;  %v2770_v9 = vld [vmem:[%s3449_s24 + $0x20] sm:$0xf]  ;;  %v2069_v16 = vshrl.u32 %v2768_v8, 16  ;;  %v2072_v17 = vshll.u32 %v2768_v8, 16 }
  0x7d   : > { %3138 = vmatprep.subr.bf16.mxu0 %v3340_v11  ;;  %v2083_v18 = vshrl.u32 %v2770_v9, 16  ;;  %v2086_v19 = vshll.u32 %v2770_v9, 16 }
  0x7e   : > { %v2071_v26 = vrot.slane %v2069_v16, 4  ;;  %v2074_v27 = vrot.slane %v2072_v17, 5 }
  0x7f   : > { %3043 = vmatpush3.bf16.msra.mxu1 %v3338_v10  ;;  %v2798_v10 = vcombine.low %v2109_v2, %v2123_v4  ;;  %v2085_v28 = vrot.slane %v2083_v18, 4  ;;  %v2088_v29 = vrot.slane %v2086_v19, 5 }
  0x80   : > { %3139 = vmatpush3.bf16.msra.mxu0 %v3340_v11  ;;  %3044 = vmatprep.subr.bf16.mxu1 %v3341_v12  ;;  %v2125_v11 = vshrl.u32 %v2776_v5, 16  ;;  %v2075_v38 = vor.u32 %v2074_v27, %v2071_v26 }
  0x81   : > { %3140 = vmatprep.subr.bf16.mxu0 %v3342_v13  ;;  %v2089_v40 = vor.u32 %v2088_v29, %v2085_v28 }
  0x82   : > { %v2127_v22 = vrot.slane %v2125_v11, 4  ;;  %v2076_v47 = vrot.slane %v2075_v38, 4 }
  0x83   : > { %3045 = vmatpush3.bf16.msra.mxu1 %v3341_v12  ;;  %v2128_v12 = vshll.u32 %v2776_v5, 16 }
  0x84   : > { %3141 = vmatpush3.bf16.msra.mxu0 %v3342_v13  ;;  %3174 = vmatprep.subr.bf16.mxu1 %v3347_v14  ;;  %v2139_v13 = vshrl.u32 %v2778_v6, 16 }
  0x85   : > { %3150 = vmatprep.subr.bf16.mxu0 %v3347_v14  ;;  %v2130_v23 = vrot.slane %v2128_v12, 5 }
  0x86   : > { %3047 = vmatmul.mubr.bf16.vlgmr.msra.gmra.mrb[0].mxu1 %v3345_v30  ;;  %v2141_v24 = vrot.slane %v2139_v13, 4  ;;  %v2779_v30 = vld [vmem:[%s3449_s24 + $0x44] sm:$0x1] }
  0x87   : > { %3143 = vmatmul.mubr.bf16.vlgmr.msra.gmra.mrb[0].mxu0 %v3346_v34  ;;  %3182 = vmatpush3.bf16.msra.mxu1 %v3347_v14  ;;  %v2131_v33 = vor.u32 %v2130_v23, %v2127_v22  ;;  %v2134_v34 = vshll.u32 %v2777_v21, 16  ;;  %v2148_v36 = vshll.u32 %v2779_v30, 16 }
  0x88   : > { %3151 = vmatpush3.bf16.msra.mxu0 %v3347_v14  ;;  %3175 = vmatprep.subr.bf16.mxu1 %v3348_v39  ;;  %v2142_v14 = vshll.u32 %v2778_v6, 16 }
  0x89   : > { %3152 = vmatprep.subr.bf16.mxu0 %v3348_v39  ;;  %3050 = vmatprep.mubr.bf16.mxu1 %v3349_v44  ;;  %v2132_v42 = vrot.slane %v2131_v33, 4  ;;  %v2136_v43 = vrot.slane %v2134_v34, 5  ;;  %v2150_v45 = vrot.slane %v2148_v36, 5 }
  0x8a   : > { %3146 = vmatprep.mubr.bf16.mxu0 %v3350_v49  ;;  %v2144_v25 = vrot.slane %v2142_v14, 5  ;;  %v2090_v49 = vrot.slane %v2089_v40, 4 }
  0x8b   : > { %3183 = vmatpush3.bf16.msra.mxu1 %v3348_v39  ;;  %v2137_v51 = vsel %vm3538_vm2, %v2132_v42, %v2136_v43 }
  0x8c   : > { %3153 = vmatpush3.bf16.msra.mxu0 %v3348_v39  ;;  %3176 = vmatprep.subr.bf16.mxu1 %v3353_v57  ;;  %v2145_v35 = vor.u32 %v2144_v25, %v2141_v24  ;;  %v2078_v39 = vshll.u32 %v2769_v31, 16  ;;  %v2095_v55 = vsel %vm3538_vm2, %v2090_v49, %v2094_v50 }
  0x8d   : > { %3154 = vmatprep.subr.bf16.mxu0 %v3353_v57 }
  0x8e   : > { %3051 = vmatmul.mubr.bf16.gmra.mrb[4].mxu1 %v3351_v61  ;;  %v2146_v44 = vrot.slane %v2145_v35, 4  ;;  %v2080_v48 = vrot.slane %v2078_v39, 5 }
  0x8f   : > { %3147 = vmatmul.mubr.bf16.gmra.mrb[4].mxu0 %v3352_v1  ;;  %3184 = vmatpush3.bf16.msra.mxu1 %v3353_v57 }
  0x90   : > { %3155 = vmatpush3.bf16.msra.mxu0 %v3353_v57  ;;  %3177 = vmatprep.subr.bf16.mxu1 %v3354_v3  ;;  %v2151_v52 = vsel %vm3538_vm2, %v2146_v44, %v2150_v45  ;;  %v2081_v54 = vsel %vm3538_vm2, %v2076_v47, %v2080_v48 }
  0x91   : > { %3156 = vmatprep.subr.bf16.mxu0 %v3354_v3  ;;  %3166 = vmatprep.mubr.bf16.mxu0 %v2796_v7  ;;  %v2799_v56 = vcombine.low %v2137_v51, %v2151_v52  ;;  %v2797_v57 = vcombine.low %v2081_v54, %v2095_v55 }
  0x92   : > { %3170 = vmatprep.mubr.bf16.mxu1 %v2798_v10 }
  0x93   : > { %3185 = vmatpush3.bf16.msra.mxu1 %v3354_v3 }
  0x94   : > { %3157 = vmatpush3.bf16.msra.mxu0 %v3354_v3  ;;  %3178 = vmatprep.subr.bf16.mxu1 %v3355_v15 }
  0x95   : > { %3158 = vmatprep.subr.bf16.mxu0 %v3355_v15 }
  0x97   : > { %3186 = vmatpush3.bf16.msra.mxu1 %v3355_v15 }
  0x98   : > { %3159 = vmatpush3.bf16.msra.mxu0 %v3355_v15  ;;  %3179 = vmatprep.subr.bf16.mxu1 %v3356_v20 }
  0x99   : > { %3160 = vmatprep.subr.bf16.mxu0 %v3356_v20 }
  0x9b   : > { %3187 = vmatpush3.bf16.msra.mxu1 %v3356_v20 }
  0x9c   : > { %3161 = vmatpush3.bf16.msra.mxu0 %v3356_v20  ;;  %3180 = vmatprep.subr.bf16.mxu1 %v3357_v37 }
  0x9d   : > { %3162 = vmatprep.subr.bf16.mxu0 %v3357_v37 }
  0x9f   : > { %3188 = vmatpush3.bf16.msra.mxu1 %v3357_v37 }
  0xa0   : > { %3163 = vmatpush3.bf16.msra.mxu0 %v3357_v37  ;;  %3181 = vmatprep.subr.bf16.mxu1 %v3358_v46 }
  0xa1   : > { %3164 = vmatprep.subr.bf16.mxu0 %v3358_v46 }
  0xa3   : > { %3189 = vmatpush3.bf16.msra.mxu1 %v3358_v46 }
  0xa4   : > { %3165 = vmatpush3.bf16.msra.mxu0 %v3358_v46 }
  0xa6   : > { %3171 = vmatmul.mubr.bf16.vlgmr.msra.gmra.mrb[8].mxu1 %v2799_v56 }
  0xa7   : > { %3167 = vmatmul.mubr.bf16.vlgmr.msra.gmra.mrb[0].mxu0 %v2797_v57 }
 0x159   : > { %v3048_v58 = vpop.f32.mrb[0].mxu1 }
 0x15a   : > { %v1111_v59 = vpop.f32.mrb[1].mxu1 }
 0x15b   : > { %v3049_v60 = vpop.f32.mrb[2].mxu1 }
 0x15c   : > { %v1114_v61 = vpop.f32.mrb[3].mxu1 }
 0x161   : > { %v3052_v62 = vpop.f32.mrb[4].mxu1 }
 0x162   : > { %v3148_v63 = vpop.f32.mrb[4].mxu0  ;;  %v1127_v0 = vpop.f32.mrb[5].mxu1 }
 0x163   : > { %v3194_v1 = vadd.f32 %v3148_v63, %v3052_v62  ;;  %v1985_v2 = vpop.f32.mrb[5].mxu0  ;;  %v3053_v3 = vpop.f32.mrb[6].mxu1 }
 0x164   : > { %v3196_v53 = vadd.f32 %v1985_v2, %v1127_v0  ;;  %v3149_v4 = vpop.f32.mrb[6].mxu0  ;;  %v1130_v5 = vpop.f32.mrb[7].mxu1 }
 0x165   : > { %v3198_v6 = vadd.f32 %v3149_v4, %v3053_v3  ;;  %v1988_v7 = vpop.f32.mrb[7].mxu0 }
 0x166   : > { %v3200_v8 = vadd.f32 %v1988_v7, %v1130_v5 }
 0x179   : > { %v3172_v9 = vpop.f32.mrb[8].mxu1 }
 0x17a   : > { %v3168_v10 = vpop.f32.mrb[0].mxu0  ;;  %v3195_v11 = vadd.f32 %v3194_v1, %v3172_v9  ;;  %v2283_v12 = vpop.f32.mrb[9].mxu1 }
 0x17b   : > { %v3190_v13 = vadd.f32 %v3168_v10, %v3048_v58  ;;  %v2267_v14 = vpop.f32.mrb[1].mxu0  ;;  %v3197_v15 = vadd.f32 %v3196_v53, %v2283_v12  ;;  %v3173_v16 = vpop.f32.mrb[10].mxu1 }
 0x17c   : > { %v3191_v17 = vadd.f32 %v2267_v14, %v1111_v59  ;;  %v3169_v18 = vpop.f32.mrb[2].mxu0  ;;  %v3199_v19 = vadd.f32 %v3198_v6, %v3173_v16  ;;  %v2286_v20 = vpop.f32.mrb[11].mxu1  ;;  %v2350_v44 = vmul.f32 %v3195_v11, %v3195_v11 }
 0x17d   : > { %v3192_v21 = vadd.f32 %v3169_v18, %v3049_v60  ;;  %v2270_v22 = vpop.f32.mrb[3].mxu0  ;;  %v3201_v23 = vadd.f32 %v3200_v8, %v2286_v20  ;;  %v2346_v32 = vmul.f32 %v3190_v13, %v3190_v13  ;;  %v2348_v38 = vmul.f32 %v3197_v15, %v3197_v15 }
 0x17e   : > { %v2845_v24 = vpack.c.bf16 %v3199_v19, %v3195_v11  ;;  %v3193_v25 = vadd.f32 %v2270_v22, %v1114_v61  ;;  %v2344_v28 = vmul.f32 %v3191_v17, %v3191_v17  ;;  %v2351_v47 = vmul.f32 %v3199_v19, %v3199_v19 }
 0x17f   : > { %v2835_v26 = vpack.c.bf16 %v3192_v21, %v3190_v13  ;;  %v2840_v27 = vpack.c.bf16 %v3201_v23, %v3197_v15  ;;  %v2347_v35 = vmul.f32 %v3192_v21, %v3192_v21  ;;  %v2349_v42 = vmul.f32 %v3201_v23, %v3201_v23 }
 0x180   : > { %2849 = vst [vmem:[%s318_s29 + $0x18] sm:$0xff] %v2845_v24   ;;  %v2330_v29 = vadd.f32 %v3193_v25, %v3191_v17  ;;  %v2345_v30 = vmul.f32 %v3193_v25, %v3193_v25  ;;  %v2830_v31 = vpack.c.bf16 %v3193_v25, %v3191_v17 }
 0x181   : > { %2847 = vst [vmem:[%s318_s29 + $0x8] sm:$0xff] %v2835_v26   ;;  %2848 = vst [vmem:[%s318_s29 + $0x10] sm:$0xff] %v2840_v27  }
 0x182   : > { %v2331_v33 = vadd.f32 %v3190_v13, %v2330_v29  ;;  %v2352_v34 = vadd.f32 %v2345_v30, %v2344_v28  ;;  %2831 = vst [vmem:[%s318_s29] sm:$0xff] %v2830_v31  }
 0x184   : > { %v2353_v36 = vadd.f32 %v2352_v34, %v2346_v32  ;;  %v2332_v37 = vadd.f32 %v3192_v21, %v2331_v33 }
 0x186   : > { %v2333_v39 = vadd.f32 %v3197_v15, %v2332_v37  ;;  %v2354_v40 = vadd.f32 %v2353_v36, %v2347_v35 }
 0x188   : > { %v2334_v41 = vadd.f32 %v3201_v23, %v2333_v39  ;;  %v2355_v43 = vadd.f32 %v2354_v40, %v2348_v38 }
 0x18a   : > { %v2335_v45 = vadd.f32 %v3195_v11, %v2334_v41  ;;  %v2356_v46 = vadd.f32 %v2355_v43, %v2349_v42 }
 0x18c   : > { %v2336_v48 = vadd.f32 %v3199_v19, %v2335_v45  ;;  %v2357_v49 = vadd.f32 %v2356_v46, %v2350_v44 }
 0x18e   : > { %v2337_v50 = vrot.slane %v2336_v48, 4  ;;  %v2358_v51 = vadd.f32 %v2357_v49, %v2351_v47 }
 0x190   : > { %v2338_v52 = vadd.f32 %v2337_v50, %v2336_v48  ;;  %v2359_v54 = vrot.slane %v2358_v51, 4 }
 0x192   : > { %v2339_v55 = vrot.slane %v2338_v52, 2  ;;  %v2360_v56 = vadd.f32 %v2359_v54, %v2358_v51 }
 0x194   : > { %v2340_v57 = vadd.f32 %v2339_v55, %v2338_v52  ;;  %v2361_v58 = vrot.slane %v2360_v56, 2 }
 0x196   : > { %v2341_v59 = vrot.slane %v2340_v57, 1  ;;  %v2362_v60 = vadd.f32 %v2361_v58, %v2360_v56 }
 0x198   : > { %v2342_v61 = vadd.f32 %v2341_v59, %v2340_v57  ;;  %v2363_v62 = vrot.slane %v2362_v60, 1 }
 0x19a   : > { %2343 = vst [vmem:[%s322_s26] sm:$0x1] %v2342_v61  ;;  %v2364_v63 = vadd.f32 %v2363_v62, %v2362_v60 }
 0x19c   : > { %2365 = vst [vmem:[%s322_s26 + $0x1] sm:$0x1] %v2364_v63 }
 0x19d PF: > { %s17_s21 = sadd.s32 1, %s3365_s21  }
 0x19e   : > { %p14_p4 = scmp.ge.s32.totalorder %s17_s21, 4  }
 0x1a0   :  { %16 = sbr.rel (!%p14_p4) target bundleno = 1 (0x1), region = 101 }

// kernel: basic_block_forward.6
= control target key start
LH: loop header
LB: loop body
LE: loop exit
PB: predicated region body
PF: predicated region fallthrough
CT: control target
= control target key end

     0   :  { %s3414_s12 = smov 0   ;;  %s3873_s0 = inlined_call_operand.vmem [shape: bf16[2,10,10,128], index: 0, kind: input, shape index: {}]   ;;  %s3874_s1 = inlined_call_operand.vmem [shape: bf16[9,128,128], index: 1, kind: input, shape index: {}]   ;;  %s3875_s2 = inlined_call_operand.vmem [shape: bf16[2,64,128], index: 2, kind: output, shape index: {0}]   ;;  %s3876_s3 = inlined_call_operand.vmem [shape: f32[2,8,128], index: 3, kind: output, shape index: {1}]  }
   0x1 LB: > { %s2498_s13 = sadd.s32 4294967295, %s3392_s12   ;;  %p2502_p0 = scmp.ge.s32.totalorder %s3392_s12, 1  ;;  %s3392_s12 = sphi %s3414_s12, %s14_s12  }
   0x2   : > { %p140_p1 = scmp.lt.s32.totalorder %s3392_s12, 3 }
   0x4   : > { %p141_p2 = pnand %p2502_p0, %p140_p1 }
   0x5   : > { %v3302_v0 = vld [vmem:[%s3874_s1] sm:$0xff] (!%p141_p2)   ;;  %v3304_v2 = vld [vmem:[%s3874_s1 + $0x8] sm:$0xff] (!%p141_p2)   ;;  %p168_p3 = scmp.lt.s32.totalorder (!%p141_p2), %s2498_s13, 1  ;;  %v3306_v4 = vld [vmem:[%s3874_s1 + $0x10] sm:$0xff] (!%p141_p2)   ;;  %vm368_vm0 = vsmask.f32 (!%p141_p2), 3328 }
   0x6   : > { %144 = sbr.rel (%p141_p2) target bundleno = 413 (0x19d), region = 28  ;;  %v3303_v1 = vld [vmem:[%s3874_s1 + $0x100] sm:$0xff] (!%p141_p2)   ;;  %2997 = vmatprep.subr.bf16.mxu1 (!%p141_p2), %v3302_v0  ;;  %v3305_v3 = vld [vmem:[%s3874_s1 + $0x108] sm:$0xff] (!%p141_p2)   ;;  %v3307_v5 = vld [vmem:[%s3874_s1 + $0x110] sm:$0xff] (!%p141_p2)   ;;  %vm369_vm1 = vsmask.f32 (!%p141_p2), 7440 }
   0x7   : > { %3093 = vmatprep.subr.bf16.mxu0 (!%p141_p2), %v3303_v1  ;;  %2998 = vmatpush3.bf16.msra.mxu1 (!%p141_p2), %v3302_v0  ;;  %v3308_v6 = vld [vmem:[%s3874_s1 + $0x18] sm:$0xff] (!%p141_p2)   ;;  %v3310_v8 = vld [vmem:[%s3874_s1 + $0x20] sm:$0xff] (!%p141_p2)   ;;  %v3312_v10 = vld [vmem:[%s3874_s1 + $0x28] sm:$0xff] (!%p141_p2)   ;;  %vm685_vm3 = vcmask (!%p141_p2), 1042432   ;;  %vm686_vm4 = vcmask (!%p141_p2), 1046532  }
   0x8   : > { %3094 = vmatpush3.bf16.msra.mxu0 (!%p141_p2), %v3303_v1  ;;  %2999 = vmatprep.subr.bf16.mxu1 (!%p141_p2), %v3304_v2  ;;  %v3309_v7 = vld [vmem:[%s3874_s1 + $0x118] sm:$0xff] (!%p141_p2)   ;;  %v3311_v9 = vld [vmem:[%s3874_s1 + $0x120] sm:$0xff] (!%p141_p2)   ;;  %v3313_v12 = vld [vmem:[%s3874_s1 + $0x128] sm:$0xff] (!%p141_p2)  }
   0x9   : > { %3095 = vmatprep.subr.bf16.mxu0 (!%p141_p2), %v3305_v3  ;;  %v3314_v18 = vld [vmem:[%s3874_s1 + $0x30] sm:$0xff] (!%p141_p2)   ;;  %v3316_v27 = vld [vmem:[%s3874_s1 + $0x38] sm:$0xff] (!%p141_p2)   ;;  %vm3485_vm2 = vmor (!%p141_p2), %vm368_vm0, %vm369_vm1 }
   0xa   : > { %v3315_v23 = vld [vmem:[%s3874_s1 + $0x130] sm:$0xff] (!%p141_p2)   ;;  %v3317_v30 = vld [vmem:[%s3874_s1 + $0x138] sm:$0xff] (!%p141_p2)   ;;  %v3319_v46 = vld [vmem:[%s3874_s1 + $0x40] sm:$0xff] (!%p141_p2)  }
   0xb   : > { %3000 = vmatpush3.bf16.msra.mxu1 (!%p141_p2), %v3304_v2  ;;  %v3320_v52 = vld [vmem:[%s3874_s1 + $0x140] sm:$0xff] (!%p141_p2)   ;;  %v3322_v63 = vld [vmem:[%s3874_s1 + $0x48] sm:$0xff] (!%p141_p2)   ;;  %vm3572_vm5 = vmor (!%p141_p2), %vm685_vm3, %vm686_vm4 }
   0xc   : > { %3096 = vmatpush3.bf16.msra.mxu0 (!%p141_p2), %v3305_v3  ;;  %3001 = vmatprep.subr.bf16.mxu1 (!%p141_p2), %v3306_v4  ;;  %v3323_v3 = vld [vmem:[%s3874_s1 + $0x148] sm:$0xff] (!%p141_p2)  }
   0xd   : > { %s3882_s13 = smov (!%p168_p3, %s2498_s13), 1  ;;  %3097 = vmatprep.subr.bf16.mxu0 %v3307_v5 }
   0xe   : > { %s3293_s30 = smul.u32 80, %s3882_s13  ;;  %s2506_s20 = sshll.u32 %s3882_s13, 3 }
   0xf   : > { %3002 = vmatpush3.bf16.msra.mxu1 %v3306_v4  ;;  %s181_s23 = scalar_lea.vmem %s3876_s3, %s2506_s20 }
  0x10   : > { %3098 = vmatpush3.bf16.msra.mxu0 %v3307_v5  ;;  %3003 = vmatprep.subr.bf16.mxu1 %v3308_v6  ;;  %s3461_s14 = scalar_lea.vmem %s3873_s0, %s3293_s30  ;;  %v3324_v5 = vld [vmem:[%s3874_s1 + $0x50] sm:$0xff]  }
  0x11   : > { %3099 = vmatprep.subr.bf16.mxu0 %v3309_v7  ;;  %v3318_v11 = vld [vmem:[%s3461_s14] ss:$8 sps:$4 sm:$0xff]   ;;  %v2620_v14 = vld [vmem:[%s3461_s14 + $0xc] sm:$0x1]  ;;  %v2621_v15 = vld [vmem:[%s3461_s14 + $0x10] sm:$0xf] }
  0x12   : > { %3013 = vmatprep.mubr.bf16.mxu1 %v3318_v11  ;;  %v2619_v13 = vld [vmem:[%s3461_s14 + $0x8] sm:$0xf]  ;;  %v2622_v19 = vld [vmem:[%s3461_s14 + $0x14] sm:$0x1]  ;;  %v1103_v20 = vshll.u32 %v2620_v14, 16  ;;  %v1108_v21 = vshrl.u32 %v2621_v15, 16 }
  0x13   : > { %3004 = vmatpush3.bf16.msra.mxu1 %v3308_v6  ;;  %v1094_v16 = vshrl.u32 %v2619_v13, 16  ;;  %v1097_v17 = vshll.u32 %v2619_v13, 16  ;;  %v1111_v22 = vshll.u32 %v2621_v15, 16  ;;  %v1117_v26 = vshll.u32 %v2622_v19, 16  ;;  %v2623_v36 = vld [vmem:[%s3461_s14 + $0x18] sm:$0xf] }
  0x14   : > { %3100 = vmatpush3.bf16.msra.mxu0 %v3309_v7  ;;  %3005 = vmatprep.subr.bf16.mxu1 %v3310_v8  ;;  %v1110_v28 = vrot.slane %v1108_v21, 4  ;;  %v1105_v32 = vrot.slane %v1103_v20, 5  ;;  %v2624_v37 = vld [vmem:[%s3461_s14 + $0x1c] sm:$0x1]  ;;  %v2625_v39 = vld [vmem:[%s3461_s14 + $0x20] sm:$0xf] }
  0x15   : > { %3101 = vmatprep.subr.bf16.mxu0 %v3311_v9  ;;  %v1096_v24 = vrot.slane %v1094_v16, 4  ;;  %v1099_v25 = vrot.slane %v1097_v17, 5  ;;  %v1113_v29 = vrot.slane %v1111_v22, 5  ;;  %v1119_v35 = vrot.slane %v1117_v26, 5  ;;  %v2626_v40 = vld [vmem:[%s3461_s14 + $0x24] sm:$0x1] }
  0x16   : > { %v1122_v41 = vshrl.u32 %v2623_v36, 16  ;;  %v1125_v43 = vshll.u32 %v2623_v36, 16  ;;  %v1131_v44 = vshll.u32 %v2624_v37, 16  ;;  %v1136_v45 = vshrl.u32 %v2625_v39, 16  ;;  %v3321_v53 = vld [vmem:[%s3461_s14 + $0x10] ss:$8 sps:$4 sm:$0xff]  }
  0x17   : > { %3006 = vmatpush3.bf16.msra.mxu1 %v3310_v8  ;;  %v1100_v31 = vor.u32 %v1099_v25, %v1096_v24  ;;  %v1114_v34 = vor.u32 %v1113_v29, %v1110_v28  ;;  %v1139_v49 = vshll.u32 %v2625_v39, 16  ;;  %v1145_v50 = vshll.u32 %v2626_v40, 16  ;;  %v3332_v6 = vld [vmem:[%s3461_s14 + $0x20] ss:$8 sps:$4 sm:$0xff]   ;;  %v3325_v7 = vld [vmem:[%s3874_s1 + $0x150] sm:$0xff]   ;;  %v3326_v8 = vld [vmem:[%s3874_s1 + $0x58] sm:$0xff]  }
  0x18   : > { %3102 = vmatpush3.bf16.msra.mxu0 %v3311_v9  ;;  %3007 = vmatprep.subr.bf16.mxu1 %v3312_v10  ;;  %v1124_v48 = vrot.slane %v1122_v41, 4  ;;  %v1127_v54 = vrot.slane %v1125_v43, 5  ;;  %v1133_v55 = vrot.slane %v1131_v44, 5  ;;  %v1138_v56 = vrot.slane %v1136_v45, 4  ;;  %v2627_v9 = vld [vmem:[%s3461_s14 + $0x28] sm:$0xf] }
  0x19   : > { %3103 = vmatprep.subr.bf16.mxu0 %v3313_v12  ;;  %v1101_v38 = vrot.slane %v1100_v31, 4  ;;  %v1115_v42 = vrot.slane %v1114_v34, 4  ;;  %v1141_v58 = vrot.slane %v1139_v49, 5  ;;  %v1147_v59 = vrot.slane %v1145_v50, 5  ;;  %v2629_v11 = vld [vmem:[%s3461_s14 + $0x30] sm:$0xf] }
  0x1a   : > { %v1128_v60 = vor.u32 %v1127_v54, %v1124_v48  ;;  %v1150_v13 = vshrl.u32 %v2627_v9, 16  ;;  %v1153_v14 = vshll.u32 %v2627_v9, 16  ;;  %v1164_v16 = vshrl.u32 %v2629_v11, 16  ;;  %v3327_v19 = vld [vmem:[%s3874_s1 + $0x158] sm:$0xff]   ;;  %v3328_v20 = vld [vmem:[%s3874_s1 + $0x60] sm:$0xff]  }
  0x1b   : > { %3008 = vmatpush3.bf16.msra.mxu1 %v3312_v10  ;;  %v1106_v47 = vsel %vm3485_vm2, %v1101_v38, %v1105_v32  ;;  %v1120_v51 = vsel %vm3485_vm2, %v1115_v42, %v1119_v35  ;;  %v1142_v61 = vor.u32 %v1141_v58, %v1138_v56  ;;  %v2628_v10 = vld [vmem:[%s3461_s14 + $0x2c] sm:$0x1]  ;;  %v1167_v17 = vshll.u32 %v2629_v11, 16  ;;  %v2631_v29 = vld [vmem:[%s3461_s14 + $0x38] sm:$0xf]  ;;  %v3329_v38 = vld [vmem:[%s3874_s1 + $0x160] sm:$0xff]  }
  0x1c   : > { %3104 = vmatpush3.bf16.msra.mxu0 %v3313_v12  ;;  %3009 = vmatprep.subr.bf16.mxu1 %v3314_v18  ;;  %v2651_v57 = vcombine.low %v1106_v47, %v1120_v51  ;;  %v1129_v62 = vrot.slane %v1128_v60, 4  ;;  %v2630_v12 = vld [vmem:[%s3461_s14 + $0x34] sm:$0x1]  ;;  %v1159_v15 = vshll.u32 %v2628_v10, 16  ;;  %v1152_v21 = vrot.slane %v1150_v13, 4  ;;  %v3330_v47 = vld [vmem:[%s3874_s1 + $0x68] sm:$0xff]  }
  0x1d   : > { %3105 = vmatprep.subr.bf16.mxu0 %v3315_v23  ;;  %v1143_v0 = vrot.slane %v1142_v61, 4  ;;  %v1155_v22 = vrot.slane %v1153_v14, 5  ;;  %v1166_v24 = vrot.slane %v1164_v16, 4  ;;  %v1169_v25 = vrot.slane %v1167_v17, 5  ;;  %v2633_v31 = vld [vmem:[%s3461_s14 + $0x40] sm:$0xf] }
  0x1e   : > { %3109 = vmatprep.mubr.bf16.mxu0 %v2651_v57  ;;  %v1134_v1 = vsel %vm3485_vm2, %v1129_v62, %v1133_v55  ;;  %v2634_v34 = vld [vmem:[%s3461_s14 + $0x44] sm:$0x1]  ;;  %v1178_v35 = vshrl.u32 %v2631_v29, 16  ;;  %v1181_v36 = vshll.u32 %v2631_v29, 16  ;;  %v1192_v40 = vshrl.u32 %v2633_v31, 16  ;;  %v3331_v56 = vld [vmem:[%s3874_s1 + $0x168] sm:$0xff]  }
  0x1f   : > { %3010 = vmatpush3.bf16.msra.mxu1 %v3314_v18  ;;  %v1148_v2 = vsel %vm3485_vm2, %v1143_v0, %v1147_v59  ;;  %v1173_v18 = vshll.u32 %v2630_v12, 16  ;;  %v1156_v28 = vor.u32 %v1155_v22, %v1152_v21  ;;  %v1170_v32 = vor.u32 %v1169_v25, %v1166_v24  ;;  %v352_v54 = vld [vmem:[%s3461_s14] sm:$0xf]  ;;  %v353_v55 = vld [vmem:[%s3461_s14 + $0x4] sm:$0x1]  ;;  %v3333_v57 = vld [vmem:[%s3874_s1 + $0x70] sm:$0xff]  }
  0x20   : > { %3106 = vmatpush3.bf16.msra.mxu0 %v3315_v23  ;;  %3011 = vmatprep.subr.bf16.mxu1 %v3316_v27  ;;  %v2652_v4 = vcombine.low %v1134_v1, %v1148_v2  ;;  %v1161_v23 = vrot.slane %v1159_v15, 5  ;;  %v1195_v41 = vshll.u32 %v2633_v31, 16  ;;  %v1201_v42 = vshll.u32 %v2634_v34, 16  ;;  %v354_v60 = vld [vmem:[%s3461_s14 + $0x8] sm:$0xf]  ;;  %v3334_v13 = vld [vmem:[%s3874_s1 + $0x170] sm:$0xff]  }
  0x21   : > { %3107 = vmatprep.subr.bf16.mxu0 %v3317_v30  ;;  %v1175_v26 = vrot.slane %v1173_v18, 5  ;;  %v1157_v39 = vrot.slane %v1156_v28, 4  ;;  %v1171_v43 = vrot.slane %v1170_v32, 4  ;;  %v1180_v44 = vrot.slane %v1178_v35, 4  ;;  %v355_v61 = vld [vmem:[%s3461_s14 + $0xc] sm:$0x1] }
  0x22   : > { %v1183_v45 = vrot.slane %v1181_v36, 5  ;;  %v1194_v49 = vrot.slane %v1192_v40, 4  ;;  %v1197_v50 = vrot.slane %v1195_v41, 5  ;;  %v1203_v51 = vrot.slane %v1201_v42, 5  ;;  %v2663_v12 = vld [vmem:[%s3461_s14 + $0x8] sm:$0xe] }
  0x23   : > { %3012 = vmatpush3.bf16.msra.mxu1 %v3316_v27  ;;  %v3335_v27 = vld [vmem:[%s3461_s14 + $0x30] ss:$8 sps:$4 sm:$0xff]   ;;  %v1162_v48 = vsel %vm3485_vm2, %v1157_v39, %v1161_v23  ;;  %v372_v62 = vshrl.u32 %v352_v54, 16  ;;  %v381_v1 = vshll.u32 %v353_v55, 16  ;;  %v386_v2 = vshrl.u32 %v354_v60, 16 }
  0x24   : > { %3108 = vmatpush3.bf16.msra.mxu0 %v3317_v30  ;;  %3021 = vmatprep.subr.bf16.mxu1 %v3319_v46  ;;  %v2632_v30 = vld [vmem:[%s3461_s14 + $0x3c] sm:$0x1]  ;;  %v1198_v59 = vor.u32 %v1197_v50, %v1194_v49  ;;  %v2679_v21 = vrot.slane %v2663_v12, 9  ;;  %v2666_v24 = vld [vmem:[%s3461_s14 + $0x14] sm:$0x1]  ;;  %v3338_v50 = vld [vmem:[%s3874_s1 + $0x80] sm:$0xff]  }
  0x25   : > { %3117 = vmatprep.subr.bf16.mxu0 %v3320_v52  ;;  %v1187_v37 = vshll.u32 %v2632_v30, 16  ;;  %v383_v9 = vrot.slane %v381_v1, 5  ;;  %v388_v10 = vrot.slane %v386_v2, 4  ;;  %v3336_v15 = vld [vmem:[%s3874_s1 + $0x78] sm:$0xff]   ;;  %v1413_v28 = vrot.slane %v2666_v24, 5  ;;  %v3342_v12 = vld [vmem:[%s3874_s1 + $0x90] sm:$0xff]  }
  0x26   : > { %3014 = vmatmul.mubr.bf16.vlgmr.msra.gmra.mrb[0].mxu1 %v3321_v53  ;;  %v1184_v53 = vor.u32 %v1183_v45, %v1180_v44  ;;  %v356_v29 = vld [vmem:[%s3461_s14 + $0x10] sm:$0xf]  ;;  %v357_v32 = vld [vmem:[%s3461_s14 + $0x14] sm:$0x1]  ;;  %v358_v34 = vld [vmem:[%s3461_s14 + $0x18] sm:$0xf] }
  0x27   : > { %3022 = vmatpush3.bf16.msra.mxu1 %v3319_v46  ;;  %3110 = vmatmul.mubr.bf16.vlgmr.msra.gmra.mrb[0].mxu0 %v2652_v4  ;;  %v1189_v46 = vrot.slane %v1187_v37, 5  ;;  %v1199_v4 = vrot.slane %v1198_v59, 4  ;;  %v400_v35 = vshrl.u32 %v356_v29, 16  ;;  %v3337_v36 = vld [vmem:[%s3874_s1 + $0x178] sm:$0xff]   ;;  %v403_v40 = vshll.u32 %v356_v29, 16 }
  0x28   : > { %3023 = vmatprep.subr.bf16.mxu1 %v3322_v63  ;;  %3118 = vmatpush3.bf16.msra.mxu0 %v3320_v52  ;;  %v1176_v52 = vsel %vm3485_vm2, %v1171_v43, %v1175_v26  ;;  %v1185_v0 = vrot.slane %v1184_v53, 4  ;;  %v359_v39 = vld [vmem:[%s3461_s14 + $0x1c] sm:$0x1]  ;;  %v409_v41 = vshll.u32 %v357_v32, 16  ;;  %v2667_v42 = vld [vmem:[%s3461_s14 + $0x18] sm:$0xe] }
  0x29   : > { %3119 = vmatprep.subr.bf16.mxu0 %v3323_v3  ;;  %3017 = vmatprep.mubr.bf16.mxu1 %v3332_v6  ;;  %v2653_v58 = vcombine.low %v1162_v48, %v1176_v52  ;;  %v1204_v14 = vsel %vm3485_vm2, %v1199_v4, %v1203_v51  ;;  %v402_v45 = vrot.slane %v400_v35, 4  ;;  %v2669_v48 = vld [vmem:[%s3461_s14 + $0x20] sm:$0xe]  ;;  %v405_v51 = vrot.slane %v403_v40, 5  ;;  %v2671_v29 = vld [vmem:[%s3461_s14 + $0x28] sm:$0xe] }
  0x2a   : > { %v411_v52 = vrot.slane %v409_v41, 5  ;;  %v417_v53 = vshll.u32 %v358_v34, 16  ;;  %v2672_v32 = vld [vmem:[%s3461_s14 + $0x2c] sm:$0x1]  ;;  %v3344_v35 = vld [vmem:[%s3874_s1 + $0x98] sm:$0xff]  }
  0x2b   : > { %3024 = vmatpush3.bf16.msra.mxu1 %v3322_v63  ;;  %v375_v63 = vshll.u32 %v352_v54, 16  ;;  %3113 = vmatprep.mubr.bf16.mxu0 %v2653_v58  ;;  %v2670_v54 = vld [vmem:[%s3461_s14 + $0x24] sm:$0x1]  ;;  %v406_v59 = vor.u32 %v405_v51, %v402_v45  ;;  %v2806_v33 = vld [vmem:[%s3461_s14 + $0x3c] sm:$0x1] }
  0x2c   : > { %3025 = vmatprep.subr.bf16.mxu1 %v3324_v5  ;;  %3120 = vmatpush3.bf16.msra.mxu0 %v3323_v3  ;;  %v389_v3 = vshll.u32 %v354_v60, 16  ;;  %v419_v60 = vrot.slane %v417_v53, 5  ;;  %v3347_v45 = vld [vmem:[%s3874_s1 + $0x1a0] sm:$0xff]   ;;  %v367_v53 = vld [vmem:[%s3461_s14 + $0x3c] sm:$0x1] }
  0x2d   : > { %3121 = vmatprep.subr.bf16.mxu0 %v3325_v7  ;;  %v377_v6 = vrot.slane %v375_v63, 5  ;;  %v3339_v63 = vld [vmem:[%s3874_s1 + $0x180] sm:$0xff]   ;;  %v407_v1 = vrot.slane %v406_v59, 4  ;;  %v2675_v59 = vld [vmem:[%s3461_s14 + $0x38] sm:$0xe] }
  0x2e   : > { %3018 = vmatmul.mubr.bf16.gmra.mrb[4].mxu1 %v3335_v27  ;;  %v391_v11 = vrot.slane %v389_v3, 5 }
  0x2f   : > { %3026 = vmatpush3.bf16.msra.mxu1 %v3324_v5  ;;  %v374_v5 = vrot.slane %v372_v62, 4  ;;  %v1421_v62 = vrot.slane %v2670_v54, 5 }
  0x30   : > { %3027 = vmatprep.subr.bf16.mxu1 %v3326_v8  ;;  %3122 = vmatpush3.bf16.msra.mxu0 %v3325_v7  ;;  %v395_v7 = vshll.u32 %v355_v61, 16  ;;  %v392_v23 = vor.u32 %v391_v11, %v388_v10  ;;  %v2682_v61 = vrot.slane %v2669_v48, 9  ;;  %v3340_v11 = vld [vmem:[%s3874_s1 + $0x88] sm:$0xff]   ;;  %v364_v48 = vld [vmem:[%s3461_s14 + $0x30] sm:$0xf] }
  0x31   : > { %3123 = vmatprep.subr.bf16.mxu0 %v3327_v19  ;;  %v378_v16 = vor.u32 %v377_v6, %v374_v5  ;;  %v412_v5 = vsel %vm3485_vm2, %v407_v1, %v411_v52  ;;  %v366_v52 = vld [vmem:[%s3461_s14 + $0x38] sm:$0xf]  ;;  %v456_v54 = vshrl.u32 %v364_v48, 16  ;;  %v2677_v1 = vld [vmem:[%s3461_s14 + $0x40] sm:$0xe] }
  0x32   : > { %v397_v17 = vrot.slane %v395_v7, 5  ;;  %v393_v30 = vrot.slane %v392_v23, 4  ;;  %v1422_v4 = vsel %vm3572_vm5, %v2682_v61, %v1421_v62 }
  0x33   : > { %3028 = vmatpush3.bf16.msra.mxu1 %v3326_v8  ;;  %v1190_v8 = vsel %vm3485_vm2, %v1185_v0, %v1189_v46  ;;  %v379_v27 = vrot.slane %v378_v16, 4  ;;  %v414_v46 = vshrl.u32 %v358_v34, 16  ;;  %v362_v16 = vld [vmem:[%s3461_s14 + $0x28] sm:$0xf]  ;;  %v2673_v34 = vld [vmem:[%s3461_s14 + $0x30] sm:$0xe] }
  0x34   : > { %3029 = vmatprep.subr.bf16.mxu1 %v3328_v20  ;;  %3124 = vmatpush3.bf16.msra.mxu0 %v3327_v19  ;;  %v2664_v19 = vld [vmem:[%s3461_s14 + $0xc] sm:$0x1]  ;;  %v2654_v22 = vcombine.low %v1190_v8, %v1204_v14  ;;  %v398_v43 = vsel %vm3485_vm2, %v393_v30, %v397_v17  ;;  %v360_v14 = vld [vmem:[%s3461_s14 + $0x20] sm:$0xf]  ;;  %v445_v23 = vshll.u32 %v362_v16, 16  ;;  %v2684_v40 = vrot.slane %v2673_v34, 9 }
  0x35   : > { %3125 = vmatprep.subr.bf16.mxu0 %v3329_v38  ;;  %v1409_v25 = vrot.slane %v2664_v19, 5  ;;  %v384_v37 = vsel %vm3485_vm2, %v379_v27, %v383_v9  ;;  %v416_v55 = vrot.slane %v414_v46, 4  ;;  %v3341_v9 = vld [vmem:[%s3874_s1 + $0x188] sm:$0xff]   ;;  %v428_v19 = vshrl.u32 %v360_v14, 16 }
  0x36   : > { %3114 = vmatmul.mubr.bf16.gmra.mrb[4].mxu0 %v2654_v22  ;;  %v2535_v49 = vcombine.low %v384_v37, %v398_v43  ;;  %v363_v17 = vld [vmem:[%s3461_s14 + $0x2c] sm:$0x1]  ;;  %v442_v22 = vshrl.u32 %v362_v16, 16  ;;  %v2674_v37 = vld [vmem:[%s3461_s14 + $0x34] sm:$0x1]  ;;  %v458_v62 = vrot.slane %v456_v54, 4 }
  0x37   : > { %3030 = vmatpush3.bf16.msra.mxu1 %v3328_v20  ;;  %v2665_v20 = vld [vmem:[%s3461_s14 + $0x10] sm:$0xe]  ;;  %v1410_v31 = vsel %vm3572_vm5, %v2679_v21, %v1409_v25  ;;  %v420_v2 = vor.u32 %v419_v60, %v416_v55  ;;  %v451_v24 = vshll.u32 %v363_v17, 16  ;;  %v3345_v25 = vld [vmem:[%s3874_s1 + $0x198] sm:$0xff]   ;;  %v1429_v43 = vrot.slane %v2674_v37, 5 }
  0x38   : > { %3031 = vmatprep.subr.bf16.mxu1 %v3330_v47  ;;  %3126 = vmatpush3.bf16.msra.mxu0 %v3329_v38  ;;  %v2680_v26 = vrot.slane %v2665_v20, 9  ;;  %v431_v20 = vshll.u32 %v360_v14, 16  ;;  %v2676_v60 = vld [vmem:[%s3461_s14 + $0x3c] sm:$0x1] }
  0x39   : > { %3127 = vmatprep.subr.bf16.mxu0 %v3331_v56  ;;  %3037 = vmatprep.mubr.bf16.mxu1 %v2535_v49  ;;  %v421_v6 = vrot.slane %v420_v2, 4  ;;  %v365_v49 = vld [vmem:[%s3461_s14 + $0x34] sm:$0x1]  ;;  %v1430_v51 = vsel %vm3572_vm5, %v2684_v40, %v1429_v43  ;;  %v3349_v2 = vld [vmem:[%s3874_s1 + $0x1a8] sm:$0xff]   ;;  %v3353_v37 = vld [vmem:[%s3874_s1 + $0x1b8] sm:$0xff]  }
  0x3a   : > { %v1414_v38 = vsel %vm3572_vm5, %v2680_v26, %v1413_v28  ;;  %v430_v26 = vrot.slane %v428_v19, 4  ;;  %v433_v27 = vrot.slane %v431_v20, 5  ;;  %v444_v28 = vrot.slane %v442_v22, 4  ;;  %v653_v20 = vld [vmem:[%s3461_s14] sm:$0xe] }
  0x3b   : > { %3032 = vmatpush3.bf16.msra.mxu1 %v3330_v47  ;;  %v2703_v44 = vcombine.low %v1410_v31, %v1414_v38  ;;  %v2668_v47 = vld [vmem:[%s3461_s14 + $0x1c] sm:$0x1]  ;;  %v447_v31 = vrot.slane %v445_v23, 5  ;;  %v2683_v38 = vrot.slane %v2671_v29, 9  ;;  %v654_v23 = vld [vmem:[%s3461_s14 + $0x4] sm:$0x1] }
  0x3c   : > { %3033 = vmatprep.subr.bf16.mxu1 %v3333_v57  ;;  %3128 = vmatpush3.bf16.msra.mxu0 %v3331_v56  ;;  %v423_v56 = vshll.u32 %v359_v39, 16  ;;  %v1417_v58 = vrot.slane %v2668_v47, 5  ;;  %v1425_v39 = vrot.slane %v2672_v32, 5  ;;  %v656_v29 = vld [vmem:[%s3461_s14 + $0xc] sm:$0x1]  ;;  %v3350_v32 = vld [vmem:[%s3874_s1 + $0xb0] sm:$0xff]  }
  0x3d   : > { %3129 = vmatprep.subr.bf16.mxu0 %v3334_v13  ;;  %3133 = vmatprep.mubr.bf16.mxu0 %v2703_v44  ;;  %v448_v41 = vor.u32 %v447_v31, %v444_v28  ;;  %v3346_v44 = vld [vmem:[%s3874_s1 + $0xa0] sm:$0xff]   ;;  %v657_v43 = vld [vmem:[%s3461_s14 + $0x10] sm:$0xe] }
  0x3e   : > { %v425_v3 = vrot.slane %v423_v56, 5  ;;  %v1426_v47 = vsel %vm3572_vm5, %v2683_v38, %v1425_v39  ;;  %v3355_v39 = vld [vmem:[%s3461_s14 + $0x10] ss:$8 sps:$4 sm:$0xff]  }
  0x3f   : > { %3034 = vmatpush3.bf16.msra.mxu1 %v3333_v57  ;;  %v2681_v57 = vrot.slane %v2667_v42, 9  ;;  %v453_v42 = vrot.slane %v451_v24, 5  ;;  %v2705_v56 = vcombine.low %v1426_v47, %v1430_v51  ;;  %v655_v24 = vld [vmem:[%s3461_s14 + $0x8] sm:$0xe]  ;;  %v660_v47 = vld [vmem:[%s3461_s14 + $0x1c] sm:$0x1] }
  0x40   : > { %3035 = vmatprep.subr.bf16.mxu1 %v3336_v15  ;;  %3130 = vmatpush3.bf16.msra.mxu0 %v3334_v13  ;;  %v426_v8 = vsel %vm3485_vm2, %v421_v6, %v425_v3  ;;  %v3343_v13 = vld [vmem:[%s3874_s1 + $0x190] sm:$0xff]   ;;  %v479_v6 = vshll.u32 %v367_v53, 16  ;;  %v2548_v31 = vrot.slane %v655_v24, 9  ;;  %v702_v51 = vrot.slane %v660_v47, 5  ;;  %v3354_v53 = vld [vmem:[%s3874_s1 + $0xc0] sm:$0xff]  }
  0x41   : > { %v1418_v0 = vsel %vm3572_vm5, %v2681_v57, %v1417_v58  ;;  %3131 = vmatprep.subr.bf16.mxu0 %v3337_v36  ;;  %v2536_v10 = vcombine.low %v412_v5, %v426_v8  ;;  %v459_v57 = vshll.u32 %v364_v48, 16  ;;  %v465_v58 = vshll.u32 %v365_v49, 16  ;;  %v2755_v47 = vld [vmem:[%s3461_s14 + $0x20] sm:$0xf] }
  0x42   : > { %v2704_v7 = vcombine.low %v1418_v0, %v1422_v4  ;;  %v473_v0 = vshll.u32 %v366_v52, 16  ;;  %v481_v14 = vrot.slane %v479_v6, 5  ;;  %v2549_v48 = vrot.slane %v657_v43, 9  ;;  %v3363_v6 = vld [vmem:[%s3874_s1 + $0x1d8] sm:$0xff]  }
  0x43   : > { %3036 = vmatpush3.bf16.msra.mxu1 %v3336_v15  ;;  %v361_v15 = vld [vmem:[%s3461_s14 + $0x24] sm:$0x1]  ;;  %v461_v4 = vrot.slane %v459_v57, 5  ;;  %v467_v5 = vrot.slane %v465_v58, 5  ;;  %v3359_v58 = vld [vmem:[%s3874_s1 + $0x1c8] sm:$0xff]  }
  0x44   : > { %3045 = vmatprep.subr.bf16.mxu1 %v3338_v50  ;;  %3132 = vmatpush3.bf16.msra.mxu0 %v3337_v36  ;;  %v437_v21 = vshll.u32 %v361_v15, 16  ;;  %v434_v36 = vor.u32 %v433_v27, %v430_v26  ;;  %v2686_v15 = vrot.slane %v2677_v1, 9  ;;  %v3351_v26 = vld [vmem:[%s3874_s1 + $0x1b0] sm:$0xff]   ;;  %v664_v1 = vld [vmem:[%s3461_s14 + $0x2c] sm:$0x1] }
  0x45   : > { %3141 = vmatprep.subr.bf16.mxu0 %v3339_v63 }
  0x46   : > { %3038 = vmatmul.mubr.bf16.vlgmr.msra.gmra.mrb[0].mxu1 %v2536_v10  ;;  %v439_v30 = vrot.slane %v437_v21, 5  ;;  %v435_v46 = vrot.slane %v434_v36, 4  ;;  %v2685_v10 = vrot.slane %v2675_v59, 9  ;;  %v3358_v59 = vld [vmem:[%s3874_s1 + $0xc8] sm:$0xff]  }
  0x47   : > { %3134 = vmatmul.mubr.bf16.vlgmr.msra.gmra.mrb[0].mxu0 %v2704_v7  ;;  %3046 = vmatpush3.bf16.msra.mxu1 %v3338_v50  ;;  %v449_v50 = vrot.slane %v448_v41, 4  ;;  %v2678_v7 = vld [vmem:[%s3461_s14 + $0x44] sm:$0x1]  ;;  %v3352_v41 = vld [vmem:[%s3874_s1 + $0xb8] sm:$0xff]  }
  0x48   : > { %3142 = vmatpush3.bf16.msra.mxu0 %v3339_v63  ;;  %3047 = vmatprep.subr.bf16.mxu1 %v3340_v11  ;;  %v440_v55 = vsel %vm3485_vm2, %v435_v46, %v439_v30  ;;  %v470_v63 = vshrl.u32 %v366_v52, 16  ;;  %v1437_v16 = vrot.slane %v2678_v7, 5  ;;  %v690_v30 = vrot.slane %v654_v23, 5  ;;  %v659_v46 = vld [vmem:[%s3461_s14 + $0x18] sm:$0xe]  ;;  %v3356_v52 = vld [vmem:[%s3874_s1 + $0x1c0] sm:$0xff]  }
  0x49   : > { %3143 = vmatprep.subr.bf16.mxu0 %v3341_v9  ;;  %v454_v61 = vsel %vm3485_vm2, %v449_v50, %v453_v42  ;;  %3137 = vmatprep.mubr.bf16.mxu0 %v2705_v56  ;;  %v2550_v50 = vrot.slane %v659_v46, 9  ;;  %v3357_v56 = vld [vmem:[%s3461_s14 + $0x20] ss:$8 sps:$4 sm:$0xff]  }
  0x4a   : > { %v2537_v3 = vcombine.low %v440_v55, %v454_v61  ;;  %v472_v8 = vrot.slane %v470_v63, 4  ;;  %v1438_v22 = vsel %vm3572_vm5, %v2686_v15, %v1437_v16  ;;  %v3361_v61 = vld [vmem:[%s3874_s1 + $0x1d0] sm:$0xff]   ;;  %v662_v63 = vld [vmem:[%s3461_s14 + $0x24] sm:$0x1]  ;;  %v3370_v23 = vld [vmem:[%s3461_s14 + $0x40] ss:$8 sps:$4 sm:$0xff]  }
  0x4b   : > { %3048 = vmatpush3.bf16.msra.mxu1 %v3340_v11  ;;  %v1433_v11 = vrot.slane %v2676_v60, 5  ;;  %v703_v55 = vsel %vm3572_vm5, %v2550_v50, %v702_v51  ;;  %v3360_v60 = vld [vmem:[%s3874_s1 + $0xd0] sm:$0xff]   ;;  %v2756_v50 = vld [vmem:[%s3461_s14 + $0x24] sm:$0x1]  ;;  %v2757_v51 = vld [vmem:[%s3461_s14 + $0x28] sm:$0xf] }
  0x4c   : > { %3144 = vmatpush3.bf16.msra.mxu0 %v3341_v9  ;;  %3049 = vmatprep.subr.bf16.mxu1 %v3342_v12  ;;  %v475_v9 = vrot.slane %v473_v0, 5  ;;  %v663_v0 = vld [vmem:[%s3461_s14 + $0x28] sm:$0xe] }
  0x4d   : > { %3145 = vmatprep.subr.bf16.mxu0 %v3343_v13  ;;  %3041 = vmatprep.mubr.bf16.mxu1 %v2537_v3  ;;  %v1434_v19 = vsel %vm3572_vm5, %v2685_v10, %v1433_v11  ;;  %v706_v3 = vrot.slane %v662_v63, 5  ;;  %v666_v10 = vld [vmem:[%s3461_s14 + $0x34] sm:$0x1] }
  0x4e   : > { %v476_v17 = vor.u32 %v475_v9, %v472_v8  ;;  %v2706_v28 = vcombine.low %v1434_v19, %v1438_v22  ;;  %v3368_v8 = vld [vmem:[%s3461_s14 + $0x30] ss:$8 sps:$4 sm:$0xff]   ;;  %v714_v15 = vrot.slane %v666_v10, 5 }
  0x4f   : > { %3050 = vmatpush3.bf16.msra.mxu1 %v3342_v12  ;;  %v3348_v12 = vld [vmem:[%s3874_s1 + $0xa8] sm:$0xff]   ;;  %v665_v9 = vld [vmem:[%s3461_s14 + $0x30] sm:$0xe] }
  0x50   : > { %3146 = vmatpush3.bf16.msra.mxu0 %v3343_v13  ;;  %3051 = vmatprep.subr.bf16.mxu1 %v3344_v35  ;;  %v462_v13 = vor.u32 %v461_v4, %v458_v62  ;;  %v477_v27 = vrot.slane %v476_v17, 4  ;;  %v661_v62 = vld [vmem:[%s3461_s14 + $0x20] sm:$0xe]  ;;  %v2552_v4 = vrot.slane %v663_v0, 9 }
  0x51   : > { %3147 = vmatprep.subr.bf16.mxu0 %v3345_v25  ;;  %3138 = vmatmul.mubr.bf16.gmra.mrb[4].mxu0 %v2706_v28  ;;  %v3374_v28 = vld [vmem:[%s3461_s14 + $0x8] ss:$8 sps:$4 sm:$0xff]  }
  0x52   : > { %v463_v21 = vrot.slane %v462_v13, 4  ;;  %v482_v36 = vsel %vm3485_vm2, %v477_v27, %v481_v14  ;;  %3157 = vmatprep.mubr.bf16.mxu0 %v3355_v39  ;;  %v668_v13 = vld [vmem:[%s3461_s14 + $0x3c] sm:$0x1]  ;;  %v2553_v14 = vrot.slane %v665_v9, 9  ;;  %v3367_v27 = vld [vmem:[%s3874_s1 + $0x1e8] sm:$0xff]  }
  0x53   : > { %3052 = vmatpush3.bf16.msra.mxu1 %v3344_v35  ;;  %v694_v35 = vrot.slane %v656_v29, 5  ;;  %v718_v19 = vrot.slane %v668_v13, 5  ;;  %v2751_v29 = vld [vmem:[%s3461_s14 + $0x10] sm:$0xf]  ;;  %v2760_v13 = vld [vmem:[%s3461_s14 + $0x34] sm:$0x1] }
  0x54   : > { %3148 = vmatpush3.bf16.msra.mxu0 %v3345_v25  ;;  %3053 = vmatprep.subr.bf16.mxu1 %v3346_v44  ;;  %v2547_v25 = vrot.slane %v653_v20, 9  ;;  %v468_v34 = vsel %vm3485_vm2, %v463_v21, %v467_v5  ;;  %v710_v5 = vrot.slane %v664_v1, 5  ;;  %v3362_v20 = vld [vmem:[%s3874_s1 + $0xd8] sm:$0xff]   ;;  %v715_v21 = vsel %vm3572_vm5, %v2553_v14, %v714_v15 }
  0x55   : > { %3149 = vmatprep.subr.bf16.mxu0 %v3347_v45  ;;  %v2538_v40 = vcombine.low %v468_v34, %v482_v36  ;;  %v695_v42 = vsel %vm3572_vm5, %v2548_v31, %v694_v35  ;;  %v2753_v31 = vld [vmem:[%s3461_s14 + $0x18] sm:$0xf]  ;;  %v1813_v34 = vshrl.u32 %v2751_v29, 16  ;;  %v1816_v35 = vshll.u32 %v2751_v29, 16 }
  0x56   : > { %v691_v38 = vsel %vm3572_vm5, %v2547_v25, %v690_v30  ;;  %v711_v11 = vsel %vm3572_vm5, %v2552_v4, %v710_v5  ;;  %v3365_v25 = vld [vmem:[%s3874_s1 + $0x1e0] sm:$0xff]   ;;  %v2752_v30 = vld [vmem:[%s3461_s14 + $0x14] sm:$0x1]  ;;  %v3372_v1 = vld [vmem:[%s3874_s1 + $0xf8] sm:$0xff]  }
  0x57   : > { %3054 = vmatpush3.bf16.msra.mxu1 %v3346_v44  ;;  %v2571_v44 = vcombine.low %v691_v38, %v695_v42  ;;  %v1822_v36 = vshll.u32 %v2752_v30, 16  ;;  %v1830_v38 = vshll.u32 %v2753_v31, 16  ;;  %v1818_v42 = vrot.slane %v1816_v35, 5  ;;  %v2761_v14 = vld [vmem:[%s3461_s14 + $0x38] sm:$0xf] }
  0x58   : > { %3150 = vmatpush3.bf16.msra.mxu0 %v3347_v45  ;;  %3055 = vmatprep.subr.bf16.mxu1 %v3348_v12  ;;  %v658_v45 = vld [vmem:[%s3461_s14 + $0x14] sm:$0x1]  ;;  %v3375_v30 = vld [vmem:[%s3461_s14 + $0x18] ss:$8 sps:$4 sm:$0xff]  }
  0x59   : > { %3151 = vmatprep.subr.bf16.mxu0 %v3349_v2  ;;  %3042 = vmatmul.mubr.bf16.gmra.mrb[4].mxu1 %v2538_v40  ;;  %v698_v49 = vrot.slane %v658_v45, 5  ;;  %v3366_v40 = vld [vmem:[%s3874_s1 + $0xe8] sm:$0xff]   ;;  %v1824_v43 = vrot.slane %v1822_v36, 5  ;;  %v1832_v45 = vrot.slane %v1830_v38, 5  ;;  %v2763_v38 = vld [vmem:[%s3461_s14 + $0x40] sm:$0xf] }
  0x5a   : > { %3061 = vmatprep.mubr.bf16.mxu1 %v2571_v44 }
  0x5b   : > { %3056 = vmatpush3.bf16.msra.mxu1 %v3348_v12  ;;  %v699_v54 = vsel %vm3572_vm5, %v2549_v48, %v698_v49  ;;  %v667_v12 = vld [vmem:[%s3461_s14 + $0x38] sm:$0xe]  ;;  %v3369_v48 = vld [vmem:[%s3874_s1 + $0xf0] sm:$0xff]  }
  0x5c   : > { %3152 = vmatpush3.bf16.msra.mxu0 %v3349_v2  ;;  %3057 = vmatprep.subr.bf16.mxu1 %v3350_v32  ;;  %v2572_v57 = vcombine.low %v699_v54, %v703_v55  ;;  %v2551_v2 = vrot.slane %v661_v62, 9  ;;  %v2554_v17 = vrot.slane %v667_v12, 9  ;;  %v1841_v55 = vshrl.u32 %v2755_v47, 16  ;;  %v2759_v12 = vld [vmem:[%s3461_s14 + $0x30] sm:$0xf] }
  0x5d   : > { %3153 = vmatprep.subr.bf16.mxu0 %v3351_v26 }
  0x5e   : > { %v707_v7 = vsel %vm3572_vm5, %v2551_v2, %v706_v3  ;;  %v719_v22 = vsel %vm3572_vm5, %v2554_v17, %v718_v19  ;;  %v1843_v63 = vrot.slane %v1841_v55, 4  ;;  %v3373_v2 = vld [vmem:[%s3874_s1 + $0x1f8] sm:$0xff]   ;;  %v1869_v17 = vshrl.u32 %v2759_v12, 16 }
  0x5f   : > { %3058 = vmatpush3.bf16.msra.mxu1 %v3350_v32  ;;  %v2573_v16 = vcombine.low %v707_v7, %v711_v11  ;;  %v2574_v24 = vcombine.low %v715_v21, %v719_v22  ;;  %v2754_v32 = vld [vmem:[%s3461_s14 + $0x1c] sm:$0x1]  ;;  %v1872_v19 = vshll.u32 %v2759_v12, 16  ;;  %v1883_v22 = vshrl.u32 %v2761_v14, 16 }
  0x60   : > { %3154 = vmatpush3.bf16.msra.mxu0 %v3351_v26  ;;  %3059 = vmatprep.subr.bf16.mxu1 %v3352_v41  ;;  %v3364_v26 = vld [vmem:[%s3874_s1 + $0xe0] sm:$0xff]   ;;  %v1836_v39 = vshll.u32 %v2754_v32, 16 }
  0x61   : > { %3155 = vmatprep.subr.bf16.mxu0 %v3353_v37  ;;  %v1885_v32 = vrot.slane %v1883_v22, 4 }
  0x62   : > { %v1838_v46 = vrot.slane %v1836_v39, 5  ;;  %v2764_v39 = vld [vmem:[%s3461_s14 + $0x44] sm:$0x1] }
  0x63   : > { %3060 = vmatpush3.bf16.msra.mxu1 %v3352_v41  ;;  %v1815_v41 = vrot.slane %v1813_v34, 4 }
  0x64   : > { %3156 = vmatpush3.bf16.msra.mxu0 %v3353_v37  ;;  %3069 = vmatprep.subr.bf16.mxu1 %v3354_v53  ;;  %v1827_v37 = vshrl.u32 %v2753_v31, 16 }
  0x65   : > { %3165 = vmatprep.subr.bf16.mxu0 %v3356_v52  ;;  %v1819_v49 = vor.u32 %v1818_v42, %v1815_v41  ;;  %v3377_v41 = vld [vmem:[%s3874_s1 + $0x208] sm:$0xff]  }
  0x66   : > { %3062 = vmatmul.mubr.bf16.vlgmr.msra.gmra.mrb[0].mxu1 %v2572_v57  ;;  %v1829_v44 = vrot.slane %v1827_v37, 4  ;;  %v1850_v57 = vshll.u32 %v2756_v50, 16  ;;  %v3378_v42 = vld [vmem:[%s3461_s14 + $0x28] ss:$8 sps:$4 sm:$0xff]  }
  0x67   : > { %3158 = vmatmul.mubr.bf16.vlgmr.msra.gmra.mrb[0].mxu0 %v3357_v56  ;;  %3070 = vmatpush3.bf16.msra.mxu1 %v3354_v53  ;;  %v3371_v53 = vld [vmem:[%s3874_s1 + $0x1f0] sm:$0xff]   ;;  %v1844_v56 = vshll.u32 %v2755_v47, 16  ;;  %v1906_v47 = vshll.u32 %v2764_v39, 16  ;;  %v2808_v39 = vld [vmem:[%s3461_s14 + $0x44] sm:$0x1] }
  0x68   : > { %3166 = vmatpush3.bf16.msra.mxu0 %v3356_v52  ;;  %3071 = vmatprep.subr.bf16.mxu1 %v3358_v59  ;;  %v2758_v52 = vld [vmem:[%s3461_s14 + $0x2c] sm:$0x1]  ;;  %v1833_v54 = vor.u32 %v1832_v45, %v1829_v44  ;;  %v1897_v45 = vshrl.u32 %v2763_v38, 16 }
  0x69   : > { %3167 = vmatprep.subr.bf16.mxu0 %v3359_v58  ;;  %3161 = vmatprep.mubr.bf16.mxu0 %v3368_v8  ;;  %v1846_v0 = vrot.slane %v1844_v56, 5  ;;  %v1852_v8 = vrot.slane %v1850_v57, 5  ;;  %v2766_v44 = vld [vmem:[%s3461_s14 + $0x4c] sm:$0x1]  ;;  %v1908_v55 = vrot.slane %v1906_v47, 5  ;;  %v2152_v47 = vrot.slane %v2808_v39, 5 }
  0x6a   : > { %3065 = vmatprep.mubr.bf16.mxu1 %v2573_v16  ;;  %v1834_v62 = vrot.slane %v1833_v54, 4  ;;  %v2762_v16 = vld [vmem:[%s3461_s14 + $0x3c] sm:$0x1] }
  0x6b   : > { %3072 = vmatpush3.bf16.msra.mxu1 %v3358_v59  ;;  %v1855_v59 = vshrl.u32 %v2757_v51, 16  ;;  %v1847_v7 = vor.u32 %v1846_v0, %v1843_v63 }
  0x6c   : > { %3168 = vmatpush3.bf16.msra.mxu0 %v3359_v58  ;;  %3073 = vmatprep.subr.bf16.mxu1 %v3360_v60  ;;  %v1820_v58 = vrot.slane %v1819_v49, 4 }
  0x6d   : > { %3169 = vmatprep.subr.bf16.mxu0 %v3361_v61  ;;  %v1857_v4 = vrot.slane %v1855_v59, 4  ;;  %v1848_v15 = vrot.slane %v1847_v7, 4  ;;  %v2797_v7 = vld [vmem:[%s3461_s14 + $0x18] sm:$0xe] }
  0x6e   : > { %3066 = vmatmul.mubr.bf16.gmra.mrb[4].mxu1 %v2574_v24  ;;  %v1825_v3 = vsel %vm3485_vm2, %v1820_v58, %v1824_v43  ;;  %v1892_v24 = vshll.u32 %v2762_v16, 16 }
  0x6f   : > { %3074 = vmatpush3.bf16.msra.mxu1 %v3360_v60  ;;  %3162 = vmatmul.mubr.bf16.gmra.mrb[4].mxu0 %v3370_v23  ;;  %v1858_v60 = vshll.u32 %v2757_v51, 16  ;;  %v1886_v23 = vshll.u32 %v2761_v14, 16  ;;  %v1920_v51 = vshll.u32 %v2766_v44, 16  ;;  %v2803_v14 = vld [vmem:[%s3461_s14 + $0x30] sm:$0xe] }
  0x70   : > { %3170 = vmatpush3.bf16.msra.mxu0 %v3361_v61  ;;  %3075 = vmatprep.subr.bf16.mxu1 %v3362_v20  ;;  %v1864_v61 = vshll.u32 %v2758_v52, 16  ;;  %v1894_v35 = vrot.slane %v1892_v24, 5 }
  0x71   : > { %3171 = vmatprep.subr.bf16.mxu0 %v3363_v6  ;;  %3085 = vmatprep.mubr.bf16.mxu1 %v3374_v28  ;;  %v1860_v5 = vrot.slane %v1858_v60, 5  ;;  %v1874_v28 = vrot.slane %v1872_v19, 5  ;;  %v1888_v34 = vrot.slane %v1886_v23, 5  ;;  %v1922_v59 = vrot.slane %v1920_v51, 5  ;;  %v3380_v60 = vld [vmem:[%s3874_s1 + $0x210] sm:$0xff]  }
  0x72   : > { %v1866_v9 = vrot.slane %v1864_v61, 5  ;;  %v2805_v19 = vld [vmem:[%s3461_s14 + $0x38] sm:$0xe] }
  0x73   : > { %3076 = vmatpush3.bf16.msra.mxu1 %v3362_v20  ;;  %v1861_v11 = vor.u32 %v1860_v5, %v1857_v4  ;;  %v1878_v20 = vshll.u32 %v2760_v13, 16  ;;  %v1889_v43 = vor.u32 %v1888_v34, %v1885_v32  ;;  %v2795_v4 = vld [vmem:[%s3461_s14 + $0x10] sm:$0xe]  ;;  %v2812_v13 = vrot.slane %v2797_v7, 9  ;;  %v2799_v34 = vld [vmem:[%s3461_s14 + $0x20] sm:$0xe] }
  0x74   : > { %3172 = vmatpush3.bf16.msra.mxu0 %v3363_v6  ;;  %3077 = vmatprep.subr.bf16.mxu1 %v3364_v26  ;;  %v1839_v6 = vsel %vm3485_vm2, %v1834_v62, %v1838_v46  ;;  %v1900_v46 = vshll.u32 %v2763_v38, 16  ;;  %v2816_v23 = vrot.slane %v2805_v19, 9  ;;  %v3384_v32 = vld [vmem:[%s3874_s1 + $0x230] sm:$0xff]   ;;  %v2807_v38 = vld [vmem:[%s3461_s14 + $0x40] sm:$0xe] }
  0x75   : > { %3173 = vmatprep.subr.bf16.mxu0 %v3365_v25  ;;  %v2783_v10 = vcombine.low %v1825_v3, %v1839_v6  ;;  %v1862_v21 = vrot.slane %v1861_v11, 4  ;;  %v1880_v29 = vrot.slane %v1878_v20, 5  ;;  %v1890_v52 = vrot.slane %v1889_v43, 4  ;;  %v2796_v6 = vld [vmem:[%s3461_s14 + $0x14] sm:$0x1] }
  0x76   : > { %v1902_v54 = vrot.slane %v1900_v46, 5  ;;  %v2811_v11 = vrot.slane %v2795_v4, 9  ;;  %v2128_v12 = vrot.slane %v2796_v6, 5  ;;  %v2815_v20 = vrot.slane %v2803_v14, 9 }
  0x77   : > { %3078 = vmatpush3.bf16.msra.mxu1 %v3364_v26  ;;  %3181 = vmatprep.mubr.bf16.mxu0 %v2783_v10  ;;  %v3376_v26 = vld [vmem:[%s3874_s1 + $0x200] sm:$0xff]   ;;  %v1867_v31 = vsel %vm3485_vm2, %v1862_v21, %v1866_v9  ;;  %v1895_v61 = vsel %vm3485_vm2, %v1890_v52, %v1894_v35  ;;  %v3381_v10 = vld [vmem:[%s3874_s1 + $0x218] sm:$0xff]   ;;  %v2817_v46 = vrot.slane %v2807_v38, 9 }
  0x78   : > { %3174 = vmatpush3.bf16.msra.mxu0 %v3365_v25  ;;  %3079 = vmatprep.subr.bf16.mxu1 %v3366_v40  ;;  %v1853_v25 = vsel %vm3485_vm2, %v1848_v15, %v1852_v8  ;;  %v2798_v8 = vld [vmem:[%s3461_s14 + $0x1c] sm:$0x1]  ;;  %v2129_v21 = vsel %vm3572_vm5, %v2811_v11, %v2128_v12  ;;  %v2800_v35 = vld [vmem:[%s3461_s14 + $0x24] sm:$0x1] }
  0x79   : > { %3175 = vmatprep.subr.bf16.mxu0 %v3367_v27  ;;  %v2784_v36 = vcombine.low %v1853_v25, %v1867_v31  ;;  %v2132_v16 = vrot.slane %v2798_v8, 5  ;;  %v2148_v25 = vrot.slane %v2806_v33, 5  ;;  %v3383_v31 = vld [vmem:[%s3874_s1 + $0x228] sm:$0xff]   ;;  %v2136_v43 = vrot.slane %v2800_v35, 5 }
  0x7b   : > { %3080 = vmatpush3.bf16.msra.mxu1 %v3366_v40  ;;  %v2765_v40 = vld [vmem:[%s3461_s14 + $0x48] sm:$0xf]  ;;  %v2133_v24 = vsel %vm3572_vm5, %v2812_v13, %v2132_v16 }
  0x7c   : > { %3176 = vmatpush3.bf16.msra.mxu0 %v3367_v27  ;;  %3081 = vmatprep.subr.bf16.mxu1 %v3369_v48  ;;  %v1871_v27 = vrot.slane %v1869_v17, 4  ;;  %v1911_v49 = vshrl.u32 %v2765_v40, 16  ;;  %v1914_v50 = vshll.u32 %v2765_v40, 16  ;;  %v2804_v17 = vld [vmem:[%s3461_s14 + $0x34] sm:$0x1] }
  0x7d   : > { %3177 = vmatprep.subr.bf16.mxu0 %v3371_v53  ;;  %v2144_v22 = vrot.slane %v2804_v17, 5  ;;  %v2809_v40 = vld [vmem:[%s3461_s14 + $0x48] sm:$0xe] }
  0x7e   : > { %v1875_v37 = vor.u32 %v1874_v28, %v1871_v27  ;;  %v1913_v57 = vrot.slane %v1911_v49, 4  ;;  %v1916_v58 = vrot.slane %v1914_v50, 5  ;;  %v3382_v28 = vld [vmem:[%s3874_s1 + $0x220] sm:$0xff]   ;;  %v3385_v50 = vld [vmem:[%s3874_s1 + $0x238] sm:$0xff]  }
  0x7f   : > { %3082 = vmatpush3.bf16.msra.mxu1 %v3369_v48  ;;  %v2145_v27 = vsel %vm3572_vm5, %v2815_v20, %v2144_v22 }
  0x80   : > { %3178 = vmatpush3.bf16.msra.mxu0 %v3371_v53  ;;  %3083 = vmatprep.subr.bf16.mxu1 %v3372_v1  ;;  %v1876_v48 = vrot.slane %v1875_v37, 4  ;;  %v1899_v53 = vrot.slane %v1897_v45, 4  ;;  %v1917_v0 = vor.u32 %v1916_v58, %v1913_v57  ;;  %v2802_v37 = vld [vmem:[%s3461_s14 + $0x2c] sm:$0x1] }
  0x81   : > { %3179 = vmatprep.subr.bf16.mxu0 %v3373_v2  ;;  %v2140_v45 = vrot.slane %v2802_v37, 5 }
  0x82   : > { %v1881_v56 = vsel %vm3485_vm2, %v1876_v48, %v1880_v29  ;;  %v1903_v62 = vor.u32 %v1902_v54, %v1899_v53  ;;  %v1918_v3 = vrot.slane %v1917_v0, 4  ;;  %v2149_v29 = vsel %vm3572_vm5, %v2816_v23, %v2148_v25 }
  0x83   : > { %3084 = vmatpush3.bf16.msra.mxu1 %v3372_v1  ;;  %v2785_v63 = vcombine.low %v1881_v56, %v1895_v61  ;;  %v3379_v1 = vld [vmem:[%s3461_s14 + $0x38] ss:$8 sps:$4 sm:$0xff]   ;;  %v2818_v48 = vrot.slane %v2809_v40, 9  ;;  %v2153_v53 = vsel %vm3572_vm5, %v2817_v46, %v2152_v47 }
  0x84   : > { %3180 = vmatpush3.bf16.msra.mxu0 %v3373_v2  ;;  %3213 = vmatprep.subr.bf16.mxu1 %v3376_v26  ;;  %v1904_v2 = vrot.slane %v1903_v62, 4  ;;  %v1923_v9 = vsel %vm3485_vm2, %v1918_v3, %v1922_v59 }
  0x85   : > { %3189 = vmatprep.subr.bf16.mxu0 %v3376_v26 }
  0x86   : > { %3086 = vmatmul.mubr.bf16.vlgmr.msra.gmra.mrb[0].mxu1 %v3375_v30  ;;  %v1909_v5 = vsel %vm3485_vm2, %v1904_v2, %v1908_v55  ;;  %v2837_v30 = vcombine.low %v2145_v27, %v2149_v29 }
  0x87   : > { %3182 = vmatmul.mubr.bf16.vlgmr.msra.gmra.mrb[0].mxu0 %v2784_v36  ;;  %3221 = vmatpush3.bf16.msra.mxu1 %v3376_v26  ;;  %v2786_v15 = vcombine.low %v1909_v5, %v1923_v9  ;;  %v2801_v36 = vld [vmem:[%s3461_s14 + $0x28] sm:$0xe] }
  0x88   : > { %3190 = vmatpush3.bf16.msra.mxu0 %v3376_v26  ;;  %3214 = vmatprep.subr.bf16.mxu1 %v3377_v41  ;;  %v2835_v26 = vcombine.low %v2129_v21, %v2133_v24  ;;  %v2814_v44 = vrot.slane %v2801_v36, 9 }
  0x89   : > { %3191 = vmatprep.subr.bf16.mxu0 %v3377_v41  ;;  %3089 = vmatprep.mubr.bf16.mxu1 %v3378_v42  ;;  %v2813_v42 = vrot.slane %v2799_v34, 9 }
  0x8a   : > { %3185 = vmatprep.mubr.bf16.mxu0 %v2785_v63  ;;  %v2141_v52 = vsel %vm3572_vm5, %v2814_v44, %v2140_v45 }
  0x8b   : > { %3222 = vmatpush3.bf16.msra.mxu1 %v3377_v41  ;;  %v2137_v51 = vsel %vm3572_vm5, %v2813_v42, %v2136_v43 }
  0x8c   : > { %3192 = vmatpush3.bf16.msra.mxu0 %v3377_v41  ;;  %3215 = vmatprep.subr.bf16.mxu1 %v3380_v60  ;;  %v2810_v41 = vld [vmem:[%s3461_s14 + $0x4c] sm:$0x1]  ;;  %v2836_v55 = vcombine.low %v2137_v51, %v2141_v52  ;;  %s2857_s14 = sshll.u32 %s3882_s13, 5 }
  0x8d   : > { %3193 = vmatprep.subr.bf16.mxu0 %v3380_v60  ;;  %v2156_v49 = vrot.slane %v2810_v41, 5  ;;  %s177_s19 = scalar_lea.vmem %s3875_s2, %s2857_s14 }
  0x8e   : > { %3090 = vmatmul.mubr.bf16.gmra.mrb[4].mxu1 %v3379_v1 }
  0x8f   : > { %3186 = vmatmul.mubr.bf16.gmra.mrb[4].mxu0 %v2786_v15  ;;  %3223 = vmatpush3.bf16.msra.mxu1 %v3380_v60  ;;  %v2157_v54 = vsel %vm3572_vm5, %v2818_v48, %v2156_v49 }
  0x90   : > { %3194 = vmatpush3.bf16.msra.mxu0 %v3380_v60  ;;  %3216 = vmatprep.subr.bf16.mxu1 %v3381_v10  ;;  %v2838_v56 = vcombine.low %v2153_v53, %v2157_v54 }
  0x91   : > { %3195 = vmatprep.subr.bf16.mxu0 %v3381_v10  ;;  %3205 = vmatprep.mubr.bf16.mxu0 %v2835_v26 }
  0x92   : > { %3209 = vmatprep.mubr.bf16.mxu1 %v2837_v30 }
  0x93   : > { %3224 = vmatpush3.bf16.msra.mxu1 %v3381_v10 }
  0x94   : > { %3196 = vmatpush3.bf16.msra.mxu0 %v3381_v10  ;;  %3217 = vmatprep.subr.bf16.mxu1 %v3382_v28 }
  0x95   : > { %3197 = vmatprep.subr.bf16.mxu0 %v3382_v28 }
  0x97   : > { %3225 = vmatpush3.bf16.msra.mxu1 %v3382_v28 }
  0x98   : > { %3198 = vmatpush3.bf16.msra.mxu0 %v3382_v28  ;;  %3218 = vmatprep.subr.bf16.mxu1 %v3383_v31 }
  0x99   : > { %3199 = vmatprep.subr.bf16.mxu0 %v3383_v31 }
  0x9b   : > { %3226 = vmatpush3.bf16.msra.mxu1 %v3383_v31 }
  0x9c   : > { %3200 = vmatpush3.bf16.msra.mxu0 %v3383_v31  ;;  %3219 = vmatprep.subr.bf16.mxu1 %v3384_v32 }
  0x9d   : > { %3201 = vmatprep.subr.bf16.mxu0 %v3384_v32 }
  0x9f   : > { %3227 = vmatpush3.bf16.msra.mxu1 %v3384_v32 }
  0xa0   : > { %3202 = vmatpush3.bf16.msra.mxu0 %v3384_v32  ;;  %3220 = vmatprep.subr.bf16.mxu1 %v3385_v50 }
  0xa1   : > { %3203 = vmatprep.subr.bf16.mxu0 %v3385_v50 }
  0xa3   : > { %3228 = vmatpush3.bf16.msra.mxu1 %v3385_v50 }
  0xa4   : > { %3204 = vmatpush3.bf16.msra.mxu0 %v3385_v50 }
  0xa6   : > { %3210 = vmatmul.mubr.bf16.vlgmr.msra.gmra.mrb[8].mxu1 %v2838_v56 }
  0xa7   : > { %3206 = vmatmul.mubr.bf16.vlgmr.msra.gmra.mrb[0].mxu0 %v2836_v55 }
 0x159   : > { %v3087_v57 = vpop.f32.mrb[0].mxu1 }
 0x15a   : > { %v1022_v58 = vpop.f32.mrb[1].mxu1 }
 0x15b   : > { %v3088_v59 = vpop.f32.mrb[2].mxu1 }
 0x15c   : > { %v1025_v60 = vpop.f32.mrb[3].mxu1 }
 0x161   : > { %v3091_v61 = vpop.f32.mrb[4].mxu1 }
 0x162   : > { %v3187_v62 = vpop.f32.mrb[4].mxu0  ;;  %v1038_v0 = vpop.f32.mrb[5].mxu1 }
 0x163   : > { %v3233_v63 = vadd.f32 %v3187_v62, %v3091_v61  ;;  %v2055_v1 = vpop.f32.mrb[5].mxu0  ;;  %v3092_v2 = vpop.f32.mrb[6].mxu1 }
 0x164   : > { %v3235_v18 = vadd.f32 %v2055_v1, %v1038_v0  ;;  %v3188_v3 = vpop.f32.mrb[6].mxu0  ;;  %v1041_v5 = vpop.f32.mrb[7].mxu1 }
 0x165   : > { %v3237_v4 = vadd.f32 %v3188_v3, %v3092_v2  ;;  %v2058_v6 = vpop.f32.mrb[7].mxu0 }
 0x166   : > { %v3239_v7 = vadd.f32 %v2058_v6, %v1041_v5 }
 0x179   : > { %v3211_v9 = vpop.f32.mrb[8].mxu1 }
 0x17a   : > { %v3207_v8 = vpop.f32.mrb[0].mxu0  ;;  %v3234_v11 = vadd.f32 %v3233_v63, %v3211_v9  ;;  %v2289_v13 = vpop.f32.mrb[9].mxu1 }
 0x17b   : > { %v3229_v10 = vadd.f32 %v3207_v8, %v3087_v57  ;;  %v2273_v12 = vpop.f32.mrb[1].mxu0  ;;  %v3236_v15 = vadd.f32 %v3235_v18, %v2289_v13  ;;  %v3212_v17 = vpop.f32.mrb[10].mxu1 }
 0x17c   : > { %v3230_v14 = vadd.f32 %v2273_v12, %v1022_v58  ;;  %v3208_v16 = vpop.f32.mrb[2].mxu0  ;;  %v3238_v20 = vadd.f32 %v3237_v4, %v3212_v17  ;;  %v2292_v33 = vpop.f32.mrb[11].mxu1  ;;  %v2356_v44 = vmul.f32 %v3234_v11, %v3234_v11 }
 0x17d   : > { %v3231_v19 = vadd.f32 %v3208_v16, %v3088_v59  ;;  %v2276_v21 = vpop.f32.mrb[3].mxu0  ;;  %v3240_v23 = vadd.f32 %v3239_v7, %v2292_v33  ;;  %v2352_v31 = vmul.f32 %v3229_v10, %v3229_v10  ;;  %v2354_v38 = vmul.f32 %v3236_v15, %v3236_v15 }
 0x17e   : > { %v3232_v22 = vadd.f32 %v2276_v21, %v1025_v60  ;;  %v2884_v25 = vpack.c.bf16 %v3238_v20, %v3234_v11  ;;  %v2350_v26 = vmul.f32 %v3230_v14, %v3230_v14  ;;  %v2357_v47 = vmul.f32 %v3238_v20, %v3238_v20 }
 0x17f   : > { %v2874_v24 = vpack.c.bf16 %v3231_v19, %v3229_v10  ;;  %v2879_v30 = vpack.c.bf16 %v3240_v23, %v3236_v15  ;;  %v2353_v35 = vmul.f32 %v3231_v19, %v3231_v19  ;;  %v2355_v42 = vmul.f32 %v3240_v23, %v3240_v23 }
 0x180   : > { %v2336_v27 = vadd.f32 %v3232_v22, %v3230_v14  ;;  %v2351_v28 = vmul.f32 %v3232_v22, %v3232_v22  ;;  %v2869_v29 = vpack.c.bf16 %v3232_v22, %v3230_v14  ;;  %2888 = vst [vmem:[%s177_s19 + $0x18] sm:$0xff] %v2884_v25  }
 0x181   : > { %2886 = vst [vmem:[%s177_s19 + $0x8] sm:$0xff] %v2874_v24   ;;  %2887 = vst [vmem:[%s177_s19 + $0x10] sm:$0xff] %v2879_v30  }
 0x182   : > { %v2337_v32 = vadd.f32 %v3229_v10, %v2336_v27  ;;  %v2358_v34 = vadd.f32 %v2351_v28, %v2350_v26  ;;  %2870 = vst [vmem:[%s177_s19] sm:$0xff] %v2869_v29  }
 0x184   : > { %v2359_v36 = vadd.f32 %v2358_v34, %v2352_v31  ;;  %v2338_v37 = vadd.f32 %v3231_v19, %v2337_v32 }
 0x186   : > { %v2339_v39 = vadd.f32 %v3236_v15, %v2338_v37  ;;  %v2360_v40 = vadd.f32 %v2359_v36, %v2353_v35 }
 0x188   : > { %v2340_v41 = vadd.f32 %v3240_v23, %v2339_v39  ;;  %v2361_v43 = vadd.f32 %v2360_v40, %v2354_v38 }
 0x18a   : > { %v2341_v45 = vadd.f32 %v3234_v11, %v2340_v41  ;;  %v2362_v46 = vadd.f32 %v2361_v43, %v2355_v42 }
 0x18c   : > { %v2342_v48 = vadd.f32 %v3238_v20, %v2341_v45  ;;  %v2363_v49 = vadd.f32 %v2362_v46, %v2356_v44 }
 0x18e   : > { %v2343_v50 = vrot.slane %v2342_v48, 4  ;;  %v2364_v51 = vadd.f32 %v2363_v49, %v2357_v47 }
 0x190   : > { %v2344_v52 = vadd.f32 %v2343_v50, %v2342_v48  ;;  %v2365_v53 = vrot.slane %v2364_v51, 4 }
 0x192   : > { %v2345_v54 = vrot.slane %v2344_v52, 2  ;;  %v2366_v55 = vadd.f32 %v2365_v53, %v2364_v51 }
 0x194   : > { %v2346_v56 = vadd.f32 %v2345_v54, %v2344_v52  ;;  %v2367_v57 = vrot.slane %v2366_v55, 2 }
 0x196   : > { %v2347_v58 = vrot.slane %v2346_v56, 1  ;;  %v2368_v59 = vadd.f32 %v2367_v57, %v2366_v55 }
 0x198   : > { %v2348_v60 = vadd.f32 %v2347_v58, %v2346_v56  ;;  %v2369_v61 = vrot.slane %v2368_v59, 1 }
 0x19a   : > { %2349 = vst [vmem:[%s181_s23] sm:$0x1] %v2348_v60  ;;  %v2370_v62 = vadd.f32 %v2369_v61, %v2368_v59 }
 0x19c   : > { %2371 = vst [vmem:[%s181_s23 + $0x1] sm:$0x1] %v2370_v62 }
 0x19d PF: > { %s14_s12 = sadd.s32 1, %s3392_s12  }
 0x19e   : > { %p11_p4 = scmp.ge.s32.totalorder %s14_s12, 4  }
 0x1a0   :  { %13 = sbr.rel (!%p11_p4) target bundleno = 1 (0x1), region = 80 }

</bundles_post_ra>
